<compile_context>
chip_gen: v7x
topology: tpu7x:2x2x1
jax: 0.10.0
libtpu: 0.0.40
codegen_flags: <defaults>
</compile_context>

<pallas_src>
import numpy as np
import jax
import jax.numpy as jnp
from jax import lax
from jax.experimental import pallas as pl
from jax.experimental.pallas import tpu as pltpu

# ---- small config, consistent with the PyTorch module (scaled down) ----
EMBED = 64
HEADS = 4
HEAD_DIM = EMBED // HEADS
FWD_EXP = 4
HIDDEN = FWD_EXP * EMBED
NUM_LAYERS = 2        # decoder layers; encoder builds exactly ONE block (reference quirk)
SRC_VOCAB = 10
TRG_VOCAB = 10
VOCAB_PAD = 128       # pad logits to a full 128-lane register; sliced back in wrapper
MAX_LEN = 16
LN_EPS = 1e-5         # PyTorch nn.LayerNorm default

NUM_ATT = 1 + 2 * NUM_LAYERS    # enc + (self, cross) per decoder layer
NUM_NORM = 2 + 3 * NUM_LAYERS
NUM_FFN = 1 + NUM_LAYERS


# ------------------------------ fused Pallas kernel ------------------------------

def _fused_transformer_kernel(src_ref, trg_ref,
                              wq_ref, wk_ref, wv_ref, wo_ref, bo_ref,
                              g_ref, be_ref,
                              w1_ref, b1_ref, w2_ref, b2_ref,
                              fcw_ref, fcb_ref,
                              out_ref):
    """Whole Transformer forward for ONE batch element per grid step."""
    scale = 1.0 / np.sqrt(EMBED)   # reference quirk: scaled by sqrt(embed_size)

    # Per-head lane masks, hoisted once per step.  They let us do per-head
    # contractions with full 64-lane matmuls instead of 16-lane vreg slices.
    lane = lax.broadcasted_iota(jnp.int32, (1, EMBED), 1)
    head_masks = [
        ((lane >= h * HEAD_DIM) & (lane < (h + 1) * HEAD_DIM)).astype(jnp.float32)
        for h in range(HEADS)
    ]

    def attention(idx, v_in, k_in, q_in):
        # wq/wk/wv are block-diagonal (E,E) copies of the shared head matrix (host
        # side), so one 64-wide matmul projects all heads at once.
        qp = jnp.dot(q_in, wq_ref[idx], preferred_element_type=jnp.float32)   # (Lq,E)
        kp = jnp.dot(k_in, wk_ref[idx], preferred_element_type=jnp.float32)   # (Lk,E)
        vp = jnp.dot(v_in, wv_ref[idx], preferred_element_type=jnp.float32)   # (Lk,E)
        ctx = jnp.zeros(qp.shape, jnp.float32)
        for m in head_masks:
            # per-head energy via a full-width contraction against lane-masked K
            e = lax.dot_general(qp, kp * m, (((1,), (1,)), ((), ())),
                                preferred_element_type=jnp.float32) * scale   # (Lq,Lk)
            # TODO(synk): masking is a deliberate no-op (reference passes bound methods)
            e = e - jnp.max(e, axis=-1, keepdims=True)
            p = jnp.exp(e)
            a = p * pl.reciprocal(jnp.sum(p, axis=-1, keepdims=True), approx=True)
            # attn @ (lane-masked V) lands head h's output in its own lane block;
            # summing over heads reproduces the concat of the reference.
            ctx = ctx + jnp.dot(a, vp * m, preferred_element_type=jnp.float32)
        return jnp.dot(ctx, wo_ref[idx], preferred_element_type=jnp.float32) + bo_ref[idx]

    def add_norm(idx, a, b):
        x = a + b
        mu = jnp.mean(x, axis=-1, keepdims=True)
        xc = x - mu
        var = jnp.mean(xc * xc, axis=-1, keepdims=True)
        return xc * lax.rsqrt(var + LN_EPS) * g_ref[idx] + be_ref[idx]

    def ffn(idx, x):
        h = jnp.dot(x, w1_ref[idx], preferred_element_type=jnp.float32) + b1_ref[idx]
        h = jnp.maximum(h, 0.0)
        return jnp.dot(h, w2_ref[idx], preferred_element_type=jnp.float32) + b2_ref[idx]

    def trans_block(att_i, norm_i, ffn_i, value, key, query):
        att = attention(att_i, value, key, query)
        x = add_norm(norm_i, att, query)              # dropout p=0 -> no-op
        f = ffn(ffn_i, x)
        return add_norm(norm_i + 1, f, x)

    src = src_ref[0]            # (Ls, E)
    x = trg_ref[0]              # (Lt, E)

    enc = trans_block(0, 0, 0, src, src, src)         # encoder: exactly one block

    for l in range(NUM_LAYERS):                       # decoder blocks
        a = attention(1 + 2 * l, x, x, x)             # self-attention
        q = add_norm(2 + 3 * l, a, x)
        x = trans_block(2 + 2 * l, 3 + 3 * l, 1 + l, enc, enc, q)   # cross + FFN

    # final projection; weight is lane-padded to 128 so the store is unmasked
    out_ref[0] = jnp.dot(x, fcw_ref[...], preferred_element_type=jnp.float32) + fcb_ref[...]


# ------------------------------ wrapper ------------------------------

@jax.jit
def transformer_forward(packed, src, trg):
    N, Ls = src.shape
    _, Lt = trg.shape
    # TODO(synk): embedding gathers stay in plain JAX (no useful Pallas gather at this
    # size); everything downstream is a single fused pallas_call.
    src_emb = packed["enc_word"][src] + packed["enc_pos"][jnp.arange(Ls)][None, :, :]
    trg_emb = packed["dec_word"][trg] + packed["dec_pos"][jnp.arange(Lt)][None, :, :]

    out_pad = pl.pallas_call(
        _fused_transformer_kernel,
        out_shape=jax.ShapeDtypeStruct((N, Lt, VOCAB_PAD), jnp.float32),
        grid=(N,),
        in_specs=[
            pl.BlockSpec((1, Ls, EMBED), lambda n: (n, 0, 0)),            # src embedding
            pl.BlockSpec((1, Lt, EMBED), lambda n: (n, 0, 0)),            # trg embedding
            pl.BlockSpec((NUM_ATT, EMBED, EMBED), lambda n: (0, 0, 0)),   # Wq (block-diag)
            pl.BlockSpec((NUM_ATT, EMBED, EMBED), lambda n: (0, 0, 0)),   # Wk (block-diag)
            pl.BlockSpec((NUM_ATT, EMBED, EMBED), lambda n: (0, 0, 0)),   # Wv (block-diag)
            pl.BlockSpec((NUM_ATT, EMBED, EMBED), lambda n: (0, 0, 0)),   # Wo^T
            pl.BlockSpec((NUM_ATT, 1, EMBED), lambda n: (0, 0, 0)),       # bo
            pl.BlockSpec((NUM_NORM, 1, EMBED), lambda n: (0, 0, 0)),      # LN gamma
            pl.BlockSpec((NUM_NORM, 1, EMBED), lambda n: (0, 0, 0)),      # LN beta
            pl.BlockSpec((NUM_FFN, EMBED, HIDDEN), lambda n: (0, 0, 0)),  # W1^T
            pl.BlockSpec((NUM_FFN, 1, HIDDEN), lambda n: (0, 0, 0)),      # b1
            pl.BlockSpec((NUM_FFN, HIDDEN, EMBED), lambda n: (0, 0, 0)),  # W2^T
            pl.BlockSpec((NUM_FFN, 1, EMBED), lambda n: (0, 0, 0)),       # b2
            pl.BlockSpec((EMBED, VOCAB_PAD), lambda n: (0, 0)),           # fc^T (padded)
            pl.BlockSpec((1, VOCAB_PAD), lambda n: (0, 0)),               # fc bias (padded)
        ],
        out_specs=pl.BlockSpec((1, Lt, VOCAB_PAD), lambda n: (n, 0, 0)),
        compiler_params=pltpu.CompilerParams(dimension_semantics=("parallel",)),
    )(src_emb, trg_emb,
      packed["wq"], packed["wk"], packed["wv"], packed["wo"], packed["bo"],
      packed["gamma"], packed["beta"],
      packed["w1"], packed["b1"], packed["w2"], packed["b2"],
      packed["fcw"], packed["fcb"])

    return out_pad[:, :, :TRG_VOCAB]


# ------------------------------ parameter init / packing ------------------------------

def init_params(key):
    keys = iter(jax.random.split(key, 128))

    def lin(out_d, in_d):
        s = 1.0 / np.sqrt(in_d)
        w = jax.random.uniform(next(keys), (out_d, in_d), jnp.float32, -s, s)
        b = jax.random.uniform(next(keys), (out_d,), jnp.float32, -s, s)
        return w, b

    def attention_params():
        wq, _ = lin(HEAD_DIM, HEAD_DIM)
        wk, _ = lin(HEAD_DIM, HEAD_DIM)
        wv, _ = lin(HEAD_DIM, HEAD_DIM)
        wo, bo = lin(EMBED, EMBED)
        return dict(wq=wq, wk=wk, wv=wv, wo=wo, bo=bo)

    def trans_block_params():
        att = attention_params()
        w1, b1 = lin(HIDDEN, EMBED)
        w2, b2 = lin(EMBED, HIDDEN)
        return dict(att=att,
                    norm1_g=jnp.ones((EMBED,), jnp.float32),
                    norm1_b=jnp.zeros((EMBED,), jnp.float32),
                    norm2_g=jnp.ones((EMBED,), jnp.float32),
                    norm2_b=jnp.zeros((EMBED,), jnp.float32),
                    w1=w1, b1=b1, w2=w2, b2=b2)

    def decoder_block_params():
        return dict(att=attention_params(),
                    norm_g=jnp.ones((EMBED,), jnp.float32),
                    norm_b=jnp.zeros((EMBED,), jnp.float32),
                    trans=trans_block_params())

    enc = dict(
        word_embed=0.1 * jax.random.normal(next(keys), (SRC_VOCAB, EMBED), jnp.float32),
        pos_emb=0.1 * jax.random.normal(next(keys), (MAX_LEN, EMBED), jnp.float32),
        layers=[trans_block_params()],          # reference Encoder instantiates 1 block
    )
    fc_w, fc_b = lin(TRG_VOCAB, EMBED)
    dec = dict(
        word_emb=0.1 * jax.random.normal(next(keys), (TRG_VOCAB, EMBED), jnp.float32),
        pos_emb=0.1 * jax.random.normal(next(keys), (MAX_LEN, EMBED), jnp.float32),
        layers=[decoder_block_params() for _ in range(NUM_LAYERS)],
        fc_w=fc_w, fc_b=fc_b,
    )
    return dict(encoder=enc, decoder=dec)


def pack_params(params):
    """Host-side repack: transpose/block-diagonalize/stack weights for the fused kernel."""
    enc = params["encoder"]
    dec = params["decoder"]
    eb = enc["layers"][0]

    atts = [eb["att"]]
    norms = [(eb["norm1_g"], eb["norm1_b"]), (eb["norm2_g"], eb["norm2_b"])]
    ffns = [eb]
    for blk in dec["layers"]:
        atts.append(blk["att"])               # decoder self-attention
        atts.append(blk["trans"]["att"])      # decoder cross-attention
        norms.append((blk["norm_g"], blk["norm_b"]))
        norms.append((blk["trans"]["norm1_g"], blk["trans"]["norm1_b"]))
        norms.append((blk["trans"]["norm2_g"], blk["trans"]["norm2_b"]))
        ffns.append(blk["trans"])

    def bdT(w):
        # shared (D,D) head matrix -> block-diagonal (E,E) of w.T, so x @ bdT(w)
        # applies it to every head at once (preserves the reference's weight sharing).
        m = jnp.zeros((EMBED, EMBED), jnp.float32)
        wt = w.T
        for h in range(HEADS):
            s = h * HEAD_DIM
            m = m.at[s:s + HEAD_DIM, s:s + HEAD_DIM].set(wt)
        return m

    fcw = jnp.zeros((EMBED, VOCAB_PAD), jnp.float32).at[:, :TRG_VOCAB].set(dec["fc_w"].T)
    fcb = jnp.zeros((1, VOCAB_PAD), jnp.float32).at[:, :TRG_VOCAB].set(
        dec["fc_b"].reshape(1, TRG_VOCAB))

    return dict(
        enc_word=enc["word_embed"], enc_pos=enc["pos_emb"],
        dec_word=dec["word_emb"], dec_pos=dec["pos_emb"],
        wq=jnp.stack([bdT(a["wq"]) for a in atts]),
        wk=jnp.stack([bdT(a["wk"]) for a in atts]),
        wv=jnp.stack([bdT(a["wv"]) for a in atts]),
        wo=jnp.stack([a["wo"].T for a in atts]),
        bo=jnp.stack([a["bo"].reshape(1, EMBED) for a in atts]),
        gamma=jnp.stack([g.reshape(1, EMBED) for g, _ in norms]),
        beta=jnp.stack([b.reshape(1, EMBED) for _, b in norms]),
        w1=jnp.stack([f["w1"].T for f in ffns]),
        b1=jnp.stack([f["b1"].reshape(1, HIDDEN) for f in ffns]),
        w2=jnp.stack([f["w2"].T for f in ffns]),
        b2=jnp.stack([f["b2"].reshape(1, EMBED) for f in ffns]),
        fcw=fcw, fcb=fcb,
    )


# ------------------------------ main ------------------------------

if __name__ == "__main__":
    params = init_params(jax.random.PRNGKey(0))
    packed = pack_params(params)

    # same token inputs as the reference script
    src = jnp.array([[1, 5, 6, 4, 3, 9, 5, 2, 0],
                     [1, 8, 7, 3, 4, 5, 6, 7, 2]], dtype=jnp.int32)
    trg = jnp.array([[1, 7, 4, 3, 5, 9, 2, 0],
                     [1, 5, 6, 2, 4, 7, 6, 2]], dtype=jnp.int32)
    trg_in = trg[:, :-1]                      # (2, 7)

    out = transformer_forward(packed, src, trg_in)
    out = jax.block_until_ready(out)

    assert out.shape == (2, 7, TRG_VOCAB), out.shape
    assert bool(jnp.all(jnp.isfinite(out)))
    print("KERNEL_OK")
</pallas_src>

<mosaic_0001>
module attributes {stable_mosaic.version = 11 : i64} {
  func.func @_fused_transformer_kernel(%arg0: i32, %arg1: memref<1x9x64xf32, #tpu.memory_space<vmem>>, %arg2: memref<1x7x64xf32, #tpu.memory_space<vmem>>, %arg3: memref<5x64x64xf32, #tpu.memory_space<vmem>>, %arg4: memref<5x64x64xf32, #tpu.memory_space<vmem>>, %arg5: memref<5x64x64xf32, #tpu.memory_space<vmem>>, %arg6: memref<5x64x64xf32, #tpu.memory_space<vmem>>, %arg7: memref<5x1x64xf32, #tpu.memory_space<vmem>>, %arg8: memref<8x1x64xf32, #tpu.memory_space<vmem>>, %arg9: memref<8x1x64xf32, #tpu.memory_space<vmem>>, %arg10: memref<3x64x256xf32, #tpu.memory_space<vmem>>, %arg11: memref<3x1x256xf32, #tpu.memory_space<vmem>>, %arg12: memref<3x256x64xf32, #tpu.memory_space<vmem>>, %arg13: memref<3x1x64xf32, #tpu.memory_space<vmem>>, %arg14: memref<64x128xf32, #tpu.memory_space<vmem>>, %arg15: memref<1x128xf32, #tpu.memory_space<vmem>>, %arg16: memref<1x7x128xf32, #tpu.memory_space<vmem>>) attributes {dimension_semantics = [#tpu.dimension_semantics<parallel>], iteration_bounds = array<i64: 2>, scalar_prefetch = 0 : i64, scratch_operands = 0 : i64, tpu.core_type = #tpu.core_type<tc>, window_params = [{transform_indices = @transform_0, window_bounds = array<i64: 1, 9, 64>}, {transform_indices = @transform_1, window_bounds = array<i64: 1, 7, 64>}, {pipeline_mode = #tpu.pipeline_mode<synchronous>, transform_indices = @transform_2, window_bounds = array<i64: 5, 64, 64>}, {pipeline_mode = #tpu.pipeline_mode<synchronous>, transform_indices = @transform_3, window_bounds = array<i64: 5, 64, 64>}, {pipeline_mode = #tpu.pipeline_mode<synchronous>, transform_indices = @transform_4, window_bounds = array<i64: 5, 64, 64>}, {pipeline_mode = #tpu.pipeline_mode<synchronous>, transform_indices = @transform_5, window_bounds = array<i64: 5, 64, 64>}, {pipeline_mode = #tpu.pipeline_mode<synchronous>, transform_indices = @transform_6, window_bounds = array<i64: 5, 1, 64>}, {pipeline_mode = #tpu.pipeline_mode<synchronous>, transform_indices = @transform_7, window_bounds = array<i64: 8, 1, 64>}, {pipeline_mode = #tpu.pipeline_mode<synchronous>, transform_indices = @transform_8, window_bounds = array<i64: 8, 1, 64>}, {pipeline_mode = #tpu.pipeline_mode<synchronous>, transform_indices = @transform_9, window_bounds = array<i64: 3, 64, 256>}, {pipeline_mode = #tpu.pipeline_mode<synchronous>, transform_indices = @transform_10, window_bounds = array<i64: 3, 1, 256>}, {pipeline_mode = #tpu.pipeline_mode<synchronous>, transform_indices = @transform_11, window_bounds = array<i64: 3, 256, 64>}, {pipeline_mode = #tpu.pipeline_mode<synchronous>, transform_indices = @transform_12, window_bounds = array<i64: 3, 1, 64>}, {pipeline_mode = #tpu.pipeline_mode<synchronous>, transform_indices = @transform_13, window_bounds = array<i64: 64, 128>}, {pipeline_mode = #tpu.pipeline_mode<synchronous>, transform_indices = @transform_14, window_bounds = array<i64: 1, 128>}, {transform_indices = @transform_15, window_bounds = array<i64: 1, 7, 128>}]} {
    %0 = tpu.iota {dimensions = array<i32: 1>} : vector<1x64xi32>
    %c0_i32 = arith.constant 0 : i32
    %1 = vector.broadcast %c0_i32 : i32 to vector<1x64xi32>
    %2 = arith.cmpi sge, %0, %1 : vector<1x64xi32>
    %c16_i32 = arith.constant 16 : i32
    %3 = vector.broadcast %c16_i32 : i32 to vector<1x64xi32>
    %4 = arith.cmpi slt, %0, %3 : vector<1x64xi32>
    %5 = arith.andi %2, %4 : vector<1x64xi1>
    %6 = arith.extui %5 : vector<1x64xi1> to vector<1x64xi32>
    %7 = arith.sitofp %6 : vector<1x64xi32> to vector<1x64xf32>
    %c16_i32_0 = arith.constant 16 : i32
    %8 = vector.broadcast %c16_i32_0 : i32 to vector<1x64xi32>
    %9 = arith.cmpi sge, %0, %8 : vector<1x64xi32>
    %c32_i32 = arith.constant 32 : i32
    %10 = vector.broadcast %c32_i32 : i32 to vector<1x64xi32>
    %11 = arith.cmpi slt, %0, %10 : vector<1x64xi32>
    %12 = arith.andi %9, %11 : vector<1x64xi1>
    %13 = arith.extui %12 : vector<1x64xi1> to vector<1x64xi32>
    %14 = arith.sitofp %13 : vector<1x64xi32> to vector<1x64xf32>
    %c32_i32_1 = arith.constant 32 : i32
    %15 = vector.broadcast %c32_i32_1 : i32 to vector<1x64xi32>
    %16 = arith.cmpi sge, %0, %15 : vector<1x64xi32>
    %c48_i32 = arith.constant 48 : i32
    %17 = vector.broadcast %c48_i32 : i32 to vector<1x64xi32>
    %18 = arith.cmpi slt, %0, %17 : vector<1x64xi32>
    %19 = arith.andi %16, %18 : vector<1x64xi1>
    %20 = arith.extui %19 : vector<1x64xi1> to vector<1x64xi32>
    %21 = arith.sitofp %20 : vector<1x64xi32> to vector<1x64xf32>
    %c48_i32_2 = arith.constant 48 : i32
    %22 = vector.broadcast %c48_i32_2 : i32 to vector<1x64xi32>
    %23 = arith.cmpi sge, %0, %22 : vector<1x64xi32>
    %c64_i32 = arith.constant 64 : i32
    %24 = vector.broadcast %c64_i32 : i32 to vector<1x64xi32>
    %25 = arith.cmpi slt, %0, %24 : vector<1x64xi32>
    %26 = arith.andi %23, %25 : vector<1x64xi1>
    %27 = arith.extui %26 : vector<1x64xi1> to vector<1x64xi32>
    %28 = arith.sitofp %27 : vector<1x64xi32> to vector<1x64xf32>
    %c0 = arith.constant 0 : index
    %c0_3 = arith.constant 0 : index
    %c0_4 = arith.constant 0 : index
    %29 = vector.load %arg1[%c0, %c0_3, %c0_4] : memref<1x9x64xf32, #tpu.memory_space<vmem>>, vector<1x9x64xf32>
    %30 = vector.shape_cast %29 : vector<1x9x64xf32> to vector<9x64xf32>
    %c0_5 = arith.constant 0 : index
    %c0_6 = arith.constant 0 : index
    %c0_7 = arith.constant 0 : index
    %31 = vector.load %arg2[%c0_5, %c0_6, %c0_7] : memref<1x7x64xf32, #tpu.memory_space<vmem>>, vector<1x7x64xf32>
    %32 = vector.shape_cast %31 : vector<1x7x64xf32> to vector<7x64xf32>
    %c0_8 = arith.constant 0 : index
    %c0_9 = arith.constant 0 : index
    %c0_10 = arith.constant 0 : index
    %33 = vector.load %arg3[%c0_8, %c0_9, %c0_10] : memref<5x64x64xf32, #tpu.memory_space<vmem>>, vector<1x64x64xf32>
    %34 = vector.shape_cast %33 : vector<1x64x64xf32> to vector<64x64xf32>
    %cst = arith.constant dense<0.000000e+00> : vector<9x64xf32>
    %35 = tpu.matmul %30, %34, %cst {dimension_numbers = #tpu.dot_dimension_numbers<[1], [0], [0], [1], [0, 0, 1, 1], [], []>} : vector<9x64xf32>, vector<64x64xf32>, vector<9x64xf32> -> vector<9x64xf32>
    %c0_11 = arith.constant 0 : index
    %c0_12 = arith.constant 0 : index
    %c0_13 = arith.constant 0 : index
    %36 = vector.load %arg4[%c0_11, %c0_12, %c0_13] : memref<5x64x64xf32, #tpu.memory_space<vmem>>, vector<1x64x64xf32>
    %37 = vector.shape_cast %36 : vector<1x64x64xf32> to vector<64x64xf32>
    %cst_14 = arith.constant dense<0.000000e+00> : vector<9x64xf32>
    %38 = tpu.matmul %30, %37, %cst_14 {dimension_numbers = #tpu.dot_dimension_numbers<[1], [0], [0], [1], [0, 0, 1, 1], [], []>} : vector<9x64xf32>, vector<64x64xf32>, vector<9x64xf32> -> vector<9x64xf32>
    %c0_15 = arith.constant 0 : index
    %c0_16 = arith.constant 0 : index
    %c0_17 = arith.constant 0 : index
    %39 = vector.load %arg5[%c0_15, %c0_16, %c0_17] : memref<5x64x64xf32, #tpu.memory_space<vmem>>, vector<1x64x64xf32>
    %40 = vector.shape_cast %39 : vector<1x64x64xf32> to vector<64x64xf32>
    %cst_18 = arith.constant dense<0.000000e+00> : vector<9x64xf32>
    %41 = tpu.matmul %30, %40, %cst_18 {dimension_numbers = #tpu.dot_dimension_numbers<[1], [0], [0], [1], [0, 0, 1, 1], [], []>} : vector<9x64xf32>, vector<64x64xf32>, vector<9x64xf32> -> vector<9x64xf32>
    %cst_19 = arith.constant 0.000000e+00 : f32
    %42 = vector.broadcast %cst_19 : f32 to vector<9x64xf32>
    %43 = vector.broadcast %7 : vector<1x64xf32> to vector<9x64xf32>
    %44 = arith.mulf %38, %43 : vector<9x64xf32>
    %cst_20 = arith.constant dense<0.000000e+00> : vector<9x9xf32>
    %45 = tpu.matmul %35, %44, %cst_20 {dimension_numbers = #tpu.dot_dimension_numbers<[1], [1], [0], [0], [0, 0, 1, 0], [], []>} : vector<9x64xf32>, vector<9x64xf32>, vector<9x9xf32> -> vector<9x9xf32>
    %cst_21 = arith.constant 1.250000e-01 : f32
    %46 = vector.broadcast %cst_21 : f32 to vector<9x9xf32>
    %47 = arith.mulf %45, %46 : vector<9x9xf32>
    %cst_22 = arith.constant dense<0xFF800000> : vector<9xf32>
    %48 = vector.multi_reduction <maximumf>, %47, %cst_22 [1] : vector<9x9xf32> to vector<9xf32>
    %49 = vector.shape_cast %48 : vector<9xf32> to vector<9x1xf32>
    %50 = vector.broadcast %49 : vector<9x1xf32> to vector<9x9xf32>
    %51 = arith.subf %47, %50 : vector<9x9xf32>
    %52 = math.exp %51 : vector<9x9xf32>
    %cst_23 = arith.constant dense<0.000000e+00> : vector<9xf32>
    %53 = vector.multi_reduction <add>, %52, %cst_23 [1] : vector<9x9xf32> to vector<9xf32>
    %54 = vector.shape_cast %53 : vector<9xf32> to vector<9x1xf32>
    %55 = tpu.reciprocal %54 {approx = true} : vector<9x1xf32> -> vector<9x1xf32>
    %56 = vector.broadcast %55 : vector<9x1xf32> to vector<9x9xf32>
    %57 = arith.mulf %52, %56 : vector<9x9xf32>
    %58 = vector.broadcast %7 : vector<1x64xf32> to vector<9x64xf32>
    %59 = arith.mulf %41, %58 : vector<9x64xf32>
    %cst_24 = arith.constant dense<0.000000e+00> : vector<9x64xf32>
    %60 = tpu.matmul %57, %59, %cst_24 {dimension_numbers = #tpu.dot_dimension_numbers<[1], [0], [0], [1], [0, 0, 1, 1], [], []>} : vector<9x9xf32>, vector<9x64xf32>, vector<9x64xf32> -> vector<9x64xf32>
    %61 = arith.addf %42, %60 : vector<9x64xf32>
    %62 = vector.broadcast %14 : vector<1x64xf32> to vector<9x64xf32>
    %63 = arith.mulf %38, %62 : vector<9x64xf32>
    %cst_25 = arith.constant dense<0.000000e+00> : vector<9x9xf32>
    %64 = tpu.matmul %35, %63, %cst_25 {dimension_numbers = #tpu.dot_dimension_numbers<[1], [1], [0], [0], [0, 0, 1, 0], [], []>} : vector<9x64xf32>, vector<9x64xf32>, vector<9x9xf32> -> vector<9x9xf32>
    %cst_26 = arith.constant 1.250000e-01 : f32
    %65 = vector.broadcast %cst_26 : f32 to vector<9x9xf32>
    %66 = arith.mulf %64, %65 : vector<9x9xf32>
    %cst_27 = arith.constant dense<0xFF800000> : vector<9xf32>
    %67 = vector.multi_reduction <maximumf>, %66, %cst_27 [1] : vector<9x9xf32> to vector<9xf32>
    %68 = vector.shape_cast %67 : vector<9xf32> to vector<9x1xf32>
    %69 = vector.broadcast %68 : vector<9x1xf32> to vector<9x9xf32>
    %70 = arith.subf %66, %69 : vector<9x9xf32>
    %71 = math.exp %70 : vector<9x9xf32>
    %cst_28 = arith.constant dense<0.000000e+00> : vector<9xf32>
    %72 = vector.multi_reduction <add>, %71, %cst_28 [1] : vector<9x9xf32> to vector<9xf32>
    %73 = vector.shape_cast %72 : vector<9xf32> to vector<9x1xf32>
    %74 = tpu.reciprocal %73 {approx = true} : vector<9x1xf32> -> vector<9x1xf32>
    %75 = vector.broadcast %74 : vector<9x1xf32> to vector<9x9xf32>
    %76 = arith.mulf %71, %75 : vector<9x9xf32>
    %77 = vector.broadcast %14 : vector<1x64xf32> to vector<9x64xf32>
    %78 = arith.mulf %41, %77 : vector<9x64xf32>
    %cst_29 = arith.constant dense<0.000000e+00> : vector<9x64xf32>
    %79 = tpu.matmul %76, %78, %cst_29 {dimension_numbers = #tpu.dot_dimension_numbers<[1], [0], [0], [1], [0, 0, 1, 1], [], []>} : vector<9x9xf32>, vector<9x64xf32>, vector<9x64xf32> -> vector<9x64xf32>
    %80 = arith.addf %61, %79 : vector<9x64xf32>
    %81 = vector.broadcast %21 : vector<1x64xf32> to vector<9x64xf32>
    %82 = arith.mulf %38, %81 : vector<9x64xf32>
    %cst_30 = arith.constant dense<0.000000e+00> : vector<9x9xf32>
    %83 = tpu.matmul %35, %82, %cst_30 {dimension_numbers = #tpu.dot_dimension_numbers<[1], [1], [0], [0], [0, 0, 1, 0], [], []>} : vector<9x64xf32>, vector<9x64xf32>, vector<9x9xf32> -> vector<9x9xf32>
    %cst_31 = arith.constant 1.250000e-01 : f32
    %84 = vector.broadcast %cst_31 : f32 to vector<9x9xf32>
    %85 = arith.mulf %83, %84 : vector<9x9xf32>
    %cst_32 = arith.constant dense<0xFF800000> : vector<9xf32>
    %86 = vector.multi_reduction <maximumf>, %85, %cst_32 [1] : vector<9x9xf32> to vector<9xf32>
    %87 = vector.shape_cast %86 : vector<9xf32> to vector<9x1xf32>
    %88 = vector.broadcast %87 : vector<9x1xf32> to vector<9x9xf32>
    %89 = arith.subf %85, %88 : vector<9x9xf32>
    %90 = math.exp %89 : vector<9x9xf32>
    %cst_33 = arith.constant dense<0.000000e+00> : vector<9xf32>
    %91 = vector.multi_reduction <add>, %90, %cst_33 [1] : vector<9x9xf32> to vector<9xf32>
    %92 = vector.shape_cast %91 : vector<9xf32> to vector<9x1xf32>
    %93 = tpu.reciprocal %92 {approx = true} : vector<9x1xf32> -> vector<9x1xf32>
    %94 = vector.broadcast %93 : vector<9x1xf32> to vector<9x9xf32>
    %95 = arith.mulf %90, %94 : vector<9x9xf32>
    %96 = vector.broadcast %21 : vector<1x64xf32> to vector<9x64xf32>
    %97 = arith.mulf %41, %96 : vector<9x64xf32>
    %cst_34 = arith.constant dense<0.000000e+00> : vector<9x64xf32>
    %98 = tpu.matmul %95, %97, %cst_34 {dimension_numbers = #tpu.dot_dimension_numbers<[1], [0], [0], [1], [0, 0, 1, 1], [], []>} : vector<9x9xf32>, vector<9x64xf32>, vector<9x64xf32> -> vector<9x64xf32>
    %99 = arith.addf %80, %98 : vector<9x64xf32>
    %100 = vector.broadcast %28 : vector<1x64xf32> to vector<9x64xf32>
    %101 = arith.mulf %38, %100 : vector<9x64xf32>
    %cst_35 = arith.constant dense<0.000000e+00> : vector<9x9xf32>
    %102 = tpu.matmul %35, %101, %cst_35 {dimension_numbers = #tpu.dot_dimension_numbers<[1], [1], [0], [0], [0, 0, 1, 0], [], []>} : vector<9x64xf32>, vector<9x64xf32>, vector<9x9xf32> -> vector<9x9xf32>
    %cst_36 = arith.constant 1.250000e-01 : f32
    %103 = vector.broadcast %cst_36 : f32 to vector<9x9xf32>
    %104 = arith.mulf %102, %103 : vector<9x9xf32>
    %cst_37 = arith.constant dense<0xFF800000> : vector<9xf32>
    %105 = vector.multi_reduction <maximumf>, %104, %cst_37 [1] : vector<9x9xf32> to vector<9xf32>
    %106 = vector.shape_cast %105 : vector<9xf32> to vector<9x1xf32>
    %107 = vector.broadcast %106 : vector<9x1xf32> to vector<9x9xf32>
    %108 = arith.subf %104, %107 : vector<9x9xf32>
    %109 = math.exp %108 : vector<9x9xf32>
    %cst_38 = arith.constant dense<0.000000e+00> : vector<9xf32>
    %110 = vector.multi_reduction <add>, %109, %cst_38 [1] : vector<9x9xf32> to vector<9xf32>
    %111 = vector.shape_cast %110 : vector<9xf32> to vector<9x1xf32>
    %112 = tpu.reciprocal %111 {approx = true} : vector<9x1xf32> -> vector<9x1xf32>
    %113 = vector.broadcast %112 : vector<9x1xf32> to vector<9x9xf32>
    %114 = arith.mulf %109, %113 : vector<9x9xf32>
    %115 = vector.broadcast %28 : vector<1x64xf32> to vector<9x64xf32>
    %116 = arith.mulf %41, %115 : vector<9x64xf32>
    %cst_39 = arith.constant dense<0.000000e+00> : vector<9x64xf32>
    %117 = tpu.matmul %114, %116, %cst_39 {dimension_numbers = #tpu.dot_dimension_numbers<[1], [0], [0], [1], [0, 0, 1, 1], [], []>} : vector<9x9xf32>, vector<9x64xf32>, vector<9x64xf32> -> vector<9x64xf32>
    %118 = arith.addf %99, %117 : vector<9x64xf32>
    %c0_40 = arith.constant 0 : index
    %c0_41 = arith.constant 0 : index
    %c0_42 = arith.constant 0 : index
    %119 = vector.load %arg6[%c0_40, %c0_41, %c0_42] : memref<5x64x64xf32, #tpu.memory_space<vmem>>, vector<1x64x64xf32>
    %120 = vector.shape_cast %119 : vector<1x64x64xf32> to vector<64x64xf32>
    %cst_43 = arith.constant dense<0.000000e+00> : vector<9x64xf32>
    %121 = tpu.matmul %118, %120, %cst_43 {dimension_numbers = #tpu.dot_dimension_numbers<[1], [0], [0], [1], [0, 0, 1, 1], [], []>} : vector<9x64xf32>, vector<64x64xf32>, vector<9x64xf32> -> vector<9x64xf32>
    %c0_44 = arith.constant 0 : index
    %c0_45 = arith.constant 0 : index
    %c0_46 = arith.constant 0 : index
    %122 = vector.load %arg7[%c0_44, %c0_45, %c0_46] : memref<5x1x64xf32, #tpu.memory_space<vmem>>, vector<1x1x64xf32>
    %123 = vector.shape_cast %122 : vector<1x1x64xf32> to vector<1x64xf32>
    %124 = vector.broadcast %123 : vector<1x64xf32> to vector<9x64xf32>
    %125 = arith.addf %121, %124 : vector<9x64xf32>
    %126 = arith.addf %125, %30 : vector<9x64xf32>
    %cst_47 = arith.constant dense<0.000000e+00> : vector<9xf32>
    %127 = vector.multi_reduction <add>, %126, %cst_47 [1] : vector<9x64xf32> to vector<9xf32>
    %128 = vector.shape_cast %127 : vector<9xf32> to vector<9x1xf32>
    %cst_48 = arith.constant 6.400000e+01 : f32
    %129 = vector.broadcast %cst_48 : f32 to vector<9x1xf32>
    %130 = arith.divf %128, %129 : vector<9x1xf32>
    %131 = vector.broadcast %130 : vector<9x1xf32> to vector<9x64xf32>
    %132 = arith.subf %126, %131 : vector<9x64xf32>
    %133 = arith.mulf %132, %132 : vector<9x64xf32>
    %cst_49 = arith.constant dense<0.000000e+00> : vector<9xf32>
    %134 = vector.multi_reduction <add>, %133, %cst_49 [1] : vector<9x64xf32> to vector<9xf32>
    %135 = vector.shape_cast %134 : vector<9xf32> to vector<9x1xf32>
    %cst_50 = arith.constant 6.400000e+01 : f32
    %136 = vector.broadcast %cst_50 : f32 to vector<9x1xf32>
    %137 = arith.divf %135, %136 : vector<9x1xf32>
    %cst_51 = arith.constant 9.99999974E-6 : f32
    %138 = vector.broadcast %cst_51 : f32 to vector<9x1xf32>
    %139 = arith.addf %137, %138 : vector<9x1xf32>
    %140 = math.rsqrt %139 : vector<9x1xf32>
    %141 = vector.broadcast %140 : vector<9x1xf32> to vector<9x64xf32>
    %142 = arith.mulf %132, %141 : vector<9x64xf32>
    %c0_52 = arith.constant 0 : index
    %c0_53 = arith.constant 0 : index
    %c0_54 = arith.constant 0 : index
    %143 = vector.load %arg8[%c0_52, %c0_53, %c0_54] : memref<8x1x64xf32, #tpu.memory_space<vmem>>, vector<1x1x64xf32>
    %144 = vector.shape_cast %143 : vector<1x1x64xf32> to vector<1x64xf32>
    %145 = vector.broadcast %144 : vector<1x64xf32> to vector<9x64xf32>
    %146 = arith.mulf %142, %145 : vector<9x64xf32>
    %c0_55 = arith.constant 0 : index
    %c0_56 = arith.constant 0 : index
    %c0_57 = arith.constant 0 : index
    %147 = vector.load %arg9[%c0_55, %c0_56, %c0_57] : memref<8x1x64xf32, #tpu.memory_space<vmem>>, vector<1x1x64xf32>
    %148 = vector.shape_cast %147 : vector<1x1x64xf32> to vector<1x64xf32>
    %149 = vector.broadcast %148 : vector<1x64xf32> to vector<9x64xf32>
    %150 = arith.addf %146, %149 : vector<9x64xf32>
    %c0_58 = arith.constant 0 : index
    %c0_59 = arith.constant 0 : index
    %c0_60 = arith.constant 0 : index
    %151 = vector.load %arg10[%c0_58, %c0_59, %c0_60] : memref<3x64x256xf32, #tpu.memory_space<vmem>>, vector<1x64x256xf32>
    %152 = vector.shape_cast %151 : vector<1x64x256xf32> to vector<64x256xf32>
    %cst_61 = arith.constant dense<0.000000e+00> : vector<9x256xf32>
    %153 = tpu.matmul %150, %152, %cst_61 {dimension_numbers = #tpu.dot_dimension_numbers<[1], [0], [0], [1], [0, 0, 1, 1], [], []>} : vector<9x64xf32>, vector<64x256xf32>, vector<9x256xf32> -> vector<9x256xf32>
    %c0_62 = arith.constant 0 : index
    %c0_63 = arith.constant 0 : index
    %c0_64 = arith.constant 0 : index
    %154 = vector.load %arg11[%c0_62, %c0_63, %c0_64] : memref<3x1x256xf32, #tpu.memory_space<vmem>>, vector<1x1x256xf32>
    %155 = vector.shape_cast %154 : vector<1x1x256xf32> to vector<1x256xf32>
    %156 = vector.broadcast %155 : vector<1x256xf32> to vector<9x256xf32>
    %157 = arith.addf %153, %156 : vector<9x256xf32>
    %cst_65 = arith.constant 0.000000e+00 : f32
    %158 = vector.broadcast %cst_65 : f32 to vector<9x256xf32>
    %159 = arith.maximumf %157, %158 : vector<9x256xf32>
    %c0_66 = arith.constant 0 : index
    %c0_67 = arith.constant 0 : index
    %c0_68 = arith.constant 0 : index
    %160 = vector.load %arg12[%c0_66, %c0_67, %c0_68] : memref<3x256x64xf32, #tpu.memory_space<vmem>>, vector<1x256x64xf32>
    %161 = vector.shape_cast %160 : vector<1x256x64xf32> to vector<256x64xf32>
    %cst_69 = arith.constant dense<0.000000e+00> : vector<9x64xf32>
    %162 = tpu.matmul %159, %161, %cst_69 {dimension_numbers = #tpu.dot_dimension_numbers<[1], [0], [0], [1], [0, 0, 1, 1], [], []>} : vector<9x256xf32>, vector<256x64xf32>, vector<9x64xf32> -> vector<9x64xf32>
    %c0_70 = arith.constant 0 : index
    %c0_71 = arith.constant 0 : index
    %c0_72 = arith.constant 0 : index
    %163 = vector.load %arg13[%c0_70, %c0_71, %c0_72] : memref<3x1x64xf32, #tpu.memory_space<vmem>>, vector<1x1x64xf32>
    %164 = vector.shape_cast %163 : vector<1x1x64xf32> to vector<1x64xf32>
    %165 = vector.broadcast %164 : vector<1x64xf32> to vector<9x64xf32>
    %166 = arith.addf %162, %165 : vector<9x64xf32>
    %167 = arith.addf %166, %150 : vector<9x64xf32>
    %cst_73 = arith.constant dense<0.000000e+00> : vector<9xf32>
    %168 = vector.multi_reduction <add>, %167, %cst_73 [1] : vector<9x64xf32> to vector<9xf32>
    %169 = vector.shape_cast %168 : vector<9xf32> to vector<9x1xf32>
    %cst_74 = arith.constant 6.400000e+01 : f32
    %170 = vector.broadcast %cst_74 : f32 to vector<9x1xf32>
    %171 = arith.divf %169, %170 : vector<9x1xf32>
    %172 = vector.broadcast %171 : vector<9x1xf32> to vector<9x64xf32>
    %173 = arith.subf %167, %172 : vector<9x64xf32>
    %174 = arith.mulf %173, %173 : vector<9x64xf32>
    %cst_75 = arith.constant dense<0.000000e+00> : vector<9xf32>
    %175 = vector.multi_reduction <add>, %174, %cst_75 [1] : vector<9x64xf32> to vector<9xf32>
    %176 = vector.shape_cast %175 : vector<9xf32> to vector<9x1xf32>
    %cst_76 = arith.constant 6.400000e+01 : f32
    %177 = vector.broadcast %cst_76 : f32 to vector<9x1xf32>
    %178 = arith.divf %176, %177 : vector<9x1xf32>
    %cst_77 = arith.constant 9.99999974E-6 : f32
    %179 = vector.broadcast %cst_77 : f32 to vector<9x1xf32>
    %180 = arith.addf %178, %179 : vector<9x1xf32>
    %181 = math.rsqrt %180 : vector<9x1xf32>
    %182 = vector.broadcast %181 : vector<9x1xf32> to vector<9x64xf32>
    %183 = arith.mulf %173, %182 : vector<9x64xf32>
    %c1 = arith.constant 1 : index
    %c0_78 = arith.constant 0 : index
    %c0_79 = arith.constant 0 : index
    %184 = vector.load %arg8[%c1, %c0_78, %c0_79] : memref<8x1x64xf32, #tpu.memory_space<vmem>>, vector<1x1x64xf32>
    %185 = vector.shape_cast %184 : vector<1x1x64xf32> to vector<1x64xf32>
    %186 = vector.broadcast %185 : vector<1x64xf32> to vector<9x64xf32>
    %187 = arith.mulf %183, %186 : vector<9x64xf32>
    %c1_80 = arith.constant 1 : index
    %c0_81 = arith.constant 0 : index
    %c0_82 = arith.constant 0 : index
    %188 = vector.load %arg9[%c1_80, %c0_81, %c0_82] : memref<8x1x64xf32, #tpu.memory_space<vmem>>, vector<1x1x64xf32>
    %189 = vector.shape_cast %188 : vector<1x1x64xf32> to vector<1x64xf32>
    %190 = vector.broadcast %189 : vector<1x64xf32> to vector<9x64xf32>
    %191 = arith.addf %187, %190 : vector<9x64xf32>
    %c1_83 = arith.constant 1 : index
    %c0_84 = arith.constant 0 : index
    %c0_85 = arith.constant 0 : index
    %192 = vector.load %arg3[%c1_83, %c0_84, %c0_85] : memref<5x64x64xf32, #tpu.memory_space<vmem>>, vector<1x64x64xf32>
    %193 = vector.shape_cast %192 : vector<1x64x64xf32> to vector<64x64xf32>
    %cst_86 = arith.constant dense<0.000000e+00> : vector<7x64xf32>
    %194 = tpu.matmul %32, %193, %cst_86 {dimension_numbers = #tpu.dot_dimension_numbers<[1], [0], [0], [1], [0, 0, 1, 1], [], []>} : vector<7x64xf32>, vector<64x64xf32>, vector<7x64xf32> -> vector<7x64xf32>
    %c1_87 = arith.constant 1 : index
    %c0_88 = arith.constant 0 : index
    %c0_89 = arith.constant 0 : index
    %195 = vector.load %arg4[%c1_87, %c0_88, %c0_89] : memref<5x64x64xf32, #tpu.memory_space<vmem>>, vector<1x64x64xf32>
    %196 = vector.shape_cast %195 : vector<1x64x64xf32> to vector<64x64xf32>
    %cst_90 = arith.constant dense<0.000000e+00> : vector<7x64xf32>
    %197 = tpu.matmul %32, %196, %cst_90 {dimension_numbers = #tpu.dot_dimension_numbers<[1], [0], [0], [1], [0, 0, 1, 1], [], []>} : vector<7x64xf32>, vector<64x64xf32>, vector<7x64xf32> -> vector<7x64xf32>
    %c1_91 = arith.constant 1 : index
    %c0_92 = arith.constant 0 : index
    %c0_93 = arith.constant 0 : index
    %198 = vector.load %arg5[%c1_91, %c0_92, %c0_93] : memref<5x64x64xf32, #tpu.memory_space<vmem>>, vector<1x64x64xf32>
    %199 = vector.shape_cast %198 : vector<1x64x64xf32> to vector<64x64xf32>
    %cst_94 = arith.constant dense<0.000000e+00> : vector<7x64xf32>
    %200 = tpu.matmul %32, %199, %cst_94 {dimension_numbers = #tpu.dot_dimension_numbers<[1], [0], [0], [1], [0, 0, 1, 1], [], []>} : vector<7x64xf32>, vector<64x64xf32>, vector<7x64xf32> -> vector<7x64xf32>
    %cst_95 = arith.constant 0.000000e+00 : f32
    %201 = vector.broadcast %cst_95 : f32 to vector<7x64xf32>
    %202 = vector.broadcast %7 : vector<1x64xf32> to vector<7x64xf32>
    %203 = arith.mulf %197, %202 : vector<7x64xf32>
    %cst_96 = arith.constant dense<0.000000e+00> : vector<7x7xf32>
    %204 = tpu.matmul %194, %203, %cst_96 {dimension_numbers = #tpu.dot_dimension_numbers<[1], [1], [0], [0], [0, 0, 1, 0], [], []>} : vector<7x64xf32>, vector<7x64xf32>, vector<7x7xf32> -> vector<7x7xf32>
    %cst_97 = arith.constant 1.250000e-01 : f32
    %205 = vector.broadcast %cst_97 : f32 to vector<7x7xf32>
    %206 = arith.mulf %204, %205 : vector<7x7xf32>
    %cst_98 = arith.constant dense<0xFF800000> : vector<7xf32>
    %207 = vector.multi_reduction <maximumf>, %206, %cst_98 [1] : vector<7x7xf32> to vector<7xf32>
    %208 = vector.shape_cast %207 : vector<7xf32> to vector<7x1xf32>
    %209 = vector.broadcast %208 : vector<7x1xf32> to vector<7x7xf32>
    %210 = arith.subf %206, %209 : vector<7x7xf32>
    %211 = math.exp %210 : vector<7x7xf32>
    %cst_99 = arith.constant dense<0.000000e+00> : vector<7xf32>
    %212 = vector.multi_reduction <add>, %211, %cst_99 [1] : vector<7x7xf32> to vector<7xf32>
    %213 = vector.shape_cast %212 : vector<7xf32> to vector<7x1xf32>
    %214 = tpu.reciprocal %213 {approx = true} : vector<7x1xf32> -> vector<7x1xf32>
    %215 = vector.broadcast %214 : vector<7x1xf32> to vector<7x7xf32>
    %216 = arith.mulf %211, %215 : vector<7x7xf32>
    %217 = vector.broadcast %7 : vector<1x64xf32> to vector<7x64xf32>
    %218 = arith.mulf %200, %217 : vector<7x64xf32>
    %cst_100 = arith.constant dense<0.000000e+00> : vector<7x64xf32>
    %219 = tpu.matmul %216, %218, %cst_100 {dimension_numbers = #tpu.dot_dimension_numbers<[1], [0], [0], [1], [0, 0, 1, 1], [], []>} : vector<7x7xf32>, vector<7x64xf32>, vector<7x64xf32> -> vector<7x64xf32>
    %220 = arith.addf %201, %219 : vector<7x64xf32>
    %221 = vector.broadcast %14 : vector<1x64xf32> to vector<7x64xf32>
    %222 = arith.mulf %197, %221 : vector<7x64xf32>
    %cst_101 = arith.constant dense<0.000000e+00> : vector<7x7xf32>
    %223 = tpu.matmul %194, %222, %cst_101 {dimension_numbers = #tpu.dot_dimension_numbers<[1], [1], [0], [0], [0, 0, 1, 0], [], []>} : vector<7x64xf32>, vector<7x64xf32>, vector<7x7xf32> -> vector<7x7xf32>
    %cst_102 = arith.constant 1.250000e-01 : f32
    %224 = vector.broadcast %cst_102 : f32 to vector<7x7xf32>
    %225 = arith.mulf %223, %224 : vector<7x7xf32>
    %cst_103 = arith.constant dense<0xFF800000> : vector<7xf32>
    %226 = vector.multi_reduction <maximumf>, %225, %cst_103 [1] : vector<7x7xf32> to vector<7xf32>
    %227 = vector.shape_cast %226 : vector<7xf32> to vector<7x1xf32>
    %228 = vector.broadcast %227 : vector<7x1xf32> to vector<7x7xf32>
    %229 = arith.subf %225, %228 : vector<7x7xf32>
    %230 = math.exp %229 : vector<7x7xf32>
    %cst_104 = arith.constant dense<0.000000e+00> : vector<7xf32>
    %231 = vector.multi_reduction <add>, %230, %cst_104 [1] : vector<7x7xf32> to vector<7xf32>
    %232 = vector.shape_cast %231 : vector<7xf32> to vector<7x1xf32>
    %233 = tpu.reciprocal %232 {approx = true} : vector<7x1xf32> -> vector<7x1xf32>
    %234 = vector.broadcast %233 : vector<7x1xf32> to vector<7x7xf32>
    %235 = arith.mulf %230, %234 : vector<7x7xf32>
    %236 = vector.broadcast %14 : vector<1x64xf32> to vector<7x64xf32>
    %237 = arith.mulf %200, %236 : vector<7x64xf32>
    %cst_105 = arith.constant dense<0.000000e+00> : vector<7x64xf32>
    %238 = tpu.matmul %235, %237, %cst_105 {dimension_numbers = #tpu.dot_dimension_numbers<[1], [0], [0], [1], [0, 0, 1, 1], [], []>} : vector<7x7xf32>, vector<7x64xf32>, vector<7x64xf32> -> vector<7x64xf32>
    %239 = arith.addf %220, %238 : vector<7x64xf32>
    %240 = vector.broadcast %21 : vector<1x64xf32> to vector<7x64xf32>
    %241 = arith.mulf %197, %240 : vector<7x64xf32>
    %cst_106 = arith.constant dense<0.000000e+00> : vector<7x7xf32>
    %242 = tpu.matmul %194, %241, %cst_106 {dimension_numbers = #tpu.dot_dimension_numbers<[1], [1], [0], [0], [0, 0, 1, 0], [], []>} : vector<7x64xf32>, vector<7x64xf32>, vector<7x7xf32> -> vector<7x7xf32>
    %cst_107 = arith.constant 1.250000e-01 : f32
    %243 = vector.broadcast %cst_107 : f32 to vector<7x7xf32>
    %244 = arith.mulf %242, %243 : vector<7x7xf32>
    %cst_108 = arith.constant dense<0xFF800000> : vector<7xf32>
    %245 = vector.multi_reduction <maximumf>, %244, %cst_108 [1] : vector<7x7xf32> to vector<7xf32>
    %246 = vector.shape_cast %245 : vector<7xf32> to vector<7x1xf32>
    %247 = vector.broadcast %246 : vector<7x1xf32> to vector<7x7xf32>
    %248 = arith.subf %244, %247 : vector<7x7xf32>
    %249 = math.exp %248 : vector<7x7xf32>
    %cst_109 = arith.constant dense<0.000000e+00> : vector<7xf32>
    %250 = vector.multi_reduction <add>, %249, %cst_109 [1] : vector<7x7xf32> to vector<7xf32>
    %251 = vector.shape_cast %250 : vector<7xf32> to vector<7x1xf32>
    %252 = tpu.reciprocal %251 {approx = true} : vector<7x1xf32> -> vector<7x1xf32>
    %253 = vector.broadcast %252 : vector<7x1xf32> to vector<7x7xf32>
    %254 = arith.mulf %249, %253 : vector<7x7xf32>
    %255 = vector.broadcast %21 : vector<1x64xf32> to vector<7x64xf32>
    %256 = arith.mulf %200, %255 : vector<7x64xf32>
    %cst_110 = arith.constant dense<0.000000e+00> : vector<7x64xf32>
    %257 = tpu.matmul %254, %256, %cst_110 {dimension_numbers = #tpu.dot_dimension_numbers<[1], [0], [0], [1], [0, 0, 1, 1], [], []>} : vector<7x7xf32>, vector<7x64xf32>, vector<7x64xf32> -> vector<7x64xf32>
    %258 = arith.addf %239, %257 : vector<7x64xf32>
    %259 = vector.broadcast %28 : vector<1x64xf32> to vector<7x64xf32>
    %260 = arith.mulf %197, %259 : vector<7x64xf32>
    %cst_111 = arith.constant dense<0.000000e+00> : vector<7x7xf32>
    %261 = tpu.matmul %194, %260, %cst_111 {dimension_numbers = #tpu.dot_dimension_numbers<[1], [1], [0], [0], [0, 0, 1, 0], [], []>} : vector<7x64xf32>, vector<7x64xf32>, vector<7x7xf32> -> vector<7x7xf32>
    %cst_112 = arith.constant 1.250000e-01 : f32
    %262 = vector.broadcast %cst_112 : f32 to vector<7x7xf32>
    %263 = arith.mulf %261, %262 : vector<7x7xf32>
    %cst_113 = arith.constant dense<0xFF800000> : vector<7xf32>
    %264 = vector.multi_reduction <maximumf>, %263, %cst_113 [1] : vector<7x7xf32> to vector<7xf32>
    %265 = vector.shape_cast %264 : vector<7xf32> to vector<7x1xf32>
    %266 = vector.broadcast %265 : vector<7x1xf32> to vector<7x7xf32>
    %267 = arith.subf %263, %266 : vector<7x7xf32>
    %268 = math.exp %267 : vector<7x7xf32>
    %cst_114 = arith.constant dense<0.000000e+00> : vector<7xf32>
    %269 = vector.multi_reduction <add>, %268, %cst_114 [1] : vector<7x7xf32> to vector<7xf32>
    %270 = vector.shape_cast %269 : vector<7xf32> to vector<7x1xf32>
    %271 = tpu.reciprocal %270 {approx = true} : vector<7x1xf32> -> vector<7x1xf32>
    %272 = vector.broadcast %271 : vector<7x1xf32> to vector<7x7xf32>
    %273 = arith.mulf %268, %272 : vector<7x7xf32>
    %274 = vector.broadcast %28 : vector<1x64xf32> to vector<7x64xf32>
    %275 = arith.mulf %200, %274 : vector<7x64xf32>
    %cst_115 = arith.constant dense<0.000000e+00> : vector<7x64xf32>
    %276 = tpu.matmul %273, %275, %cst_115 {dimension_numbers = #tpu.dot_dimension_numbers<[1], [0], [0], [1], [0, 0, 1, 1], [], []>} : vector<7x7xf32>, vector<7x64xf32>, vector<7x64xf32> -> vector<7x64xf32>
    %277 = arith.addf %258, %276 : vector<7x64xf32>
    %c1_116 = arith.constant 1 : index
    %c0_117 = arith.constant 0 : index
    %c0_118 = arith.constant 0 : index
    %278 = vector.load %arg6[%c1_116, %c0_117, %c0_118] : memref<5x64x64xf32, #tpu.memory_space<vmem>>, vector<1x64x64xf32>
    %279 = vector.shape_cast %278 : vector<1x64x64xf32> to vector<64x64xf32>
    %cst_119 = arith.constant dense<0.000000e+00> : vector<7x64xf32>
    %280 = tpu.matmul %277, %279, %cst_119 {dimension_numbers = #tpu.dot_dimension_numbers<[1], [0], [0], [1], [0, 0, 1, 1], [], []>} : vector<7x64xf32>, vector<64x64xf32>, vector<7x64xf32> -> vector<7x64xf32>
    %c1_120 = arith.constant 1 : index
    %c0_121 = arith.constant 0 : index
    %c0_122 = arith.constant 0 : index
    %281 = vector.load %arg7[%c1_120, %c0_121, %c0_122] : memref<5x1x64xf32, #tpu.memory_space<vmem>>, vector<1x1x64xf32>
    %282 = vector.shape_cast %281 : vector<1x1x64xf32> to vector<1x64xf32>
    %283 = vector.broadcast %282 : vector<1x64xf32> to vector<7x64xf32>
    %284 = arith.addf %280, %283 : vector<7x64xf32>
    %285 = arith.addf %284, %32 : vector<7x64xf32>
    %cst_123 = arith.constant dense<0.000000e+00> : vector<7xf32>
    %286 = vector.multi_reduction <add>, %285, %cst_123 [1] : vector<7x64xf32> to vector<7xf32>
    %287 = vector.shape_cast %286 : vector<7xf32> to vector<7x1xf32>
    %cst_124 = arith.constant 6.400000e+01 : f32
    %288 = vector.broadcast %cst_124 : f32 to vector<7x1xf32>
    %289 = arith.divf %287, %288 : vector<7x1xf32>
    %290 = vector.broadcast %289 : vector<7x1xf32> to vector<7x64xf32>
    %291 = arith.subf %285, %290 : vector<7x64xf32>
    %292 = arith.mulf %291, %291 : vector<7x64xf32>
    %cst_125 = arith.constant dense<0.000000e+00> : vector<7xf32>
    %293 = vector.multi_reduction <add>, %292, %cst_125 [1] : vector<7x64xf32> to vector<7xf32>
    %294 = vector.shape_cast %293 : vector<7xf32> to vector<7x1xf32>
    %cst_126 = arith.constant 6.400000e+01 : f32
    %295 = vector.broadcast %cst_126 : f32 to vector<7x1xf32>
    %296 = arith.divf %294, %295 : vector<7x1xf32>
    %cst_127 = arith.constant 9.99999974E-6 : f32
    %297 = vector.broadcast %cst_127 : f32 to vector<7x1xf32>
    %298 = arith.addf %296, %297 : vector<7x1xf32>
    %299 = math.rsqrt %298 : vector<7x1xf32>
    %300 = vector.broadcast %299 : vector<7x1xf32> to vector<7x64xf32>
    %301 = arith.mulf %291, %300 : vector<7x64xf32>
    %c2 = arith.constant 2 : index
    %c0_128 = arith.constant 0 : index
    %c0_129 = arith.constant 0 : index
    %302 = vector.load %arg8[%c2, %c0_128, %c0_129] : memref<8x1x64xf32, #tpu.memory_space<vmem>>, vector<1x1x64xf32>
    %303 = vector.shape_cast %302 : vector<1x1x64xf32> to vector<1x64xf32>
    %304 = vector.broadcast %303 : vector<1x64xf32> to vector<7x64xf32>
    %305 = arith.mulf %301, %304 : vector<7x64xf32>
    %c2_130 = arith.constant 2 : index
    %c0_131 = arith.constant 0 : index
    %c0_132 = arith.constant 0 : index
    %306 = vector.load %arg9[%c2_130, %c0_131, %c0_132] : memref<8x1x64xf32, #tpu.memory_space<vmem>>, vector<1x1x64xf32>
    %307 = vector.shape_cast %306 : vector<1x1x64xf32> to vector<1x64xf32>
    %308 = vector.broadcast %307 : vector<1x64xf32> to vector<7x64xf32>
    %309 = arith.addf %305, %308 : vector<7x64xf32>
    %c2_133 = arith.constant 2 : index
    %c0_134 = arith.constant 0 : index
    %c0_135 = arith.constant 0 : index
    %310 = vector.load %arg3[%c2_133, %c0_134, %c0_135] : memref<5x64x64xf32, #tpu.memory_space<vmem>>, vector<1x64x64xf32>
    %311 = vector.shape_cast %310 : vector<1x64x64xf32> to vector<64x64xf32>
    %cst_136 = arith.constant dense<0.000000e+00> : vector<7x64xf32>
    %312 = tpu.matmul %309, %311, %cst_136 {dimension_numbers = #tpu.dot_dimension_numbers<[1], [0], [0], [1], [0, 0, 1, 1], [], []>} : vector<7x64xf32>, vector<64x64xf32>, vector<7x64xf32> -> vector<7x64xf32>
    %c2_137 = arith.constant 2 : index
    %c0_138 = arith.constant 0 : index
    %c0_139 = arith.constant 0 : index
    %313 = vector.load %arg4[%c2_137, %c0_138, %c0_139] : memref<5x64x64xf32, #tpu.memory_space<vmem>>, vector<1x64x64xf32>
    %314 = vector.shape_cast %313 : vector<1x64x64xf32> to vector<64x64xf32>
    %cst_140 = arith.constant dense<0.000000e+00> : vector<9x64xf32>
    %315 = tpu.matmul %191, %314, %cst_140 {dimension_numbers = #tpu.dot_dimension_numbers<[1], [0], [0], [1], [0, 0, 1, 1], [], []>} : vector<9x64xf32>, vector<64x64xf32>, vector<9x64xf32> -> vector<9x64xf32>
    %c2_141 = arith.constant 2 : index
    %c0_142 = arith.constant 0 : index
    %c0_143 = arith.constant 0 : index
    %316 = vector.load %arg5[%c2_141, %c0_142, %c0_143] : memref<5x64x64xf32, #tpu.memory_space<vmem>>, vector<1x64x64xf32>
    %317 = vector.shape_cast %316 : vector<1x64x64xf32> to vector<64x64xf32>
    %cst_144 = arith.constant dense<0.000000e+00> : vector<9x64xf32>
    %318 = tpu.matmul %191, %317, %cst_144 {dimension_numbers = #tpu.dot_dimension_numbers<[1], [0], [0], [1], [0, 0, 1, 1], [], []>} : vector<9x64xf32>, vector<64x64xf32>, vector<9x64xf32> -> vector<9x64xf32>
    %cst_145 = arith.constant 0.000000e+00 : f32
    %319 = vector.broadcast %cst_145 : f32 to vector<7x64xf32>
    %320 = vector.broadcast %7 : vector<1x64xf32> to vector<9x64xf32>
    %321 = arith.mulf %315, %320 : vector<9x64xf32>
    %cst_146 = arith.constant dense<0.000000e+00> : vector<7x9xf32>
    %322 = tpu.matmul %312, %321, %cst_146 {dimension_numbers = #tpu.dot_dimension_numbers<[1], [1], [0], [0], [0, 0, 1, 0], [], []>} : vector<7x64xf32>, vector<9x64xf32>, vector<7x9xf32> -> vector<7x9xf32>
    %cst_147 = arith.constant 1.250000e-01 : f32
    %323 = vector.broadcast %cst_147 : f32 to vector<7x9xf32>
    %324 = arith.mulf %322, %323 : vector<7x9xf32>
    %cst_148 = arith.constant dense<0xFF800000> : vector<7xf32>
    %325 = vector.multi_reduction <maximumf>, %324, %cst_148 [1] : vector<7x9xf32> to vector<7xf32>
    %326 = vector.shape_cast %325 : vector<7xf32> to vector<7x1xf32>
    %327 = vector.broadcast %326 : vector<7x1xf32> to vector<7x9xf32>
    %328 = arith.subf %324, %327 : vector<7x9xf32>
    %329 = math.exp %328 : vector<7x9xf32>
    %cst_149 = arith.constant dense<0.000000e+00> : vector<7xf32>
    %330 = vector.multi_reduction <add>, %329, %cst_149 [1] : vector<7x9xf32> to vector<7xf32>
    %331 = vector.shape_cast %330 : vector<7xf32> to vector<7x1xf32>
    %332 = tpu.reciprocal %331 {approx = true} : vector<7x1xf32> -> vector<7x1xf32>
    %333 = vector.broadcast %332 : vector<7x1xf32> to vector<7x9xf32>
    %334 = arith.mulf %329, %333 : vector<7x9xf32>
    %335 = vector.broadcast %7 : vector<1x64xf32> to vector<9x64xf32>
    %336 = arith.mulf %318, %335 : vector<9x64xf32>
    %cst_150 = arith.constant dense<0.000000e+00> : vector<7x64xf32>
    %337 = tpu.matmul %334, %336, %cst_150 {dimension_numbers = #tpu.dot_dimension_numbers<[1], [0], [0], [1], [0, 0, 1, 1], [], []>} : vector<7x9xf32>, vector<9x64xf32>, vector<7x64xf32> -> vector<7x64xf32>
    %338 = arith.addf %319, %337 : vector<7x64xf32>
    %339 = vector.broadcast %14 : vector<1x64xf32> to vector<9x64xf32>
    %340 = arith.mulf %315, %339 : vector<9x64xf32>
    %cst_151 = arith.constant dense<0.000000e+00> : vector<7x9xf32>
    %341 = tpu.matmul %312, %340, %cst_151 {dimension_numbers = #tpu.dot_dimension_numbers<[1], [1], [0], [0], [0, 0, 1, 0], [], []>} : vector<7x64xf32>, vector<9x64xf32>, vector<7x9xf32> -> vector<7x9xf32>
    %cst_152 = arith.constant 1.250000e-01 : f32
    %342 = vector.broadcast %cst_152 : f32 to vector<7x9xf32>
    %343 = arith.mulf %341, %342 : vector<7x9xf32>
    %cst_153 = arith.constant dense<0xFF800000> : vector<7xf32>
    %344 = vector.multi_reduction <maximumf>, %343, %cst_153 [1] : vector<7x9xf32> to vector<7xf32>
    %345 = vector.shape_cast %344 : vector<7xf32> to vector<7x1xf32>
    %346 = vector.broadcast %345 : vector<7x1xf32> to vector<7x9xf32>
    %347 = arith.subf %343, %346 : vector<7x9xf32>
    %348 = math.exp %347 : vector<7x9xf32>
    %cst_154 = arith.constant dense<0.000000e+00> : vector<7xf32>
    %349 = vector.multi_reduction <add>, %348, %cst_154 [1] : vector<7x9xf32> to vector<7xf32>
    %350 = vector.shape_cast %349 : vector<7xf32> to vector<7x1xf32>
    %351 = tpu.reciprocal %350 {approx = true} : vector<7x1xf32> -> vector<7x1xf32>
    %352 = vector.broadcast %351 : vector<7x1xf32> to vector<7x9xf32>
    %353 = arith.mulf %348, %352 : vector<7x9xf32>
    %354 = vector.broadcast %14 : vector<1x64xf32> to vector<9x64xf32>
    %355 = arith.mulf %318, %354 : vector<9x64xf32>
    %cst_155 = arith.constant dense<0.000000e+00> : vector<7x64xf32>
    %356 = tpu.matmul %353, %355, %cst_155 {dimension_numbers = #tpu.dot_dimension_numbers<[1], [0], [0], [1], [0, 0, 1, 1], [], []>} : vector<7x9xf32>, vector<9x64xf32>, vector<7x64xf32> -> vector<7x64xf32>
    %357 = arith.addf %338, %356 : vector<7x64xf32>
    %358 = vector.broadcast %21 : vector<1x64xf32> to vector<9x64xf32>
    %359 = arith.mulf %315, %358 : vector<9x64xf32>
    %cst_156 = arith.constant dense<0.000000e+00> : vector<7x9xf32>
    %360 = tpu.matmul %312, %359, %cst_156 {dimension_numbers = #tpu.dot_dimension_numbers<[1], [1], [0], [0], [0, 0, 1, 0], [], []>} : vector<7x64xf32>, vector<9x64xf32>, vector<7x9xf32> -> vector<7x9xf32>
    %cst_157 = arith.constant 1.250000e-01 : f32
    %361 = vector.broadcast %cst_157 : f32 to vector<7x9xf32>
    %362 = arith.mulf %360, %361 : vector<7x9xf32>
    %cst_158 = arith.constant dense<0xFF800000> : vector<7xf32>
    %363 = vector.multi_reduction <maximumf>, %362, %cst_158 [1] : vector<7x9xf32> to vector<7xf32>
    %364 = vector.shape_cast %363 : vector<7xf32> to vector<7x1xf32>
    %365 = vector.broadcast %364 : vector<7x1xf32> to vector<7x9xf32>
    %366 = arith.subf %362, %365 : vector<7x9xf32>
    %367 = math.exp %366 : vector<7x9xf32>
    %cst_159 = arith.constant dense<0.000000e+00> : vector<7xf32>
    %368 = vector.multi_reduction <add>, %367, %cst_159 [1] : vector<7x9xf32> to vector<7xf32>
    %369 = vector.shape_cast %368 : vector<7xf32> to vector<7x1xf32>
    %370 = tpu.reciprocal %369 {approx = true} : vector<7x1xf32> -> vector<7x1xf32>
    %371 = vector.broadcast %370 : vector<7x1xf32> to vector<7x9xf32>
    %372 = arith.mulf %367, %371 : vector<7x9xf32>
    %373 = vector.broadcast %21 : vector<1x64xf32> to vector<9x64xf32>
    %374 = arith.mulf %318, %373 : vector<9x64xf32>
    %cst_160 = arith.constant dense<0.000000e+00> : vector<7x64xf32>
    %375 = tpu.matmul %372, %374, %cst_160 {dimension_numbers = #tpu.dot_dimension_numbers<[1], [0], [0], [1], [0, 0, 1, 1], [], []>} : vector<7x9xf32>, vector<9x64xf32>, vector<7x64xf32> -> vector<7x64xf32>
    %376 = arith.addf %357, %375 : vector<7x64xf32>
    %377 = vector.broadcast %28 : vector<1x64xf32> to vector<9x64xf32>
    %378 = arith.mulf %315, %377 : vector<9x64xf32>
    %cst_161 = arith.constant dense<0.000000e+00> : vector<7x9xf32>
    %379 = tpu.matmul %312, %378, %cst_161 {dimension_numbers = #tpu.dot_dimension_numbers<[1], [1], [0], [0], [0, 0, 1, 0], [], []>} : vector<7x64xf32>, vector<9x64xf32>, vector<7x9xf32> -> vector<7x9xf32>
    %cst_162 = arith.constant 1.250000e-01 : f32
    %380 = vector.broadcast %cst_162 : f32 to vector<7x9xf32>
    %381 = arith.mulf %379, %380 : vector<7x9xf32>
    %cst_163 = arith.constant dense<0xFF800000> : vector<7xf32>
    %382 = vector.multi_reduction <maximumf>, %381, %cst_163 [1] : vector<7x9xf32> to vector<7xf32>
    %383 = vector.shape_cast %382 : vector<7xf32> to vector<7x1xf32>
    %384 = vector.broadcast %383 : vector<7x1xf32> to vector<7x9xf32>
    %385 = arith.subf %381, %384 : vector<7x9xf32>
    %386 = math.exp %385 : vector<7x9xf32>
    %cst_164 = arith.constant dense<0.000000e+00> : vector<7xf32>
    %387 = vector.multi_reduction <add>, %386, %cst_164 [1] : vector<7x9xf32> to vector<7xf32>
    %388 = vector.shape_cast %387 : vector<7xf32> to vector<7x1xf32>
    %389 = tpu.reciprocal %388 {approx = true} : vector<7x1xf32> -> vector<7x1xf32>
    %390 = vector.broadcast %389 : vector<7x1xf32> to vector<7x9xf32>
    %391 = arith.mulf %386, %390 : vector<7x9xf32>
    %392 = vector.broadcast %28 : vector<1x64xf32> to vector<9x64xf32>
    %393 = arith.mulf %318, %392 : vector<9x64xf32>
    %cst_165 = arith.constant dense<0.000000e+00> : vector<7x64xf32>
    %394 = tpu.matmul %391, %393, %cst_165 {dimension_numbers = #tpu.dot_dimension_numbers<[1], [0], [0], [1], [0, 0, 1, 1], [], []>} : vector<7x9xf32>, vector<9x64xf32>, vector<7x64xf32> -> vector<7x64xf32>
    %395 = arith.addf %376, %394 : vector<7x64xf32>
    %c2_166 = arith.constant 2 : index
    %c0_167 = arith.constant 0 : index
    %c0_168 = arith.constant 0 : index
    %396 = vector.load %arg6[%c2_166, %c0_167, %c0_168] : memref<5x64x64xf32, #tpu.memory_space<vmem>>, vector<1x64x64xf32>
    %397 = vector.shape_cast %396 : vector<1x64x64xf32> to vector<64x64xf32>
    %cst_169 = arith.constant dense<0.000000e+00> : vector<7x64xf32>
    %398 = tpu.matmul %395, %397, %cst_169 {dimension_numbers = #tpu.dot_dimension_numbers<[1], [0], [0], [1], [0, 0, 1, 1], [], []>} : vector<7x64xf32>, vector<64x64xf32>, vector<7x64xf32> -> vector<7x64xf32>
    %c2_170 = arith.constant 2 : index
    %c0_171 = arith.constant 0 : index
    %c0_172 = arith.constant 0 : index
    %399 = vector.load %arg7[%c2_170, %c0_171, %c0_172] : memref<5x1x64xf32, #tpu.memory_space<vmem>>, vector<1x1x64xf32>
    %400 = vector.shape_cast %399 : vector<1x1x64xf32> to vector<1x64xf32>
    %401 = vector.broadcast %400 : vector<1x64xf32> to vector<7x64xf32>
    %402 = arith.addf %398, %401 : vector<7x64xf32>
    %403 = arith.addf %402, %309 : vector<7x64xf32>
    %cst_173 = arith.constant dense<0.000000e+00> : vector<7xf32>
    %404 = vector.multi_reduction <add>, %403, %cst_173 [1] : vector<7x64xf32> to vector<7xf32>
    %405 = vector.shape_cast %404 : vector<7xf32> to vector<7x1xf32>
    %cst_174 = arith.constant 6.400000e+01 : f32
    %406 = vector.broadcast %cst_174 : f32 to vector<7x1xf32>
    %407 = arith.divf %405, %406 : vector<7x1xf32>
    %408 = vector.broadcast %407 : vector<7x1xf32> to vector<7x64xf32>
    %409 = arith.subf %403, %408 : vector<7x64xf32>
    %410 = arith.mulf %409, %409 : vector<7x64xf32>
    %cst_175 = arith.constant dense<0.000000e+00> : vector<7xf32>
    %411 = vector.multi_reduction <add>, %410, %cst_175 [1] : vector<7x64xf32> to vector<7xf32>
    %412 = vector.shape_cast %411 : vector<7xf32> to vector<7x1xf32>
    %cst_176 = arith.constant 6.400000e+01 : f32
    %413 = vector.broadcast %cst_176 : f32 to vector<7x1xf32>
    %414 = arith.divf %412, %413 : vector<7x1xf32>
    %cst_177 = arith.constant 9.99999974E-6 : f32
    %415 = vector.broadcast %cst_177 : f32 to vector<7x1xf32>
    %416 = arith.addf %414, %415 : vector<7x1xf32>
    %417 = math.rsqrt %416 : vector<7x1xf32>
    %418 = vector.broadcast %417 : vector<7x1xf32> to vector<7x64xf32>
    %419 = arith.mulf %409, %418 : vector<7x64xf32>
    %c3 = arith.constant 3 : index
    %c0_178 = arith.constant 0 : index
    %c0_179 = arith.constant 0 : index
    %420 = vector.load %arg8[%c3, %c0_178, %c0_179] : memref<8x1x64xf32, #tpu.memory_space<vmem>>, vector<1x1x64xf32>
    %421 = vector.shape_cast %420 : vector<1x1x64xf32> to vector<1x64xf32>
    %422 = vector.broadcast %421 : vector<1x64xf32> to vector<7x64xf32>
    %423 = arith.mulf %419, %422 : vector<7x64xf32>
    %c3_180 = arith.constant 3 : index
    %c0_181 = arith.constant 0 : index
    %c0_182 = arith.constant 0 : index
    %424 = vector.load %arg9[%c3_180, %c0_181, %c0_182] : memref<8x1x64xf32, #tpu.memory_space<vmem>>, vector<1x1x64xf32>
    %425 = vector.shape_cast %424 : vector<1x1x64xf32> to vector<1x64xf32>
    %426 = vector.broadcast %425 : vector<1x64xf32> to vector<7x64xf32>
    %427 = arith.addf %423, %426 : vector<7x64xf32>
    %c1_183 = arith.constant 1 : index
    %c0_184 = arith.constant 0 : index
    %c0_185 = arith.constant 0 : index
    %428 = vector.load %arg10[%c1_183, %c0_184, %c0_185] : memref<3x64x256xf32, #tpu.memory_space<vmem>>, vector<1x64x256xf32>
    %429 = vector.shape_cast %428 : vector<1x64x256xf32> to vector<64x256xf32>
    %cst_186 = arith.constant dense<0.000000e+00> : vector<7x256xf32>
    %430 = tpu.matmul %427, %429, %cst_186 {dimension_numbers = #tpu.dot_dimension_numbers<[1], [0], [0], [1], [0, 0, 1, 1], [], []>} : vector<7x64xf32>, vector<64x256xf32>, vector<7x256xf32> -> vector<7x256xf32>
    %c1_187 = arith.constant 1 : index
    %c0_188 = arith.constant 0 : index
    %c0_189 = arith.constant 0 : index
    %431 = vector.load %arg11[%c1_187, %c0_188, %c0_189] : memref<3x1x256xf32, #tpu.memory_space<vmem>>, vector<1x1x256xf32>
    %432 = vector.shape_cast %431 : vector<1x1x256xf32> to vector<1x256xf32>
    %433 = vector.broadcast %432 : vector<1x256xf32> to vector<7x256xf32>
    %434 = arith.addf %430, %433 : vector<7x256xf32>
    %cst_190 = arith.constant 0.000000e+00 : f32
    %435 = vector.broadcast %cst_190 : f32 to vector<7x256xf32>
    %436 = arith.maximumf %434, %435 : vector<7x256xf32>
    %c1_191 = arith.constant 1 : index
    %c0_192 = arith.constant 0 : index
    %c0_193 = arith.constant 0 : index
    %437 = vector.load %arg12[%c1_191, %c0_192, %c0_193] : memref<3x256x64xf32, #tpu.memory_space<vmem>>, vector<1x256x64xf32>
    %438 = vector.shape_cast %437 : vector<1x256x64xf32> to vector<256x64xf32>
    %cst_194 = arith.constant dense<0.000000e+00> : vector<7x64xf32>
    %439 = tpu.matmul %436, %438, %cst_194 {dimension_numbers = #tpu.dot_dimension_numbers<[1], [0], [0], [1], [0, 0, 1, 1], [], []>} : vector<7x256xf32>, vector<256x64xf32>, vector<7x64xf32> -> vector<7x64xf32>
    %c1_195 = arith.constant 1 : index
    %c0_196 = arith.constant 0 : index
    %c0_197 = arith.constant 0 : index
    %440 = vector.load %arg13[%c1_195, %c0_196, %c0_197] : memref<3x1x64xf32, #tpu.memory_space<vmem>>, vector<1x1x64xf32>
    %441 = vector.shape_cast %440 : vector<1x1x64xf32> to vector<1x64xf32>
    %442 = vector.broadcast %441 : vector<1x64xf32> to vector<7x64xf32>
    %443 = arith.addf %439, %442 : vector<7x64xf32>
    %444 = arith.addf %443, %427 : vector<7x64xf32>
    %cst_198 = arith.constant dense<0.000000e+00> : vector<7xf32>
    %445 = vector.multi_reduction <add>, %444, %cst_198 [1] : vector<7x64xf32> to vector<7xf32>
    %446 = vector.shape_cast %445 : vector<7xf32> to vector<7x1xf32>
    %cst_199 = arith.constant 6.400000e+01 : f32
    %447 = vector.broadcast %cst_199 : f32 to vector<7x1xf32>
    %448 = arith.divf %446, %447 : vector<7x1xf32>
    %449 = vector.broadcast %448 : vector<7x1xf32> to vector<7x64xf32>
    %450 = arith.subf %444, %449 : vector<7x64xf32>
    %451 = arith.mulf %450, %450 : vector<7x64xf32>
    %cst_200 = arith.constant dense<0.000000e+00> : vector<7xf32>
    %452 = vector.multi_reduction <add>, %451, %cst_200 [1] : vector<7x64xf32> to vector<7xf32>
    %453 = vector.shape_cast %452 : vector<7xf32> to vector<7x1xf32>
    %cst_201 = arith.constant 6.400000e+01 : f32
    %454 = vector.broadcast %cst_201 : f32 to vector<7x1xf32>
    %455 = arith.divf %453, %454 : vector<7x1xf32>
    %cst_202 = arith.constant 9.99999974E-6 : f32
    %456 = vector.broadcast %cst_202 : f32 to vector<7x1xf32>
    %457 = arith.addf %455, %456 : vector<7x1xf32>
    %458 = math.rsqrt %457 : vector<7x1xf32>
    %459 = vector.broadcast %458 : vector<7x1xf32> to vector<7x64xf32>
    %460 = arith.mulf %450, %459 : vector<7x64xf32>
    %c4 = arith.constant 4 : index
    %c0_203 = arith.constant 0 : index
    %c0_204 = arith.constant 0 : index
    %461 = vector.load %arg8[%c4, %c0_203, %c0_204] : memref<8x1x64xf32, #tpu.memory_space<vmem>>, vector<1x1x64xf32>
    %462 = vector.shape_cast %461 : vector<1x1x64xf32> to vector<1x64xf32>
    %463 = vector.broadcast %462 : vector<1x64xf32> to vector<7x64xf32>
    %464 = arith.mulf %460, %463 : vector<7x64xf32>
    %c4_205 = arith.constant 4 : index
    %c0_206 = arith.constant 0 : index
    %c0_207 = arith.constant 0 : index
    %465 = vector.load %arg9[%c4_205, %c0_206, %c0_207] : memref<8x1x64xf32, #tpu.memory_space<vmem>>, vector<1x1x64xf32>
    %466 = vector.shape_cast %465 : vector<1x1x64xf32> to vector<1x64xf32>
    %467 = vector.broadcast %466 : vector<1x64xf32> to vector<7x64xf32>
    %468 = arith.addf %464, %467 : vector<7x64xf32>
    %c3_208 = arith.constant 3 : index
    %c0_209 = arith.constant 0 : index
    %c0_210 = arith.constant 0 : index
    %469 = vector.load %arg3[%c3_208, %c0_209, %c0_210] : memref<5x64x64xf32, #tpu.memory_space<vmem>>, vector<1x64x64xf32>
    %470 = vector.shape_cast %469 : vector<1x64x64xf32> to vector<64x64xf32>
    %cst_211 = arith.constant dense<0.000000e+00> : vector<7x64xf32>
    %471 = tpu.matmul %468, %470, %cst_211 {dimension_numbers = #tpu.dot_dimension_numbers<[1], [0], [0], [1], [0, 0, 1, 1], [], []>} : vector<7x64xf32>, vector<64x64xf32>, vector<7x64xf32> -> vector<7x64xf32>
    %c3_212 = arith.constant 3 : index
    %c0_213 = arith.constant 0 : index
    %c0_214 = arith.constant 0 : index
    %472 = vector.load %arg4[%c3_212, %c0_213, %c0_214] : memref<5x64x64xf32, #tpu.memory_space<vmem>>, vector<1x64x64xf32>
    %473 = vector.shape_cast %472 : vector<1x64x64xf32> to vector<64x64xf32>
    %cst_215 = arith.constant dense<0.000000e+00> : vector<7x64xf32>
    %474 = tpu.matmul %468, %473, %cst_215 {dimension_numbers = #tpu.dot_dimension_numbers<[1], [0], [0], [1], [0, 0, 1, 1], [], []>} : vector<7x64xf32>, vector<64x64xf32>, vector<7x64xf32> -> vector<7x64xf32>
    %c3_216 = arith.constant 3 : index
    %c0_217 = arith.constant 0 : index
    %c0_218 = arith.constant 0 : index
    %475 = vector.load %arg5[%c3_216, %c0_217, %c0_218] : memref<5x64x64xf32, #tpu.memory_space<vmem>>, vector<1x64x64xf32>
    %476 = vector.shape_cast %475 : vector<1x64x64xf32> to vector<64x64xf32>
    %cst_219 = arith.constant dense<0.000000e+00> : vector<7x64xf32>
    %477 = tpu.matmul %468, %476, %cst_219 {dimension_numbers = #tpu.dot_dimension_numbers<[1], [0], [0], [1], [0, 0, 1, 1], [], []>} : vector<7x64xf32>, vector<64x64xf32>, vector<7x64xf32> -> vector<7x64xf32>
    %cst_220 = arith.constant 0.000000e+00 : f32
    %478 = vector.broadcast %cst_220 : f32 to vector<7x64xf32>
    %479 = vector.broadcast %7 : vector<1x64xf32> to vector<7x64xf32>
    %480 = arith.mulf %474, %479 : vector<7x64xf32>
    %cst_221 = arith.constant dense<0.000000e+00> : vector<7x7xf32>
    %481 = tpu.matmul %471, %480, %cst_221 {dimension_numbers = #tpu.dot_dimension_numbers<[1], [1], [0], [0], [0, 0, 1, 0], [], []>} : vector<7x64xf32>, vector<7x64xf32>, vector<7x7xf32> -> vector<7x7xf32>
    %cst_222 = arith.constant 1.250000e-01 : f32
    %482 = vector.broadcast %cst_222 : f32 to vector<7x7xf32>
    %483 = arith.mulf %481, %482 : vector<7x7xf32>
    %cst_223 = arith.constant dense<0xFF800000> : vector<7xf32>
    %484 = vector.multi_reduction <maximumf>, %483, %cst_223 [1] : vector<7x7xf32> to vector<7xf32>
    %485 = vector.shape_cast %484 : vector<7xf32> to vector<7x1xf32>
    %486 = vector.broadcast %485 : vector<7x1xf32> to vector<7x7xf32>
    %487 = arith.subf %483, %486 : vector<7x7xf32>
    %488 = math.exp %487 : vector<7x7xf32>
    %cst_224 = arith.constant dense<0.000000e+00> : vector<7xf32>
    %489 = vector.multi_reduction <add>, %488, %cst_224 [1] : vector<7x7xf32> to vector<7xf32>
    %490 = vector.shape_cast %489 : vector<7xf32> to vector<7x1xf32>
    %491 = tpu.reciprocal %490 {approx = true} : vector<7x1xf32> -> vector<7x1xf32>
    %492 = vector.broadcast %491 : vector<7x1xf32> to vector<7x7xf32>
    %493 = arith.mulf %488, %492 : vector<7x7xf32>
    %494 = vector.broadcast %7 : vector<1x64xf32> to vector<7x64xf32>
    %495 = arith.mulf %477, %494 : vector<7x64xf32>
    %cst_225 = arith.constant dense<0.000000e+00> : vector<7x64xf32>
    %496 = tpu.matmul %493, %495, %cst_225 {dimension_numbers = #tpu.dot_dimension_numbers<[1], [0], [0], [1], [0, 0, 1, 1], [], []>} : vector<7x7xf32>, vector<7x64xf32>, vector<7x64xf32> -> vector<7x64xf32>
    %497 = arith.addf %478, %496 : vector<7x64xf32>
    %498 = vector.broadcast %14 : vector<1x64xf32> to vector<7x64xf32>
    %499 = arith.mulf %474, %498 : vector<7x64xf32>
    %cst_226 = arith.constant dense<0.000000e+00> : vector<7x7xf32>
    %500 = tpu.matmul %471, %499, %cst_226 {dimension_numbers = #tpu.dot_dimension_numbers<[1], [1], [0], [0], [0, 0, 1, 0], [], []>} : vector<7x64xf32>, vector<7x64xf32>, vector<7x7xf32> -> vector<7x7xf32>
    %cst_227 = arith.constant 1.250000e-01 : f32
    %501 = vector.broadcast %cst_227 : f32 to vector<7x7xf32>
    %502 = arith.mulf %500, %501 : vector<7x7xf32>
    %cst_228 = arith.constant dense<0xFF800000> : vector<7xf32>
    %503 = vector.multi_reduction <maximumf>, %502, %cst_228 [1] : vector<7x7xf32> to vector<7xf32>
    %504 = vector.shape_cast %503 : vector<7xf32> to vector<7x1xf32>
    %505 = vector.broadcast %504 : vector<7x1xf32> to vector<7x7xf32>
    %506 = arith.subf %502, %505 : vector<7x7xf32>
    %507 = math.exp %506 : vector<7x7xf32>
    %cst_229 = arith.constant dense<0.000000e+00> : vector<7xf32>
    %508 = vector.multi_reduction <add>, %507, %cst_229 [1] : vector<7x7xf32> to vector<7xf32>
    %509 = vector.shape_cast %508 : vector<7xf32> to vector<7x1xf32>
    %510 = tpu.reciprocal %509 {approx = true} : vector<7x1xf32> -> vector<7x1xf32>
    %511 = vector.broadcast %510 : vector<7x1xf32> to vector<7x7xf32>
    %512 = arith.mulf %507, %511 : vector<7x7xf32>
    %513 = vector.broadcast %14 : vector<1x64xf32> to vector<7x64xf32>
    %514 = arith.mulf %477, %513 : vector<7x64xf32>
    %cst_230 = arith.constant dense<0.000000e+00> : vector<7x64xf32>
    %515 = tpu.matmul %512, %514, %cst_230 {dimension_numbers = #tpu.dot_dimension_numbers<[1], [0], [0], [1], [0, 0, 1, 1], [], []>} : vector<7x7xf32>, vector<7x64xf32>, vector<7x64xf32> -> vector<7x64xf32>
    %516 = arith.addf %497, %515 : vector<7x64xf32>
    %517 = vector.broadcast %21 : vector<1x64xf32> to vector<7x64xf32>
    %518 = arith.mulf %474, %517 : vector<7x64xf32>
    %cst_231 = arith.constant dense<0.000000e+00> : vector<7x7xf32>
    %519 = tpu.matmul %471, %518, %cst_231 {dimension_numbers = #tpu.dot_dimension_numbers<[1], [1], [0], [0], [0, 0, 1, 0], [], []>} : vector<7x64xf32>, vector<7x64xf32>, vector<7x7xf32> -> vector<7x7xf32>
    %cst_232 = arith.constant 1.250000e-01 : f32
    %520 = vector.broadcast %cst_232 : f32 to vector<7x7xf32>
    %521 = arith.mulf %519, %520 : vector<7x7xf32>
    %cst_233 = arith.constant dense<0xFF800000> : vector<7xf32>
    %522 = vector.multi_reduction <maximumf>, %521, %cst_233 [1] : vector<7x7xf32> to vector<7xf32>
    %523 = vector.shape_cast %522 : vector<7xf32> to vector<7x1xf32>
    %524 = vector.broadcast %523 : vector<7x1xf32> to vector<7x7xf32>
    %525 = arith.subf %521, %524 : vector<7x7xf32>
    %526 = math.exp %525 : vector<7x7xf32>
    %cst_234 = arith.constant dense<0.000000e+00> : vector<7xf32>
    %527 = vector.multi_reduction <add>, %526, %cst_234 [1] : vector<7x7xf32> to vector<7xf32>
    %528 = vector.shape_cast %527 : vector<7xf32> to vector<7x1xf32>
    %529 = tpu.reciprocal %528 {approx = true} : vector<7x1xf32> -> vector<7x1xf32>
    %530 = vector.broadcast %529 : vector<7x1xf32> to vector<7x7xf32>
    %531 = arith.mulf %526, %530 : vector<7x7xf32>
    %532 = vector.broadcast %21 : vector<1x64xf32> to vector<7x64xf32>
    %533 = arith.mulf %477, %532 : vector<7x64xf32>
    %cst_235 = arith.constant dense<0.000000e+00> : vector<7x64xf32>
    %534 = tpu.matmul %531, %533, %cst_235 {dimension_numbers = #tpu.dot_dimension_numbers<[1], [0], [0], [1], [0, 0, 1, 1], [], []>} : vector<7x7xf32>, vector<7x64xf32>, vector<7x64xf32> -> vector<7x64xf32>
    %535 = arith.addf %516, %534 : vector<7x64xf32>
    %536 = vector.broadcast %28 : vector<1x64xf32> to vector<7x64xf32>
    %537 = arith.mulf %474, %536 : vector<7x64xf32>
    %cst_236 = arith.constant dense<0.000000e+00> : vector<7x7xf32>
    %538 = tpu.matmul %471, %537, %cst_236 {dimension_numbers = #tpu.dot_dimension_numbers<[1], [1], [0], [0], [0, 0, 1, 0], [], []>} : vector<7x64xf32>, vector<7x64xf32>, vector<7x7xf32> -> vector<7x7xf32>
    %cst_237 = arith.constant 1.250000e-01 : f32
    %539 = vector.broadcast %cst_237 : f32 to vector<7x7xf32>
    %540 = arith.mulf %538, %539 : vector<7x7xf32>
    %cst_238 = arith.constant dense<0xFF800000> : vector<7xf32>
    %541 = vector.multi_reduction <maximumf>, %540, %cst_238 [1] : vector<7x7xf32> to vector<7xf32>
    %542 = vector.shape_cast %541 : vector<7xf32> to vector<7x1xf32>
    %543 = vector.broadcast %542 : vector<7x1xf32> to vector<7x7xf32>
    %544 = arith.subf %540, %543 : vector<7x7xf32>
    %545 = math.exp %544 : vector<7x7xf32>
    %cst_239 = arith.constant dense<0.000000e+00> : vector<7xf32>
    %546 = vector.multi_reduction <add>, %545, %cst_239 [1] : vector<7x7xf32> to vector<7xf32>
    %547 = vector.shape_cast %546 : vector<7xf32> to vector<7x1xf32>
    %548 = tpu.reciprocal %547 {approx = true} : vector<7x1xf32> -> vector<7x1xf32>
    %549 = vector.broadcast %548 : vector<7x1xf32> to vector<7x7xf32>
    %550 = arith.mulf %545, %549 : vector<7x7xf32>
    %551 = vector.broadcast %28 : vector<1x64xf32> to vector<7x64xf32>
    %552 = arith.mulf %477, %551 : vector<7x64xf32>
    %cst_240 = arith.constant dense<0.000000e+00> : vector<7x64xf32>
    %553 = tpu.matmul %550, %552, %cst_240 {dimension_numbers = #tpu.dot_dimension_numbers<[1], [0], [0], [1], [0, 0, 1, 1], [], []>} : vector<7x7xf32>, vector<7x64xf32>, vector<7x64xf32> -> vector<7x64xf32>
    %554 = arith.addf %535, %553 : vector<7x64xf32>
    %c3_241 = arith.constant 3 : index
    %c0_242 = arith.constant 0 : index
    %c0_243 = arith.constant 0 : index
    %555 = vector.load %arg6[%c3_241, %c0_242, %c0_243] : memref<5x64x64xf32, #tpu.memory_space<vmem>>, vector<1x64x64xf32>
    %556 = vector.shape_cast %555 : vector<1x64x64xf32> to vector<64x64xf32>
    %cst_244 = arith.constant dense<0.000000e+00> : vector<7x64xf32>
    %557 = tpu.matmul %554, %556, %cst_244 {dimension_numbers = #tpu.dot_dimension_numbers<[1], [0], [0], [1], [0, 0, 1, 1], [], []>} : vector<7x64xf32>, vector<64x64xf32>, vector<7x64xf32> -> vector<7x64xf32>
    %c3_245 = arith.constant 3 : index
    %c0_246 = arith.constant 0 : index
    %c0_247 = arith.constant 0 : index
    %558 = vector.load %arg7[%c3_245, %c0_246, %c0_247] : memref<5x1x64xf32, #tpu.memory_space<vmem>>, vector<1x1x64xf32>
    %559 = vector.shape_cast %558 : vector<1x1x64xf32> to vector<1x64xf32>
    %560 = vector.broadcast %559 : vector<1x64xf32> to vector<7x64xf32>
    %561 = arith.addf %557, %560 : vector<7x64xf32>
    %562 = arith.addf %561, %468 : vector<7x64xf32>
    %cst_248 = arith.constant dense<0.000000e+00> : vector<7xf32>
    %563 = vector.multi_reduction <add>, %562, %cst_248 [1] : vector<7x64xf32> to vector<7xf32>
    %564 = vector.shape_cast %563 : vector<7xf32> to vector<7x1xf32>
    %cst_249 = arith.constant 6.400000e+01 : f32
    %565 = vector.broadcast %cst_249 : f32 to vector<7x1xf32>
    %566 = arith.divf %564, %565 : vector<7x1xf32>
    %567 = vector.broadcast %566 : vector<7x1xf32> to vector<7x64xf32>
    %568 = arith.subf %562, %567 : vector<7x64xf32>
    %569 = arith.mulf %568, %568 : vector<7x64xf32>
    %cst_250 = arith.constant dense<0.000000e+00> : vector<7xf32>
    %570 = vector.multi_reduction <add>, %569, %cst_250 [1] : vector<7x64xf32> to vector<7xf32>
    %571 = vector.shape_cast %570 : vector<7xf32> to vector<7x1xf32>
    %cst_251 = arith.constant 6.400000e+01 : f32
    %572 = vector.broadcast %cst_251 : f32 to vector<7x1xf32>
    %573 = arith.divf %571, %572 : vector<7x1xf32>
    %cst_252 = arith.constant 9.99999974E-6 : f32
    %574 = vector.broadcast %cst_252 : f32 to vector<7x1xf32>
    %575 = arith.addf %573, %574 : vector<7x1xf32>
    %576 = math.rsqrt %575 : vector<7x1xf32>
    %577 = vector.broadcast %576 : vector<7x1xf32> to vector<7x64xf32>
    %578 = arith.mulf %568, %577 : vector<7x64xf32>
    %c5 = arith.constant 5 : index
    %c0_253 = arith.constant 0 : index
    %c0_254 = arith.constant 0 : index
    %579 = vector.load %arg8[%c5, %c0_253, %c0_254] : memref<8x1x64xf32, #tpu.memory_space<vmem>>, vector<1x1x64xf32>
    %580 = vector.shape_cast %579 : vector<1x1x64xf32> to vector<1x64xf32>
    %581 = vector.broadcast %580 : vector<1x64xf32> to vector<7x64xf32>
    %582 = arith.mulf %578, %581 : vector<7x64xf32>
    %c5_255 = arith.constant 5 : index
    %c0_256 = arith.constant 0 : index
    %c0_257 = arith.constant 0 : index
    %583 = vector.load %arg9[%c5_255, %c0_256, %c0_257] : memref<8x1x64xf32, #tpu.memory_space<vmem>>, vector<1x1x64xf32>
    %584 = vector.shape_cast %583 : vector<1x1x64xf32> to vector<1x64xf32>
    %585 = vector.broadcast %584 : vector<1x64xf32> to vector<7x64xf32>
    %586 = arith.addf %582, %585 : vector<7x64xf32>
    %c4_258 = arith.constant 4 : index
    %c0_259 = arith.constant 0 : index
    %c0_260 = arith.constant 0 : index
    %587 = vector.load %arg3[%c4_258, %c0_259, %c0_260] : memref<5x64x64xf32, #tpu.memory_space<vmem>>, vector<1x64x64xf32>
    %588 = vector.shape_cast %587 : vector<1x64x64xf32> to vector<64x64xf32>
    %cst_261 = arith.constant dense<0.000000e+00> : vector<7x64xf32>
    %589 = tpu.matmul %586, %588, %cst_261 {dimension_numbers = #tpu.dot_dimension_numbers<[1], [0], [0], [1], [0, 0, 1, 1], [], []>} : vector<7x64xf32>, vector<64x64xf32>, vector<7x64xf32> -> vector<7x64xf32>
    %c4_262 = arith.constant 4 : index
    %c0_263 = arith.constant 0 : index
    %c0_264 = arith.constant 0 : index
    %590 = vector.load %arg4[%c4_262, %c0_263, %c0_264] : memref<5x64x64xf32, #tpu.memory_space<vmem>>, vector<1x64x64xf32>
    %591 = vector.shape_cast %590 : vector<1x64x64xf32> to vector<64x64xf32>
    %cst_265 = arith.constant dense<0.000000e+00> : vector<9x64xf32>
    %592 = tpu.matmul %191, %591, %cst_265 {dimension_numbers = #tpu.dot_dimension_numbers<[1], [0], [0], [1], [0, 0, 1, 1], [], []>} : vector<9x64xf32>, vector<64x64xf32>, vector<9x64xf32> -> vector<9x64xf32>
    %c4_266 = arith.constant 4 : index
    %c0_267 = arith.constant 0 : index
    %c0_268 = arith.constant 0 : index
    %593 = vector.load %arg5[%c4_266, %c0_267, %c0_268] : memref<5x64x64xf32, #tpu.memory_space<vmem>>, vector<1x64x64xf32>
    %594 = vector.shape_cast %593 : vector<1x64x64xf32> to vector<64x64xf32>
    %cst_269 = arith.constant dense<0.000000e+00> : vector<9x64xf32>
    %595 = tpu.matmul %191, %594, %cst_269 {dimension_numbers = #tpu.dot_dimension_numbers<[1], [0], [0], [1], [0, 0, 1, 1], [], []>} : vector<9x64xf32>, vector<64x64xf32>, vector<9x64xf32> -> vector<9x64xf32>
    %cst_270 = arith.constant 0.000000e+00 : f32
    %596 = vector.broadcast %cst_270 : f32 to vector<7x64xf32>
    %597 = vector.broadcast %7 : vector<1x64xf32> to vector<9x64xf32>
    %598 = arith.mulf %592, %597 : vector<9x64xf32>
    %cst_271 = arith.constant dense<0.000000e+00> : vector<7x9xf32>
    %599 = tpu.matmul %589, %598, %cst_271 {dimension_numbers = #tpu.dot_dimension_numbers<[1], [1], [0], [0], [0, 0, 1, 0], [], []>} : vector<7x64xf32>, vector<9x64xf32>, vector<7x9xf32> -> vector<7x9xf32>
    %cst_272 = arith.constant 1.250000e-01 : f32
    %600 = vector.broadcast %cst_272 : f32 to vector<7x9xf32>
    %601 = arith.mulf %599, %600 : vector<7x9xf32>
    %cst_273 = arith.constant dense<0xFF800000> : vector<7xf32>
    %602 = vector.multi_reduction <maximumf>, %601, %cst_273 [1] : vector<7x9xf32> to vector<7xf32>
    %603 = vector.shape_cast %602 : vector<7xf32> to vector<7x1xf32>
    %604 = vector.broadcast %603 : vector<7x1xf32> to vector<7x9xf32>
    %605 = arith.subf %601, %604 : vector<7x9xf32>
    %606 = math.exp %605 : vector<7x9xf32>
    %cst_274 = arith.constant dense<0.000000e+00> : vector<7xf32>
    %607 = vector.multi_reduction <add>, %606, %cst_274 [1] : vector<7x9xf32> to vector<7xf32>
    %608 = vector.shape_cast %607 : vector<7xf32> to vector<7x1xf32>
    %609 = tpu.reciprocal %608 {approx = true} : vector<7x1xf32> -> vector<7x1xf32>
    %610 = vector.broadcast %609 : vector<7x1xf32> to vector<7x9xf32>
    %611 = arith.mulf %606, %610 : vector<7x9xf32>
    %612 = vector.broadcast %7 : vector<1x64xf32> to vector<9x64xf32>
    %613 = arith.mulf %595, %612 : vector<9x64xf32>
    %cst_275 = arith.constant dense<0.000000e+00> : vector<7x64xf32>
    %614 = tpu.matmul %611, %613, %cst_275 {dimension_numbers = #tpu.dot_dimension_numbers<[1], [0], [0], [1], [0, 0, 1, 1], [], []>} : vector<7x9xf32>, vector<9x64xf32>, vector<7x64xf32> -> vector<7x64xf32>
    %615 = arith.addf %596, %614 : vector<7x64xf32>
    %616 = vector.broadcast %14 : vector<1x64xf32> to vector<9x64xf32>
    %617 = arith.mulf %592, %616 : vector<9x64xf32>
    %cst_276 = arith.constant dense<0.000000e+00> : vector<7x9xf32>
    %618 = tpu.matmul %589, %617, %cst_276 {dimension_numbers = #tpu.dot_dimension_numbers<[1], [1], [0], [0], [0, 0, 1, 0], [], []>} : vector<7x64xf32>, vector<9x64xf32>, vector<7x9xf32> -> vector<7x9xf32>
    %cst_277 = arith.constant 1.250000e-01 : f32
    %619 = vector.broadcast %cst_277 : f32 to vector<7x9xf32>
    %620 = arith.mulf %618, %619 : vector<7x9xf32>
    %cst_278 = arith.constant dense<0xFF800000> : vector<7xf32>
    %621 = vector.multi_reduction <maximumf>, %620, %cst_278 [1] : vector<7x9xf32> to vector<7xf32>
    %622 = vector.shape_cast %621 : vector<7xf32> to vector<7x1xf32>
    %623 = vector.broadcast %622 : vector<7x1xf32> to vector<7x9xf32>
    %624 = arith.subf %620, %623 : vector<7x9xf32>
    %625 = math.exp %624 : vector<7x9xf32>
    %cst_279 = arith.constant dense<0.000000e+00> : vector<7xf32>
    %626 = vector.multi_reduction <add>, %625, %cst_279 [1] : vector<7x9xf32> to vector<7xf32>
    %627 = vector.shape_cast %626 : vector<7xf32> to vector<7x1xf32>
    %628 = tpu.reciprocal %627 {approx = true} : vector<7x1xf32> -> vector<7x1xf32>
    %629 = vector.broadcast %628 : vector<7x1xf32> to vector<7x9xf32>
    %630 = arith.mulf %625, %629 : vector<7x9xf32>
    %631 = vector.broadcast %14 : vector<1x64xf32> to vector<9x64xf32>
    %632 = arith.mulf %595, %631 : vector<9x64xf32>
    %cst_280 = arith.constant dense<0.000000e+00> : vector<7x64xf32>
    %633 = tpu.matmul %630, %632, %cst_280 {dimension_numbers = #tpu.dot_dimension_numbers<[1], [0], [0], [1], [0, 0, 1, 1], [], []>} : vector<7x9xf32>, vector<9x64xf32>, vector<7x64xf32> -> vector<7x64xf32>
    %634 = arith.addf %615, %633 : vector<7x64xf32>
    %635 = vector.broadcast %21 : vector<1x64xf32> to vector<9x64xf32>
    %636 = arith.mulf %592, %635 : vector<9x64xf32>
    %cst_281 = arith.constant dense<0.000000e+00> : vector<7x9xf32>
    %637 = tpu.matmul %589, %636, %cst_281 {dimension_numbers = #tpu.dot_dimension_numbers<[1], [1], [0], [0], [0, 0, 1, 0], [], []>} : vector<7x64xf32>, vector<9x64xf32>, vector<7x9xf32> -> vector<7x9xf32>
    %cst_282 = arith.constant 1.250000e-01 : f32
    %638 = vector.broadcast %cst_282 : f32 to vector<7x9xf32>
    %639 = arith.mulf %637, %638 : vector<7x9xf32>
    %cst_283 = arith.constant dense<0xFF800000> : vector<7xf32>
    %640 = vector.multi_reduction <maximumf>, %639, %cst_283 [1] : vector<7x9xf32> to vector<7xf32>
    %641 = vector.shape_cast %640 : vector<7xf32> to vector<7x1xf32>
    %642 = vector.broadcast %641 : vector<7x1xf32> to vector<7x9xf32>
    %643 = arith.subf %639, %642 : vector<7x9xf32>
    %644 = math.exp %643 : vector<7x9xf32>
    %cst_284 = arith.constant dense<0.000000e+00> : vector<7xf32>
    %645 = vector.multi_reduction <add>, %644, %cst_284 [1] : vector<7x9xf32> to vector<7xf32>
    %646 = vector.shape_cast %645 : vector<7xf32> to vector<7x1xf32>
    %647 = tpu.reciprocal %646 {approx = true} : vector<7x1xf32> -> vector<7x1xf32>
    %648 = vector.broadcast %647 : vector<7x1xf32> to vector<7x9xf32>
    %649 = arith.mulf %644, %648 : vector<7x9xf32>
    %650 = vector.broadcast %21 : vector<1x64xf32> to vector<9x64xf32>
    %651 = arith.mulf %595, %650 : vector<9x64xf32>
    %cst_285 = arith.constant dense<0.000000e+00> : vector<7x64xf32>
    %652 = tpu.matmul %649, %651, %cst_285 {dimension_numbers = #tpu.dot_dimension_numbers<[1], [0], [0], [1], [0, 0, 1, 1], [], []>} : vector<7x9xf32>, vector<9x64xf32>, vector<7x64xf32> -> vector<7x64xf32>
    %653 = arith.addf %634, %652 : vector<7x64xf32>
    %654 = vector.broadcast %28 : vector<1x64xf32> to vector<9x64xf32>
    %655 = arith.mulf %592, %654 : vector<9x64xf32>
    %cst_286 = arith.constant dense<0.000000e+00> : vector<7x9xf32>
    %656 = tpu.matmul %589, %655, %cst_286 {dimension_numbers = #tpu.dot_dimension_numbers<[1], [1], [0], [0], [0, 0, 1, 0], [], []>} : vector<7x64xf32>, vector<9x64xf32>, vector<7x9xf32> -> vector<7x9xf32>
    %cst_287 = arith.constant 1.250000e-01 : f32
    %657 = vector.broadcast %cst_287 : f32 to vector<7x9xf32>
    %658 = arith.mulf %656, %657 : vector<7x9xf32>
    %cst_288 = arith.constant dense<0xFF800000> : vector<7xf32>
    %659 = vector.multi_reduction <maximumf>, %658, %cst_288 [1] : vector<7x9xf32> to vector<7xf32>
    %660 = vector.shape_cast %659 : vector<7xf32> to vector<7x1xf32>
    %661 = vector.broadcast %660 : vector<7x1xf32> to vector<7x9xf32>
    %662 = arith.subf %658, %661 : vector<7x9xf32>
    %663 = math.exp %662 : vector<7x9xf32>
    %cst_289 = arith.constant dense<0.000000e+00> : vector<7xf32>
    %664 = vector.multi_reduction <add>, %663, %cst_289 [1] : vector<7x9xf32> to vector<7xf32>
    %665 = vector.shape_cast %664 : vector<7xf32> to vector<7x1xf32>
    %666 = tpu.reciprocal %665 {approx = true} : vector<7x1xf32> -> vector<7x1xf32>
    %667 = vector.broadcast %666 : vector<7x1xf32> to vector<7x9xf32>
    %668 = arith.mulf %663, %667 : vector<7x9xf32>
    %669 = vector.broadcast %28 : vector<1x64xf32> to vector<9x64xf32>
    %670 = arith.mulf %595, %669 : vector<9x64xf32>
    %cst_290 = arith.constant dense<0.000000e+00> : vector<7x64xf32>
    %671 = tpu.matmul %668, %670, %cst_290 {dimension_numbers = #tpu.dot_dimension_numbers<[1], [0], [0], [1], [0, 0, 1, 1], [], []>} : vector<7x9xf32>, vector<9x64xf32>, vector<7x64xf32> -> vector<7x64xf32>
    %672 = arith.addf %653, %671 : vector<7x64xf32>
    %c4_291 = arith.constant 4 : index
    %c0_292 = arith.constant 0 : index
    %c0_293 = arith.constant 0 : index
    %673 = vector.load %arg6[%c4_291, %c0_292, %c0_293] : memref<5x64x64xf32, #tpu.memory_space<vmem>>, vector<1x64x64xf32>
    %674 = vector.shape_cast %673 : vector<1x64x64xf32> to vector<64x64xf32>
    %cst_294 = arith.constant dense<0.000000e+00> : vector<7x64xf32>
    %675 = tpu.matmul %672, %674, %cst_294 {dimension_numbers = #tpu.dot_dimension_numbers<[1], [0], [0], [1], [0, 0, 1, 1], [], []>} : vector<7x64xf32>, vector<64x64xf32>, vector<7x64xf32> -> vector<7x64xf32>
    %c4_295 = arith.constant 4 : index
    %c0_296 = arith.constant 0 : index
    %c0_297 = arith.constant 0 : index
    %676 = vector.load %arg7[%c4_295, %c0_296, %c0_297] : memref<5x1x64xf32, #tpu.memory_space<vmem>>, vector<1x1x64xf32>
    %677 = vector.shape_cast %676 : vector<1x1x64xf32> to vector<1x64xf32>
    %678 = vector.broadcast %677 : vector<1x64xf32> to vector<7x64xf32>
    %679 = arith.addf %675, %678 : vector<7x64xf32>
    %680 = arith.addf %679, %586 : vector<7x64xf32>
    %cst_298 = arith.constant dense<0.000000e+00> : vector<7xf32>
    %681 = vector.multi_reduction <add>, %680, %cst_298 [1] : vector<7x64xf32> to vector<7xf32>
    %682 = vector.shape_cast %681 : vector<7xf32> to vector<7x1xf32>
    %cst_299 = arith.constant 6.400000e+01 : f32
    %683 = vector.broadcast %cst_299 : f32 to vector<7x1xf32>
    %684 = arith.divf %682, %683 : vector<7x1xf32>
    %685 = vector.broadcast %684 : vector<7x1xf32> to vector<7x64xf32>
    %686 = arith.subf %680, %685 : vector<7x64xf32>
    %687 = arith.mulf %686, %686 : vector<7x64xf32>
    %cst_300 = arith.constant dense<0.000000e+00> : vector<7xf32>
    %688 = vector.multi_reduction <add>, %687, %cst_300 [1] : vector<7x64xf32> to vector<7xf32>
    %689 = vector.shape_cast %688 : vector<7xf32> to vector<7x1xf32>
    %cst_301 = arith.constant 6.400000e+01 : f32
    %690 = vector.broadcast %cst_301 : f32 to vector<7x1xf32>
    %691 = arith.divf %689, %690 : vector<7x1xf32>
    %cst_302 = arith.constant 9.99999974E-6 : f32
    %692 = vector.broadcast %cst_302 : f32 to vector<7x1xf32>
    %693 = arith.addf %691, %692 : vector<7x1xf32>
    %694 = math.rsqrt %693 : vector<7x1xf32>
    %695 = vector.broadcast %694 : vector<7x1xf32> to vector<7x64xf32>
    %696 = arith.mulf %686, %695 : vector<7x64xf32>
    %c6 = arith.constant 6 : index
    %c0_303 = arith.constant 0 : index
    %c0_304 = arith.constant 0 : index
    %697 = vector.load %arg8[%c6, %c0_303, %c0_304] : memref<8x1x64xf32, #tpu.memory_space<vmem>>, vector<1x1x64xf32>
    %698 = vector.shape_cast %697 : vector<1x1x64xf32> to vector<1x64xf32>
    %699 = vector.broadcast %698 : vector<1x64xf32> to vector<7x64xf32>
    %700 = arith.mulf %696, %699 : vector<7x64xf32>
    %c6_305 = arith.constant 6 : index
    %c0_306 = arith.constant 0 : index
    %c0_307 = arith.constant 0 : index
    %701 = vector.load %arg9[%c6_305, %c0_306, %c0_307] : memref<8x1x64xf32, #tpu.memory_space<vmem>>, vector<1x1x64xf32>
    %702 = vector.shape_cast %701 : vector<1x1x64xf32> to vector<1x64xf32>
    %703 = vector.broadcast %702 : vector<1x64xf32> to vector<7x64xf32>
    %704 = arith.addf %700, %703 : vector<7x64xf32>
    %c2_308 = arith.constant 2 : index
    %c0_309 = arith.constant 0 : index
    %c0_310 = arith.constant 0 : index
    %705 = vector.load %arg10[%c2_308, %c0_309, %c0_310] : memref<3x64x256xf32, #tpu.memory_space<vmem>>, vector<1x64x256xf32>
    %706 = vector.shape_cast %705 : vector<1x64x256xf32> to vector<64x256xf32>
    %cst_311 = arith.constant dense<0.000000e+00> : vector<7x256xf32>
    %707 = tpu.matmul %704, %706, %cst_311 {dimension_numbers = #tpu.dot_dimension_numbers<[1], [0], [0], [1], [0, 0, 1, 1], [], []>} : vector<7x64xf32>, vector<64x256xf32>, vector<7x256xf32> -> vector<7x256xf32>
    %c2_312 = arith.constant 2 : index
    %c0_313 = arith.constant 0 : index
    %c0_314 = arith.constant 0 : index
    %708 = vector.load %arg11[%c2_312, %c0_313, %c0_314] : memref<3x1x256xf32, #tpu.memory_space<vmem>>, vector<1x1x256xf32>
    %709 = vector.shape_cast %708 : vector<1x1x256xf32> to vector<1x256xf32>
    %710 = vector.broadcast %709 : vector<1x256xf32> to vector<7x256xf32>
    %711 = arith.addf %707, %710 : vector<7x256xf32>
    %cst_315 = arith.constant 0.000000e+00 : f32
    %712 = vector.broadcast %cst_315 : f32 to vector<7x256xf32>
    %713 = arith.maximumf %711, %712 : vector<7x256xf32>
    %c2_316 = arith.constant 2 : index
    %c0_317 = arith.constant 0 : index
    %c0_318 = arith.constant 0 : index
    %714 = vector.load %arg12[%c2_316, %c0_317, %c0_318] : memref<3x256x64xf32, #tpu.memory_space<vmem>>, vector<1x256x64xf32>
    %715 = vector.shape_cast %714 : vector<1x256x64xf32> to vector<256x64xf32>
    %cst_319 = arith.constant dense<0.000000e+00> : vector<7x64xf32>
    %716 = tpu.matmul %713, %715, %cst_319 {dimension_numbers = #tpu.dot_dimension_numbers<[1], [0], [0], [1], [0, 0, 1, 1], [], []>} : vector<7x256xf32>, vector<256x64xf32>, vector<7x64xf32> -> vector<7x64xf32>
    %c2_320 = arith.constant 2 : index
    %c0_321 = arith.constant 0 : index
    %c0_322 = arith.constant 0 : index
    %717 = vector.load %arg13[%c2_320, %c0_321, %c0_322] : memref<3x1x64xf32, #tpu.memory_space<vmem>>, vector<1x1x64xf32>
    %718 = vector.shape_cast %717 : vector<1x1x64xf32> to vector<1x64xf32>
    %719 = vector.broadcast %718 : vector<1x64xf32> to vector<7x64xf32>
    %720 = arith.addf %716, %719 : vector<7x64xf32>
    %721 = arith.addf %720, %704 : vector<7x64xf32>
    %cst_323 = arith.constant dense<0.000000e+00> : vector<7xf32>
    %722 = vector.multi_reduction <add>, %721, %cst_323 [1] : vector<7x64xf32> to vector<7xf32>
    %723 = vector.shape_cast %722 : vector<7xf32> to vector<7x1xf32>
    %cst_324 = arith.constant 6.400000e+01 : f32
    %724 = vector.broadcast %cst_324 : f32 to vector<7x1xf32>
    %725 = arith.divf %723, %724 : vector<7x1xf32>
    %726 = vector.broadcast %725 : vector<7x1xf32> to vector<7x64xf32>
    %727 = arith.subf %721, %726 : vector<7x64xf32>
    %728 = arith.mulf %727, %727 : vector<7x64xf32>
    %cst_325 = arith.constant dense<0.000000e+00> : vector<7xf32>
    %729 = vector.multi_reduction <add>, %728, %cst_325 [1] : vector<7x64xf32> to vector<7xf32>
    %730 = vector.shape_cast %729 : vector<7xf32> to vector<7x1xf32>
    %cst_326 = arith.constant 6.400000e+01 : f32
    %731 = vector.broadcast %cst_326 : f32 to vector<7x1xf32>
    %732 = arith.divf %730, %731 : vector<7x1xf32>
    %cst_327 = arith.constant 9.99999974E-6 : f32
    %733 = vector.broadcast %cst_327 : f32 to vector<7x1xf32>
    %734 = arith.addf %732, %733 : vector<7x1xf32>
    %735 = math.rsqrt %734 : vector<7x1xf32>
    %736 = vector.broadcast %735 : vector<7x1xf32> to vector<7x64xf32>
    %737 = arith.mulf %727, %736 : vector<7x64xf32>
    %c7 = arith.constant 7 : index
    %c0_328 = arith.constant 0 : index
    %c0_329 = arith.constant 0 : index
    %738 = vector.load %arg8[%c7, %c0_328, %c0_329] : memref<8x1x64xf32, #tpu.memory_space<vmem>>, vector<1x1x64xf32>
    %739 = vector.shape_cast %738 : vector<1x1x64xf32> to vector<1x64xf32>
    %740 = vector.broadcast %739 : vector<1x64xf32> to vector<7x64xf32>
    %741 = arith.mulf %737, %740 : vector<7x64xf32>
    %c7_330 = arith.constant 7 : index
    %c0_331 = arith.constant 0 : index
    %c0_332 = arith.constant 0 : index
    %742 = vector.load %arg9[%c7_330, %c0_331, %c0_332] : memref<8x1x64xf32, #tpu.memory_space<vmem>>, vector<1x1x64xf32>
    %743 = vector.shape_cast %742 : vector<1x1x64xf32> to vector<1x64xf32>
    %744 = vector.broadcast %743 : vector<1x64xf32> to vector<7x64xf32>
    %745 = arith.addf %741, %744 : vector<7x64xf32>
    %c0_333 = arith.constant 0 : index
    %c0_334 = arith.constant 0 : index
    %746 = vector.load %arg14[%c0_333, %c0_334] : memref<64x128xf32, #tpu.memory_space<vmem>>, vector<64x128xf32>
    %cst_335 = arith.constant dense<0.000000e+00> : vector<7x128xf32>
    %747 = tpu.matmul %745, %746, %cst_335 {dimension_numbers = #tpu.dot_dimension_numbers<[1], [0], [0], [1], [0, 0, 1, 1], [], []>} : vector<7x64xf32>, vector<64x128xf32>, vector<7x128xf32> -> vector<7x128xf32>
    %c0_336 = arith.constant 0 : index
    %c0_337 = arith.constant 0 : index
    %748 = vector.load %arg15[%c0_336, %c0_337] : memref<1x128xf32, #tpu.memory_space<vmem>>, vector<1x128xf32>
    %749 = vector.broadcast %748 : vector<1x128xf32> to vector<7x128xf32>
    %750 = arith.addf %747, %749 : vector<7x128xf32>
    %c0_338 = arith.constant 0 : index
    %c0_339 = arith.constant 0 : index
    %c0_340 = arith.constant 0 : index
    %751 = vector.load %arg16[%c0_338, %c0_339, %c0_340] : memref<1x7x128xf32, #tpu.memory_space<vmem>>, vector<1x7x128xf32>
    %752 = vector.shape_cast %751 : vector<1x7x128xf32> to vector<7x128xf32>
    %753 = vector.shape_cast %750 : vector<7x128xf32> to vector<1x7x128xf32>
    tpu.vector_store %arg16[%c0_338, %c0_339, %c0_340], %753 {strides = array<i32>} : memref<1x7x128xf32, #tpu.memory_space<vmem>>, vector<1x7x128xf32>,
    return
  }
  func.func @transform_0(%arg0: i32) -> (i32, i32, i32) {
    %c0_i32 = arith.constant 0 : i32
    %c0_i32_0 = arith.constant 0 : i32
    %c0_i32_1 = arith.constant 0 : i32
    return %arg0, %c0_i32, %c0_i32_0 : i32, i32, i32
  }
  func.func @transform_1(%arg0: i32) -> (i32, i32, i32) {
    %c0_i32 = arith.constant 0 : i32
    %c0_i32_0 = arith.constant 0 : i32
    %c0_i32_1 = arith.constant 0 : i32
    return %arg0, %c0_i32, %c0_i32_0 : i32, i32, i32
  }
  func.func @transform_2(%arg0: i32) -> (i32, i32, i32) {
    %c0_i32 = arith.constant 0 : i32
    %c0_i32_0 = arith.constant 0 : i32
    %c0_i32_1 = arith.constant 0 : i32
    %c0_i32_2 = arith.constant 0 : i32
    return %c0_i32, %c0_i32_0, %c0_i32_1 : i32, i32, i32
  }
  func.func @transform_3(%arg0: i32) -> (i32, i32, i32) {
    %c0_i32 = arith.constant 0 : i32
    %c0_i32_0 = arith.constant 0 : i32
    %c0_i32_1 = arith.constant 0 : i32
    %c0_i32_2 = arith.constant 0 : i32
    return %c0_i32, %c0_i32_0, %c0_i32_1 : i32, i32, i32
  }
  func.func @transform_4(%arg0: i32) -> (i32, i32, i32) {
    %c0_i32 = arith.constant 0 : i32
    %c0_i32_0 = arith.constant 0 : i32
    %c0_i32_1 = arith.constant 0 : i32
    %c0_i32_2 = arith.constant 0 : i32
    return %c0_i32, %c0_i32_0, %c0_i32_1 : i32, i32, i32
  }
  func.func @transform_5(%arg0: i32) -> (i32, i32, i32) {
    %c0_i32 = arith.constant 0 : i32
    %c0_i32_0 = arith.constant 0 : i32
    %c0_i32_1 = arith.constant 0 : i32
    %c0_i32_2 = arith.constant 0 : i32
    return %c0_i32, %c0_i32_0, %c0_i32_1 : i32, i32, i32
  }
  func.func @transform_6(%arg0: i32) -> (i32, i32, i32) {
    %c0_i32 = arith.constant 0 : i32
    %c0_i32_0 = arith.constant 0 : i32
    %c0_i32_1 = arith.constant 0 : i32
    %c0_i32_2 = arith.constant 0 : i32
    return %c0_i32, %c0_i32_0, %c0_i32_1 : i32, i32, i32
  }
  func.func @transform_7(%arg0: i32) -> (i32, i32, i32) {
    %c0_i32 = arith.constant 0 : i32
    %c0_i32_0 = arith.constant 0 : i32
    %c0_i32_1 = arith.constant 0 : i32
    %c0_i32_2 = arith.constant 0 : i32
    return %c0_i32, %c0_i32_0, %c0_i32_1 : i32, i32, i32
  }
  func.func @transform_8(%arg0: i32) -> (i32, i32, i32) {
    %c0_i32 = arith.constant 0 : i32
    %c0_i32_0 = arith.constant 0 : i32
    %c0_i32_1 = arith.constant 0 : i32
    %c0_i32_2 = arith.constant 0 : i32
    return %c0_i32, %c0_i32_0, %c0_i32_1 : i32, i32, i32
  }
  func.func @transform_9(%arg0: i32) -> (i32, i32, i32) {
    %c0_i32 = arith.constant 0 : i32
    %c0_i32_0 = arith.constant 0 : i32
    %c0_i32_1 = arith.constant 0 : i32
    %c0_i32_2 = arith.constant 0 : i32
    return %c0_i32, %c0_i32_0, %c0_i32_1 : i32, i32, i32
  }
  func.func @transform_10(%arg0: i32) -> (i32, i32, i32) {
    %c0_i32 = arith.constant 0 : i32
    %c0_i32_0 = arith.constant 0 : i32
    %c0_i32_1 = arith.constant 0 : i32
    %c0_i32_2 = arith.constant 0 : i32
    return %c0_i32, %c0_i32_0, %c0_i32_1 : i32, i32, i32
  }
  func.func @transform_11(%arg0: i32) -> (i32, i32, i32) {
    %c0_i32 = arith.constant 0 : i32
    %c0_i32_0 = arith.constant 0 : i32
    %c0_i32_1 = arith.constant 0 : i32
    %c0_i32_2 = arith.constant 0 : i32
    return %c0_i32, %c0_i32_0, %c0_i32_1 : i32, i32, i32
  }
  func.func @transform_12(%arg0: i32) -> (i32, i32, i32) {
    %c0_i32 = arith.constant 0 : i32
    %c0_i32_0 = arith.constant 0 : i32
    %c0_i32_1 = arith.constant 0 : i32
    %c0_i32_2 = arith.constant 0 : i32
    return %c0_i32, %c0_i32_0, %c0_i32_1 : i32, i32, i32
  }
  func.func @transform_13(%arg0: i32) -> (i32, i32) {
    %c0_i32 = arith.constant 0 : i32
    %c0_i32_0 = arith.constant 0 : i32
    %c0_i32_1 = arith.constant 0 : i32
    return %c0_i32, %c0_i32_0 : i32, i32
  }
  func.func @transform_14(%arg0: i32) -> (i32, i32) {
    %c0_i32 = arith.constant 0 : i32
    %c0_i32_0 = arith.constant 0 : i32
    %c0_i32_1 = arith.constant 0 : i32
    return %c0_i32, %c0_i32_0 : i32, i32
  }
  func.func @transform_15(%arg0: i32) -> (i32, i32, i32) {
    %c0_i32 = arith.constant 0 : i32
    %c0_i32_0 = arith.constant 0 : i32
    %c0_i32_1 = arith.constant 0 : i32
    return %arg0, %c0_i32, %c0_i32_0 : i32, i32, i32
  }
}

</mosaic_0001>

<bundles_post_ra>
// kernel: transformer_forward.1
= control target key start
LH: loop header
LB: loop body
LE: loop exit
PB: predicated region body
PF: predicated region fallthrough
CT: control target
= control target key end

     0   :  { %20 = vsyncpa [#allocation3], 0  ;;  %s9115_s18 = smov 0   ;;  %s10781_s0 = inlined_call_operand.vmem [shape: f32[2,9,64], index: 0, kind: input, shape index: {}]   ;;  %s10782_s1 = inlined_call_operand.vmem [shape: f32[2,7,64], index: 1, kind: input, shape index: {}]   ;;  %s10783_s2 = inlined_call_operand.vmem [shape: f32[5,64,64], index: 2, kind: input, shape index: {}]   ;;  %s10784_s3 = inlined_call_operand.vmem [shape: f32[5,64,64], index: 3, kind: input, shape index: {}]   ;;  %s10785_s4 = inlined_call_operand.vmem [shape: f32[5,64,64], index: 4, kind: input, shape index: {}]   ;;  %s10786_s5 = inlined_call_operand.hbm [shape: f32[5,64,64], index: 5, kind: input, shape index: {}]   ;;  %s10787_s6 = inlined_call_operand.vmem [shape: f32[5,1,64], index: 6, kind: input, shape index: {}]   ;;  %s10788_s7 = inlined_call_operand.vmem [shape: f32[8,1,64], index: 7, kind: input, shape index: {}]   ;;  %s10789_s8 = inlined_call_operand.vmem [shape: f32[8,1,64], index: 8, kind: input, shape index: {}]   ;;  %s10790_s9 = inlined_call_operand.vmem [shape: f32[3,64,256], index: 9, kind: input, shape index: {}]   ;;  %s10791_s10 = inlined_call_operand.vmem [shape: f32[3,1,256], index: 10, kind: input, shape index: {}]   ;;  %s10792_s11 = inlined_call_operand.vmem [shape: f32[3,256,64], index: 11, kind: input, shape index: {}]   ;;  %s10793_s12 = inlined_call_operand.vmem [shape: f32[3,1,64], index: 12, kind: input, shape index: {}]   ;;  %s10794_s13 = inlined_call_operand.vmem [shape: f32[64,128], index: 13, kind: input, shape index: {}]   ;;  %s10795_s14 = inlined_call_operand.vmem [shape: f32[1,128], index: 14, kind: input, shape index: {}]   ;;  %s10796_s15 = inlined_call_operand.vmem [shape: f32[2,7,128], index: 15, kind: output, shape index: {}]  }
   0x1 LB: > { %s9121_s19 = sadd.s32 4294967295, %s9026_s18   ;;  %p6825_p0 = scmp.ge.s32.totalorder %s9026_s18, 1  ;;  %s9026_s18 = sphi %s9115_s18, %s26_s18  }
   0x2   : > { %p382_p1 = scmp.lt.s32.totalorder %s9026_s18, 3  ;;  %s9028_s20 = smov [#allocation2]  }
   0x3   : > { %s403_s21 = sshll.u32 %s9028_s20, 4  ;;  %p10797_p3 = scmp.eq.s32.totalorder %s9121_s19, 0  ;;  %s404_s21 = int_to_ptr.vmem [resolvable:$true] %s403_s21 }
   0x4   : > { %p9125_p2 = pnand %p6825_p0, %p382_p1  ;;  %s8988_s26 = scalar_lea.hbm %s10786_s5, 5120 }
   0x5   : > { %p8989_p6 = scmp.ne.s32.totalorder %s10786_s5, %s8988_s26  ;;  %p8995_p10 = scmp.lt.u32.totalorder %s8988_s26, %s10786_s5 }
   0x6   : > { %s10799_s22 = scalar_select %p9125_p2, 1, 0 }
   0x7   : > { %p8851_p4 = pneg %p9125_p2 }
   0x9   : > { %p9134_p5 = pnand %p10797_p3, %p8851_p4 }
   0xb   : > { %p8990_p7 = pneg %p9134_p5 }
   0xd   : > { %p8991_p8 = pnand %p8990_p7, %p8989_p6 }
   0xf   : > { %p8992_p9 = pneg %p8991_p8 }
  0x11   : > { %p8997_p11 = pnand %p8995_p10, %p8992_p9 }
  0x13   : > { %9000 = shalt.err (!%p8997_p11)
}
  0x14   : > { %s9001_s16 = scalar_lea.vmem %s404_s21, 5120  ;;  %p9009_p1 = scmp.lt.s32.totalorder %s404_s21, %s404_s21 }
  0x15   : > { %p9002_p12 = scmp.ne.s32.totalorder %s404_s21, %s9001_s16  ;;  %p9010_p4 = scmp.lt.s32.totalorder %s9001_s16, %s9001_s16 }
  0x17   : > { %p9004_p13 = pnand %p9002_p12, %p8990_p7  ;;  %p9011_p3 = por %p9010_p4, %p9009_p1 }
  0x19   : > { %p9005_p0 = pneg %p9004_p13 }
  0x1b   : > { %p9012_p2 = pnand %p9011_p3, %p9005_p0 }
  0x1d   : > { %9015 = shalt.err (!%p9012_p2)
}
  0x1e   : > { %s9029_s17 = smov 128   ;;  %s9030_s20 = smov 8  }
  0x1f   : > { %8854 = dma.hbm_to_vmem [thread:$0]  (!%p9134_p5), %s10786_s5, 5120, %s404_s21, [#allocation3], %s9029_s17, %s9029_s17, %s9030_s20  }
  0x20   : > { %p10801_p6 = scmp.ne.s32.totalorder %s10799_s22, 0 }
  0x21   : > { %p10802_p8 = scmp.eq.s32.totalorder (!%p10801_p6), %s9121_s19, 0 }
  0x22   : > { %461 = sbr.rel (%p10801_p6) target bundleno = 9407 (0x24bf), region = 80 }
  0x29   : > { %9021 = dma.done.wait (%p10802_p8), [#allocation3], 5120   ;;  %p10803_p7 = pmov %p10802_p8 }
  0x2a   : > { %p512_p2 = scmp.lt.s32.totalorder %s9121_s19, 1  ;;  %v640_v0 = vld [vmem:[%s10784_s3] sm:$0xff]  ;;  %v641_v1 = vld [vmem:[%s10784_s3 + $0x8] sm:$0xff]  ;;  %v642_v2 = vld [vmem:[%s10784_s3 + $0x10] sm:$0xff]  ;;  %vm558_vm0 = vcmask 523264   ;;  %v525_v26 = vlaneseq  ;;  %v9031_v28 = vmov 0.0  }
  0x2b   : > { %9023 = vsyncadd (%p10803_p7), [#allocation3], 4294962176  ;;  %v8293_v3 = vpack.c.bf16 %v641_v1, %v640_v0  ;;  %v643_v4 = vld [vmem:[%s10784_s3 + $0x18] sm:$0xff]  ;;  %v644_v5 = vld [vmem:[%s10784_s3 + $0x20] sm:$0xff]  ;;  %vm897_vm12 = vcmask 72704   ;;  %vm901_vm13 = vcmask 65536  }
  0x2c   : > { %s10809_s19 = smov (!%p512_p2, %s9121_s19), 1  ;;  %v8297_v6 = vpack.c.bf16 %v643_v4, %v642_v2  ;;  %v645_v7 = vld [vmem:[%s10784_s3 + $0x28] sm:$0xff]  ;;  %v550_v8 = vld [vmem:[%s10783_s2] sm:$0xff]  ;;  %v552_v11 = vld [vmem:[%s10783_s2 + $0x10] sm:$0xff]  ;;  %v526_v27 = vand.u32 127, %v525_v26  ;;  %vm1038_vm14 = vcmask 1040384  }
  0x2d   : > { %s7212_s23 = sshll.u32 %s10809_s19, 4  ;;  %v551_v9 = vld [vmem:[%s10783_s2 + $0x8] sm:$0xff]  ;;  %8294 = vmatprep.subr.bf16.mxu1 %v8293_v3  ;;  %v553_v12 = vld [vmem:[%s10783_s2 + $0x18] sm:$0xff]  ;;  %v554_v15 = vld [vmem:[%s10783_s2 + $0x20] sm:$0xff]  ;;  %v8301_v16 = vpack.c.bf16 %v645_v7, %v644_v5  ;;  %vm9032_vm15 = vmmov 1   ;;  %s6832_s22 = sshll.u32 %s10809_s19, 3 }
  0x2e   : > { %s9183_s26 = scalar_lea.vmem %s10781_s0, %s7212_s23  ;;  %v8277_v10 = vpack.c.bf16 %v551_v9, %v550_v8  ;;  %8296 = vmatpush3.bf16.msra.mxu1 %v8293_v3  ;;  %v8281_v13 = vpack.c.bf16 %v553_v12, %v552_v11  ;;  %v555_v17 = vld [vmem:[%s10783_s2 + $0x28] sm:$0xff]  ;;  %v646_v18 = vld [vmem:[%s10784_s3 + $0x30] sm:$0xff]  ;;  %v647_v19 = vld [vmem:[%s10784_s3 + $0x38] sm:$0xff]  ;;  %vm532_vm1 = vcmp.ge.s32.totalorder %v526_v27, 16  ;;  %vm533_vm2 = vcmp.lt.s32.totalorder %v526_v27, 32  ;;  %s520_s30 = scalar_lea.vmem %s10782_s1, %s6832_s22 }
  0x2f   : > { %v9201_v14 = vld [vmem:[%s9183_s26] sm:$0xff]  ;;  %8298 = vmatprep.subr.bf16.mxu1 %v8297_v6  ;;  %v8285_v20 = vpack.c.bf16 %v555_v17, %v554_v15  ;;  %v556_v21 = vld [vmem:[%s10783_s2 + $0x30] sm:$0xff]  ;;  %v557_v22 = vld [vmem:[%s10783_s2 + $0x38] sm:$0xff]  ;;  %v8305_v23 = vpack.c.bf16 %v647_v19, %v646_v18  ;;  %vm537_vm3 = vcmp.ge.s32.totalorder %v526_v27, 32  ;;  %vm538_vm4 = vcmp.lt.s32.totalorder %v526_v27, 48 }
  0x30   : > { %8278 = vmatprep.subr.bf16.mxu0 %v8277_v10  ;;  %7665 = vmatprep.mubr.msk.f32.mxu1 %vm558_vm0, %v9201_v14  ;;  %v8289_v24 = vpack.c.bf16 %v557_v22, %v556_v21  ;;  %v9226_v25 = vld [vmem:[%s9183_s26 + $0x8] sm:$0x1]  ;;  %vm542_vm5 = vcmp.ge.s32.totalorder %v526_v27, 48  ;;  %vm543_vm6 = vcmp.lt.s32.totalorder %v526_v27, 64  ;;  %vm534_vm7 = vmand %vm532_vm1, %vm533_vm2  ;;  %vm528_vm9 = vcmp.lt.s32.totalorder %v526_v27, 16  ;;  %v723_v50 = vld [vmem:[%s10785_s4] sm:$0xff]  ;;  %s524_s26 = scalar_lea.vmem %s10796_s15, %s6832_s22 }
  0x31   : > { %8280 = vmatpush3.bf16.msra.mxu0 %v8277_v10  ;;  %7646 = vmatprep.mubr.msk.f32.mxu0 %vm558_vm0, %v9201_v14  ;;  %vm539_vm8 = vmand %vm537_vm3, %vm538_vm4  ;;  %v9236_v29 = vsel %vm528_vm9, 1.0, %v9031_v28  ;;  %v9239_v30 = vsel %vm534_vm7, 1.0, %v9031_v28  ;;  %v724_v51 = vld [vmem:[%s10785_s4 + $0x8] sm:$0xff]  ;;  %v725_v52 = vld [vmem:[%s10785_s4 + $0x10] sm:$0xff]  ;;  %vm1692_vm2 = vcmask 516096   ;;  %vm9034_vm3 = vmmov 0  }
  0x32   : > { %8282 = vmatprep.subr.bf16.mxu0 %v8281_v13  ;;  %8300 = vmatpush3.bf16.msra.mxu1 %v8297_v6  ;;  %vm544_vm10 = vmand %vm542_vm5, %vm543_vm6  ;;  %v9242_v31 = vsel %vm539_vm8, 1.0, %v9031_v28  ;;  %v8309_v53 = vpack.c.bf16 %v724_v51, %v723_v50  ;;  %v726_v54 = vld [vmem:[%s10785_s4 + $0x18] sm:$0xff]  ;;  %v727_v56 = vld [vmem:[%s10785_s4 + $0x20] sm:$0xff]  ;;  %vm2434_vm4 = vcmask 1046528   ;;  %vm2330_vm5 = vcmask 55296  }
  0x33   : > { %8302 = vmatprep.subr.bf16.mxu1 %v8301_v16  ;;  %v9245_v32 = vsel %vm544_vm10, 1.0, %v9031_v28  ;;  %vm9257_vm11 = vmpackc.low %vm558_vm0, %vm558_vm0  ;;  %v8313_v55 = vpack.c.bf16 %v726_v54, %v725_v52  ;;  %v728_v57 = vld [vmem:[%s10785_s4 + $0x28] sm:$0xff]  ;;  %v729_v59 = vld [vmem:[%s10785_s4 + $0x30] sm:$0xff]  ;;  %vm2430_vm6 = vcmask 56320   ;;  %vm3003_vm7 = vcmask 522240  }
  0x34   : > { %v8317_v58 = vpack.c.bf16 %v728_v57, %v727_v56  ;;  %v730_v60 = vld [vmem:[%s10785_s4 + $0x38] sm:$0xff]  ;;  %vm9354_vm1 = vmpackc.low %vm1038_vm14, %vm9032_vm15  ;;  %vm3373_vm8 = vcmask 71680  }
  0x35   : > { %8284 = vmatpush3.bf16.msra.mxu0 %v8281_v13  ;;  %v8321_v61 = vpack.c.bf16 %v730_v60, %v729_v59 }
  0x36   : > { %8286 = vmatprep.subr.bf16.mxu0 %v8285_v20  ;;  %8304 = vmatpush3.bf16.msra.mxu1 %v8301_v16 }
  0x37   : > { %8306 = vmatprep.subr.bf16.mxu1 %v8305_v23 }
  0x39   : > { %8288 = vmatpush3.bf16.msra.mxu0 %v8285_v20 }
  0x3a   : > { %8290 = vmatprep.subr.bf16.mxu0 %v8289_v24  ;;  %8308 = vmatpush3.bf16.msra.mxu1 %v8305_v23 }
  0x3d   : > { %8292 = vmatpush3.bf16.msra.mxu0 %v8289_v24  ;;  %7666 = vmatmul.mubr.msk.f32.vlgmr.msra.gmra.mrb[0].mxu1 %vm558_vm0, %v9226_v25 }
  0x3e   : > { %8310 = vmatprep.subr.bf16.mxu0 %v8309_v53 }
  0x40   : > { %7647 = vmatmul.mubr.msk.f32.vlgmr.msra.gmra.mrb[0].mxu0 %vm558_vm0, %v9226_v25 }
  0x41   : > { %7684 = vmatprep.mubr.msk.f32.mxu0 %vm558_vm0, %v9201_v14  ;;  %8312 = vmatpush3.bf16.msra.mxu0 %v8309_v53 }
  0x42   : > { %8314 = vmatprep.subr.bf16.mxu0 %v8313_v55 }
  0x45   : > { %8316 = vmatpush3.bf16.msra.mxu0 %v8313_v55 }
  0x46   : > { %8318 = vmatprep.subr.bf16.mxu0 %v8317_v58 }
  0x49   : > { %8320 = vmatpush3.bf16.msra.mxu0 %v8317_v58 }
  0x4a   : > { %8322 = vmatprep.subr.bf16.mxu0 %v8321_v61 }
  0x4d   : > { %8324 = vmatpush3.bf16.msra.mxu0 %v8321_v61 }
  0x50   : > { %7685 = vmatmul.mubr.msk.f32.vlgmr.msra.gmra.mrb[2].mxu0 %vm558_vm0, %v9226_v25 }
 0x110   : > { %v7667_v33 = vpop.f32.mrb[0].mxu1 }
 0x111   : > { %v807_v34 = vmul.f32 %v7667_v33, %v9236_v29  ;;  %v924_v35 = vmul.f32 %v7667_v33, %v9239_v30  ;;  %v1202_v36 = vmul.f32 %v7667_v33, %v9242_v31  ;;  %v1397_v37 = vmul.f32 %v7667_v33, %v9245_v32  ;;  %v714_v38 = vpop.f32.mrb[1].mxu1 }
 0x112   : > { %v806_v39 = vmul.f32 %v9236_v29, %v714_v38  ;;  %v923_v40 = vmul.f32 %v9239_v30, %v714_v38  ;;  %v1201_v41 = vmul.f32 %v9242_v31, %v714_v38  ;;  %v1396_v42 = vmul.f32 %v9245_v32, %v714_v38 }
 0x113   : > { %v7648_v43 = vpop.f32.mrb[0].mxu0 }
 0x114   : > { %v631_v45 = vpop.f32.mrb[1].mxu0  ;;  %v8325_v46 = vpack.c.bf16 %v807_v34, %v806_v39  ;;  %v8331_v47 = vpack.c.bf16 %v924_v35, %v923_v40  ;;  %v8349_v48 = vpack.c.bf16 %v1202_v36, %v1201_v41  ;;  %v8361_v49 = vpack.c.bf16 %v1397_v37, %v1396_v42 }
 0x115   : > { %7691 = vmatprep.mubr.msk.f32.mxu1 %vm558_vm0, %v631_v45 }
 0x116   : > { %8327 = vmatprep.subr.msk.bf16.mxu1 %vm9257_vm11, %v8325_v46 }
 0x117   : > { %8330 = vmatpush3.bf16.xpose.msk.msra.mxu1 %vm9257_vm11, %v8325_v46 }
 0x118   : > { %8333 = vmatprep.subr.msk.bf16.mxu1 %vm9257_vm11, %v8331_v47 }
 0x11e   : > { %7692 = vmatmul.mubr.msk.f32.vlgmr.msra.gmra.mrb[2].mxu1 %vm558_vm0, %v7648_v43 }
 0x11f   : > { %8336 = vmatpush3.bf16.xpose.msk.msra.mxu1 %vm9257_vm11, %v8331_v47  ;;  %7698 = vmatprep.mubr.msk.f32.mxu1 %vm558_vm0, %v631_v45 }
 0x120   : > { %8351 = vmatprep.subr.msk.bf16.mxu1 %vm9257_vm11, %v8349_v48 }
 0x126   : > { %7699 = vmatmul.mubr.msk.f32.vlgmr.msra.gmra.mrb[4].mxu1 %vm558_vm0, %v7648_v43 }
 0x127   : > { %8354 = vmatpush3.bf16.xpose.msk.msra.mxu1 %vm9257_vm11, %v8349_v48  ;;  %7719 = vmatprep.mubr.msk.f32.mxu1 %vm558_vm0, %v631_v45 }
 0x128   : > { %8363 = vmatprep.subr.msk.bf16.mxu1 %vm9257_vm11, %v8361_v49 }
 0x12e   : > { %7720 = vmatmul.mubr.msk.f32.vlgmr.msra.gmra.mrb[6].mxu1 %vm558_vm0, %v7648_v43 }
 0x12f   : > { %8366 = vmatpush3.bf16.xpose.msk.msra.mxu1 %vm9257_vm11, %v8361_v49  ;;  %7733 = vmatprep.mubr.msk.f32.mxu1 %vm558_vm0, %v631_v45 }
 0x136   : > { %7734 = vmatmul.mubr.msk.f32.vlgmr.msra.gmra.mrb[8].mxu1 %vm558_vm0, %v7648_v43 }
 0x137   : > { %1833 = vmatprep.mubr.f32.mxu1 %v9031_v28 }
 0x1f1   : > { %v7693_v62 = vpop.f32.mrb[2].mxu1 }
 0x1f2   : > { %v886_v63 = vpop.f32.mrb[3].mxu1  ;;  %v896_v1 = vmul.f32 0.125, %v7693_v62 }
 0x1f3   : > { %v895_v0 = vmul.f32 0.125, %v886_v63 }
 0x1f4   : > { %v902_v4 = vsel %vm901_vm13, %v896_v1, -inf }
 0x1f5   : > { %v898_v2 = vsel %vm897_vm12, %v895_v0, -inf }
 0x1f6   : > { %899 = vmax.xlane.f32.xlu1 %v898_v2 }
 0x1f9   : > { %v7700_v3 = vpop.f32.mrb[4].mxu1 }
 0x1fa   : > { %v997_v5 = vpop.f32.mrb[5].mxu1  ;;  %903 = vmax.xlane.f32.xlu1 %v902_v4  ;;  %v1007_v7 = vmul.f32 0.125, %v7700_v3 }
 0x1fb   : > { %v1006_v6 = vmul.f32 0.125, %v997_v5 }
 0x1fc   : > { %v1011_v10 = vsel %vm901_vm13, %v1007_v7, -inf }
 0x1fd   : > { %v1008_v8 = vsel %vm897_vm12, %v1006_v6, -inf }
 0x1fe   : > { %1009 = vmax.xlane.f32.xlu0 %v1008_v8 }
 0x201   : > { %v7721_v9 = vpop.f32.mrb[6].mxu1 }
 0x202   : > { %v1285_v11 = vmul.f32 0.125, %v7721_v9  ;;  %v1275_v12 = vpop.f32.mrb[7].mxu1  ;;  %1012 = vmax.xlane.f32.xlu0 %v1011_v10 }
 0x203   : > { %v1284_v13 = vmul.f32 0.125, %v1275_v12 }
 0x204   : > { %v1289_v15 = vsel %vm901_vm13, %v1285_v11, -inf }
 0x205   : > { %1290 = vmax.xlane.f32.xlu1 %v1289_v15  ;;  %v1286_v16 = vsel %vm897_vm12, %v1284_v13, -inf }
 0x206   : > { %1287 = vmax.xlane.f32.xlu0 %v1286_v16 }
 0x209   : > { %v7735_v17 = vpop.f32.mrb[8].mxu1 }
 0x20a   : > { %v1480_v18 = vmul.f32 0.125, %v7735_v17  ;;  %v1470_v19 = vpop.f32.mrb[9].mxu1 }
 0x20b   : > { %v1479_v20 = vmul.f32 0.125, %v1470_v19 }
 0x20c   : > { %v1484_v21 = vsel %vm901_vm13, %v1480_v18, -inf }
 0x20d   : > { %1485 = vmax.xlane.f32.xlu1 %v1484_v21  ;;  %v1481_v22 = vsel %vm897_vm12, %v1479_v20, -inf }
 0x20e   : > { %1482 = vmax.xlane.f32.xlu0 %v1481_v22 }
 0x283   : > { %v900_v23 = vpop.xlane.xlu1 %899 }
 0x284   : > { %v905_v24 = vsub.f32 %v895_v0, %v900_v23 }
 0x286   : > { %v907_v35 = vmul.f32 1.442695, %v905_v24 }
 0x287   : > { %v904_v27 = vpop.xlane.xlu1 %903 }
 0x288   : > { %v906_v36 = vsub.f32 %v896_v1, %v904_v27 }
 0x28a   : > { %v909_v40 = vmul.f32 1.442695, %v906_v36 }
 0x28b   : > { %v1010_v33 = vpop.xlane.xlu0 %1009 }
 0x28c   : > { %v1014_v34 = vsub.f32 %v1006_v6, %v1010_v33 }
 0x28e   : > { %v1016_v37 = vmul.f32 1.442695, %v1014_v34 }
 0x28f   : > { %v1013_v38 = vpop.xlane.xlu0 %1012 }
 0x290   : > { %8872 = vpow2.f32 %v1016_v37  ;;  %v1015_v39 = vsub.f32 %v1007_v7, %v1013_v38  ;;  %v7686_v7 = vpop.f32.mrb[2].mxu0 }
 0x291   : > { %8874 = vpow2.f32 %v907_v35  ;;  %v797_v8 = vpop.f32.mrb[3].mxu0  ;;  %v1031_v9 = vmul.f32 %v7686_v7, %v9239_v30  ;;  %v1309_v12 = vmul.f32 %v7686_v7, %v9242_v31 }
 0x292   : > { %v1018_v41 = vmul.f32 1.442695, %v1015_v39  ;;  %v1291_v42 = vpop.xlane.xlu1 %1290  ;;  %v1030_v10 = vmul.f32 %v9239_v30, %v797_v8  ;;  %v921_v15 = vmul.f32 %v9236_v29, %v797_v8  ;;  %v1308_v16 = vmul.f32 %v9242_v31, %v797_v8 }
 0x293   : > { %v1293_v43 = vsub.f32 %v1285_v11, %v1291_v42  ;;  %v1288_v45 = vpop.xlane.xlu0 %1287  ;;  %v922_v11 = vmul.f32 %v7686_v7, %v9236_v29  ;;  %v1503_v17 = vmul.f32 %v9245_v32, %v797_v8 }
 0x294   : > { %8876 = vpow2.f32 %v1018_v41  ;;  %v1292_v46 = vsub.f32 %v1284_v13, %v1288_v45  ;;  %v1504_v13 = vmul.f32 %v7686_v7, %v9245_v32  ;;  %v8355_v21 = vpack.c.bf16 %v1309_v12, %v1308_v16 }
 0x295   : > { %8878 = vpow2.f32 %v909_v40  ;;  %v1296_v47 = vmul.f32 1.442695, %v1293_v43  ;;  %v8343_v19 = vpack.c.bf16 %v922_v11, %v921_v15 }
 0x296   : > { %v1294_v48 = vmul.f32 1.442695, %v1292_v46  ;;  %v8367_v22 = vpack.c.bf16 %v1504_v13, %v1503_v17 }
 0x298   : > { %8880 = vpow2.f32 %v1294_v48 }
 0x299   : > { %8882 = vpow2.f32 %v1296_v47 }
 0x29a   : > { %v9320_v49 = vpop.eup %8872  ;;  %v1486_v50 = vpop.xlane.xlu1 %1485 }
 0x29b   : > { %v1488_v51 = vsub.f32 %v1480_v18, %v1486_v50  ;;  %v1483_v52 = vpop.xlane.xlu0 %1482  ;;  %v1020_v53 = vsel %vm897_vm12, %v9320_v49, 0.0  ;;  %v8875_v54 = vpop.eup %8874  ;;  %v8337_v18 = vpack.c.bf16 %v1031_v9, %v1030_v10  ;;  %v1591_v50 = vld [vmem:[#allocation2] sm:$0xff] }
 0x29c   : > { %v1487_v55 = vsub.f32 %v1479_v20, %v1483_v52  ;;  %1021 = vadd.xlane.f32.xlu0 %v1020_v53  ;;  %v911_v60 = vsel %vm897_vm12, %v8875_v54, 0.0  ;;  %v6291_v20 = vld [vmem:[#allocation2 + $0x120] sm:$0xff] }
 0x29d   : > { %v1491_v56 = vmul.f32 1.442695, %v1488_v51  ;;  %8339 = vmatprep.subr.msk.bf16.mxu0 %vm9354_vm1, %v8337_v18  ;;  %v1592_v51 = vld [vmem:[#allocation2 + $0x8] sm:$0xff] }
 0x29e   : > { %v8877_v57 = vpop.eup %8876  ;;  %v1489_v58 = vmul.f32 1.442695, %v1487_v55  ;;  %8342 = vmatpush3.bf16.msk.msra.mxu0 %vm9354_vm1, %v8337_v18 }
 0x29f   : > { %8884 = vpow2.f32 %v1491_v56  ;;  %v1023_v59 = vsel %vm901_vm13, %v8877_v57, 0.0  ;;  %v9326_v61 = vpop.eup %8878  ;;  %8345 = vmatprep.subr.msk.bf16.mxu0 %vm9354_vm1, %v8343_v19 }
 0x2a0   : > { %8886 = vpow2.f32 %v1489_v58  ;;  %1024 = vadd.xlane.f32.xlu1 %v1023_v59  ;;  %912 = vadd.xlane.f32.xlu0 %v911_v60  ;;  %v914_v0 = vsel %vm901_vm13, %v9326_v61, 0.0  ;;  %v1594_v58 = vld [vmem:[#allocation2 + $0x18] sm:$0xff] }
 0x2a2   : > { %v9328_v62 = vpop.eup %8880 }
 0x2a3   : > { %v1298_v63 = vsel %vm897_vm12, %v9328_v62, 0.0  ;;  %v9334_v1 = vpop.eup %8882 }
 0x2a4   : > { %1299 = vadd.xlane.f32.xlu0 %v1298_v63  ;;  %915 = vadd.xlane.f32.xlu1 %v914_v0  ;;  %v1301_v2 = vsel %vm901_vm13, %v9334_v1, 0.0  ;;  %v1597_v0 = vld [vmem:[#allocation2 + $0x30] sm:$0xff] }
 0x2a8   : > { %1302 = vadd.xlane.f32.xlu1 %v1301_v2 }
 0x2a9   : > { %v9338_v3 = vpop.eup %8884 }
 0x2aa   : > { %v9340_v4 = vpop.eup %8886  ;;  %v1496_v5 = vsel %vm901_vm13, %v9338_v3, 0.0 }
 0x2ab   : > { %v1493_v6 = vsel %vm897_vm12, %v9340_v4, 0.0 }
 0x2ac   : > { %1494 = vadd.xlane.f32.xlu0 %v1493_v6  ;;  %1497 = vadd.xlane.f32.xlu1 %v1496_v5 }
 0x329   : > { %v1022_v23 = vpop.xlane.xlu0 %1021 }
 0x32a   : > { %8888 = vrcp.f32 %v1022_v23 }
 0x32d   : > { %v913_v24 = vpop.xlane.xlu0 %912  ;;  %v1025_v27 = vpop.xlane.xlu1 %1024 }
 0x32e   : > { %8890 = vrcp.f32 %v913_v24  ;;  %v1736_v24 = vld [vmem:[%s10790_s9 + $0x8] sm:$0xff] }
 0x32f   : > { %8892 = vrcp.f32 %v1025_v27  ;;  %v1738_v27 = vld [vmem:[%s10790_s9 + $0x18] sm:$0xff] }
 0x331   : > { %v916_v33 = vpop.xlane.xlu1 %915  ;;  %v1300_v34 = vpop.xlane.xlu0 %1299 }
 0x332   : > { %8894 = vrcp.f32 %v916_v33  ;;  %v8389_v33 = vpack.c.bf16 %v1738_v27, %v1736_v24  ;;  %v1876_v24 = vld [vmem:[%s10792_s11 + $0xd0] sm:$0xff]  ;;  %v1877_v27 = vld [vmem:[%s10792_s11 + $0xd8] sm:$0xff] }
 0x333   : > { %8896 = vrcp.f32 %v1300_v34  ;;  %v1735_v34 = vld [vmem:[%s10790_s9] sm:$0xff] }
 0x334   : > { %v8889_v35 = vpop.eup %8888  ;;  %8390 = vmatprep.subr.bf16.mxu1 %v8389_v33 }
 0x335   : > { %v1028_v36 = vmul.f32 %v8889_v35, %v9320_v49  ;;  %v1303_v41 = vpop.xlane.xlu1 %1302  ;;  %v1737_v35 = vld [vmem:[%s10790_s9 + $0x10] sm:$0xff] }
 0x336   : > { %8898 = vrcp.f32 %v1303_v41  ;;  %v1741_v41 = vld [vmem:[%s10790_s9 + $0x30] sm:$0xff] }
 0x337   : > { %7705 = vmatprep.mubr.msk.f32.mxu0 %vm897_vm12, %v1028_v36  ;;  %v8391_v36 = vpack.c.bf16 %v1737_v35, %v1735_v34  ;;  %v8425_v34 = vpack.c.bf16 %v1877_v27, %v1876_v24  ;;  %v1860_v35 = vld [vmem:[%s10792_s11 + $0x50] sm:$0xff]  ;;  %v1881_v24 = vld [vmem:[%s10792_s11 + $0xf8] sm:$0xff] }
 0x338   : > { %v8891_v37 = vpop.eup %8890 }
 0x339   : > { %v8893_v38 = vpop.eup %8892  ;;  %v919_v39 = vmul.f32 %v8891_v37, %v8875_v54  ;;  %v1495_v42 = vpop.xlane.xlu0 %1494  ;;  %v8373_v54 = vpack.c.bf16 %v1592_v51, %v1591_v50  ;;  %8392 = vmatpush1.bf16.msra.mxu1 %v8391_v36  ;;  %v1740_v37 = vld [vmem:[%s10790_s9 + $0x28] sm:$0xff]  ;;  %v1750_v51 = vld [vmem:[%s10790_s9 + $0x78] sm:$0xff] }
 0x33a   : > { %v1029_v40 = vmul.f32 %v8893_v38, %v8877_v57  ;;  %8900 = vrcp.f32 %v1495_v42  ;;  %v1498_v47 = vpop.xlane.xlu1 %1497  ;;  %v1593_v57 = vld [vmem:[#allocation2 + $0x10] sm:$0xff]  ;;  %v1742_v38 = vld [vmem:[%s10790_s9 + $0x38] sm:$0xff]  ;;  %v1748_v50 = vld [vmem:[%s10790_s9 + $0x68] sm:$0xff] }
 0x33b   : > { %8902 = vrcp.f32 %v1498_v47  ;;  %v8377_v60 = vpack.c.bf16 %v1594_v58, %v1593_v57  ;;  %v1743_v47 = vld [vmem:[%s10790_s9 + $0x40] sm:$0xff]  ;;  %v1867_v58 = vld [vmem:[%s10792_s11 + $0x88] sm:$0xff]  ;;  %v1861_v36 = vld [vmem:[%s10792_s11 + $0x58] sm:$0xff] }
 0x33c   : > { %7706 = vmatmul.mubr.msk.f32.vlgmr.msra.gmra.mrb[4].mxu0 %vm897_vm12, %v1029_v40  ;;  %v8895_v43 = vpop.eup %8894  ;;  %v1739_v40 = vld [vmem:[%s10790_s9 + $0x20] sm:$0xff] }
 0x33d   : > { %8348 = vmatpush3.bf16.msk.msra.mxu0 %vm9354_vm1, %v8343_v19  ;;  %7712 = vmatprep.mubr.msk.f32.mxu0 %vm897_vm12, %v919_v39  ;;  %v8897_v45 = vpop.eup %8896  ;;  %v920_v46 = vmul.f32 %v8895_v43, %v9326_v61  ;;  %v1595_v61 = vld [vmem:[#allocation2 + $0x20] sm:$0xff]  ;;  %v8393_v39 = vpack.c.bf16 %v1742_v38, %v1740_v37  ;;  %v8395_v42 = vpack.c.bf16 %v1741_v41, %v1739_v40  ;;  %v1744_v43 = vld [vmem:[%s10790_s9 + $0x48] sm:$0xff] }
 0x33e   : > { %8357 = vmatprep.subr.msk.bf16.mxu0 %vm9354_vm1, %v8355_v21  ;;  %v1306_v48 = vmul.f32 %v8897_v45, %v9328_v62  ;;  %v1596_v62 = vld [vmem:[#allocation2 + $0x28] sm:$0xff]  ;;  %v1746_v45 = vld [vmem:[%s10790_s9 + $0x58] sm:$0xff]  ;;  %v1866_v57 = vld [vmem:[%s10792_s11 + $0x80] sm:$0xff] }
 0x33f   : > { %v8381_v63 = vpack.c.bf16 %v1596_v62, %v1595_v61  ;;  %8394 = vmatprep.subr.bf16.mxu1 %v8393_v39  ;;  %v1851_v61 = vld [vmem:[%s10792_s11 + $0x8] sm:$0xff]  ;;  %v1868_v62 = vld [vmem:[%s10792_s11 + $0x90] sm:$0xff]  ;;  %v1878_v37 = vld [vmem:[%s10792_s11 + $0xe0] sm:$0xff]  ;;  %v8427_v39 = vpack.c.bf16 %v1861_v36, %v1860_v35  ;;  %v1754_v36 = vshrl.u32 %v525_v26, 7 }
 0x340   : > { %v8899_v49 = vpop.eup %8898  ;;  %8396 = vmatpush1.bf16.msra.mxu1 %v8395_v42  ;;  %v1879_v38 = vld [vmem:[%s10792_s11 + $0xe8] sm:$0xff] }
 0x341   : > { %v1307_v53 = vmul.f32 %v8899_v49, %v9334_v1  ;;  %v1598_v1 = vld [vmem:[#allocation2 + $0x38] sm:$0xff]  ;;  %v8429_v40 = vpack.c.bf16 %v1879_v38, %v1878_v37  ;;  %v9645_v37 = vsub.s32 0, %v1754_v36  ;;  %v1751_v38 = vld [vmem:[%s10791_s10] sm:$0x3]  ;;  %v6903_v26 = vld [vmem:[%s10785_s4 + $0x48] sm:$0xff] }
 0x342   : > { %v8385_v2 = vpack.c.bf16 %v1598_v1, %v1597_v0 }
 0x344   : > { %7713 = vmatmul.mubr.msk.f32.vlgmr.msra.gmra.mrb[4].mxu0 %vm897_vm12, %v920_v46  ;;  %v8901_v52 = vpop.eup %8900  ;;  %v8397_v46 = vpack.c.bf16 %v1746_v45, %v1744_v43 }
 0x345   : > { %8360 = vmatpush3.bf16.msk.msra.mxu0 %vm9354_vm1, %v8355_v21  ;;  %7726 = vmatprep.mubr.msk.f32.mxu0 %vm897_vm12, %v1306_v48  ;;  %v1501_v55 = vmul.f32 %v8901_v52, %v9340_v4  ;;  %v8903_v56 = vpop.eup %8902  ;;  %v1745_v48 = vld [vmem:[%s10790_s9 + $0x50] sm:$0xff]  ;;  %v8401_v52 = vpack.c.bf16 %v1750_v51, %v1748_v50  ;;  %v6875_v50 = vld [vmem:[%s10788_s7] ss:$0 sm:$0xff] }
 0x346   : > { %8369 = vmatprep.subr.msk.bf16.mxu0 %vm9354_vm1, %v8367_v22  ;;  %v1502_v59 = vmul.f32 %v8903_v56, %v9338_v3  ;;  %v6872_v3 = vld [vmem:[%s10787_s6] ss:$0 sm:$0xff]  ;;  %v8399_v49 = vpack.c.bf16 %v1745_v48, %v1743_v47  ;;  %8398 = vmatprep.subr.bf16.mxu1 %v8397_v46  ;;  %v9033_v56 = vmov 0.0|0.0  }
 0x348   : > { %8400 = vmatpush1.bf16.msra.mxu1 %v8399_v49 }
 0x349   : > { %8402 = vmatprep.subr.bf16.mxu1 %v8401_v52  ;;  %v6884_v52 = vld [vmem:[%s10783_s2 + $0x40] sm:$0xff] }
 0x34c   : > { %7727 = vmatmul.mubr.msk.f32.vlgmr.msra.gmra.mrb[4].mxu0 %vm897_vm12, %v1307_v53  ;;  %v1747_v53 = vld [vmem:[%s10790_s9 + $0x60] sm:$0xff] }
 0x34d   : > { %8372 = vmatpush3.bf16.msk.msra.mxu0 %vm9354_vm1, %v8367_v22  ;;  %7740 = vmatprep.mubr.msk.f32.mxu0 %vm897_vm12, %v1501_v55 }
 0x34e   : > { %8374 = vmatprep.subr.bf16.mxu0 %v8373_v54 }
 0x354   : > { %7741 = vmatmul.mubr.msk.f32.vlgmr.msra.gmra.mrb[4].mxu0 %vm897_vm12, %v1502_v59  ;;  %v1850_v59 = vld [vmem:[%s10792_s11] sm:$0xff] }
 0x355   : > { %8376 = vmatpush3.bf16.msra.mxu0 %v8373_v54  ;;  %v1749_v54 = vld [vmem:[%s10790_s9 + $0x70] sm:$0xff]  ;;  %v8407_v0 = vpack.c.bf16 %v1851_v61, %v1850_v59  ;;  %v6887_v61 = vld [vmem:[%s10783_s2 + $0x58] sm:$0xff] }
 0x356   : > { %8378 = vmatprep.subr.bf16.mxu0 %v8377_v60  ;;  %v8403_v55 = vpack.c.bf16 %v1749_v54, %v1747_v53  ;;  %v6885_v53 = vld [vmem:[%s10783_s2 + $0x48] sm:$0xff] }
 0x358   : > { %8404 = vmatpush1.bf16.msra.mxu1 %v8403_v55  ;;  %v6876_v55 = vld [vmem:[%s10789_s8] ss:$0 sm:$0xff] }
 0x359   : > { %8380 = vmatpush3.bf16.msra.mxu0 %v8377_v60  ;;  %8437 = vmatprep.subr.bf16.mxu1 %v9033_v56  ;;  %v8405_v60 = vpack.c.bf16 %v1867_v58, %v1866_v57  ;;  %v8438_v58 = vpack.c.bf16 %v6885_v53, %v6884_v52 }
 0x35a   : > { %8382 = vmatprep.subr.bf16.mxu0 %v8381_v63 }
 0x35d   : > { %8384 = vmatpush3.bf16.msra.mxu0 %v8381_v63  ;;  %v1869_v63 = vld [vmem:[%s10792_s11 + $0x98] sm:$0xff] }
 0x35e   : > { %8386 = vmatprep.subr.bf16.mxu0 %v8385_v2  ;;  %v8409_v1 = vpack.c.bf16 %v1869_v63, %v1868_v62  ;;  %v6888_v63 = vld [vmem:[%s10783_s2 + $0x60] sm:$0xff] }
 0x361   : > { %8388 = vmatpush3.bf16.msra.mxu0 %v8385_v2  ;;  %v1852_v2 = vld [vmem:[%s10792_s11 + $0x10] sm:$0xff] }
 0x362   : > { %8406 = vmatprep.subr.bf16.mxu0 %v8405_v60 }
 0x427   : > { %v7742_v4 = vpop.f32.mrb[4].mxu0 }
 0x428   : > { %v1580_v5 = vpop.f32.mrb[5].mxu0 }
 0x429   : > { %7759 = vmatprep.mubr.msk.f32.mxu0 %vm558_vm0, %v1580_v5  ;;  %v1870_v5 = vld [vmem:[%s10792_s11 + $0xa0] sm:$0xff] }
 0x42a   : > { %7760 = vmatmul.mubr.msk.f32.vlgmr.msra.gmra.mrb[6].mxu0 %vm558_vm0, %v7742_v4  ;;  %v1853_v4 = vld [vmem:[%s10792_s11 + $0x18] sm:$0xff] }
 0x42b   : > { %8408 = vmatpush3.bf16.msra.mxu0 %v8407_v0  ;;  %v6889_v0 = vld [vmem:[%s10783_s2 + $0x68] sm:$0xff] }
 0x42c   : > { %8410 = vmatprep.subr.bf16.mxu0 %v8409_v1  ;;  %v8444_v1 = vpack.c.bf16 %v6889_v0, %v6888_v63  ;;  %v6908_v0 = vld [vmem:[%s10785_s4 + $0x70] sm:$0xff] }
 0x4fd   : > { %v7761_v6 = vpop.f32.mrb[6].mxu0 }
 0x4fe   : > { %v1684_v7 = vadd.f32 %v7761_v6, %v6872_v3  ;;  %v1678_v8 = vpop.f32.mrb[7].mxu0  ;;  %v8411_v6 = vpack.c.bf16 %v1853_v4, %v1852_v2  ;;  %v6890_v2 = vld [vmem:[%s10783_s2 + $0x70] sm:$0xff]  ;;  %v6891_v4 = vld [vmem:[%s10783_s2 + $0x78] sm:$0xff] }
 0x4ff   : > { %v1679_v9 = vadd.f32 %v6872_v3, %v1678_v8  ;;  %v1871_v3 = vld [vmem:[%s10792_s11 + $0xa8] sm:$0xff]  ;;  %v1854_v8 = vld [vmem:[%s10792_s11 + $0x20] sm:$0xff] }
 0x500   : > { %v1688_v10 = vadd.f32 %v1684_v7, %v9226_v25  ;;  %v8413_v7 = vpack.c.bf16 %v1871_v3, %v1870_v5  ;;  %8412 = vmatpush3.bf16.msra.mxu0 %v8411_v6  ;;  %v8447_v5 = vpack.c.bf16 %v6891_v4, %v6890_v2  ;;  %v6893_v3 = vld [vmem:[%s10784_s3 + $0x40] sm:$0xff]  ;;  %v6894_v6 = vld [vmem:[%s10784_s3 + $0x48] sm:$0xff] }
 0x501   : > { %v1687_v11 = vadd.f32 %v1679_v9, %v9201_v14  ;;  %v1855_v9 = vld [vmem:[%s10792_s11 + $0x28] sm:$0xff] }
 0x502   : > { %v1693_v12 = vsel %vm1692_vm2, %v1688_v10, 0.0  ;;  %8414 = vmatprep.subr.bf16.mxu0 %v8413_v7  ;;  %v9592_v7 = vld [vmem:[%s520_s30] sm:$0x7f] }
 0x503   : > { %1694 = vadd.xlane.f32.xlu1 %v1693_v12  ;;  %v1689_v13 = vsel %vm558_vm0, %v1687_v11, 0.0  ;;  %v8415_v12 = vpack.c.bf16 %v1855_v9, %v1854_v8  ;;  %v8450_v8 = vpack.c.bf16 %v6894_v6, %v6893_v3  ;;  %v6895_v9 = vld [vmem:[%s10784_s3 + $0x50] sm:$0xff] }
 0x504   : > { %1690 = vadd.xlane.f32.xlu0 %v1689_v13 }
 0x505   : > { %8416 = vmatpush3.bf16.msra.mxu0 %v8415_v12  ;;  %v6897_v12 = vld [vmem:[%s10784_s3 + $0x60] sm:$0xff] }
 0x590   : > { %v1695_v15 = vpop.xlane.xlu1 %1694 }
 0x591   : > { %v1698_v16 = vmul.f32 0.015625, %v1695_v15  ;;  %v1691_v17 = vpop.xlane.xlu0 %1690  ;;  %v1856_v15 = vld [vmem:[%s10792_s11 + $0x30] sm:$0xff] }
 0x592   : > { %v1697_v18 = vmul.f32 0.015625, %v1691_v17  ;;  %v1874_v17 = vld [vmem:[%s10792_s11 + $0xc0] sm:$0xff] }
 0x593   : > { %v9397_v19 = vsub.f32 %v1688_v10, %v1698_v16  ;;  %v1872_v10 = vld [vmem:[%s10792_s11 + $0xb0] sm:$0xff]  ;;  %v1857_v16 = vld [vmem:[%s10792_s11 + $0x38] sm:$0xff] }
 0x594   : > { %v9399_v21 = vsub.f32 %v1687_v11, %v1697_v18  ;;  %v1873_v11 = vld [vmem:[%s10792_s11 + $0xb8] sm:$0xff]  ;;  %v1875_v18 = vld [vmem:[%s10792_s11 + $0xc8] sm:$0xff] }
 0x595   : > { %v1702_v22 = vmul.f32 %v9397_v19, %v9397_v19  ;;  %v8417_v13 = vpack.c.bf16 %v1873_v11, %v1872_v10  ;;  %v6896_v10 = vld [vmem:[%s10784_s3 + $0x58] sm:$0xff] }
 0x596   : > { %v1701_v14 = vmul.f32 %v9399_v21, %v9399_v21  ;;  %v8453_v11 = vpack.c.bf16 %v6896_v10, %v6895_v9 }
 0x597   : > { %v1706_v25 = vsel %vm1692_vm2, %v1702_v22, 0.0  ;;  %v8419_v22 = vpack.c.bf16 %v1857_v16, %v1856_v15  ;;  %8418 = vmatprep.subr.bf16.mxu0 %v8417_v13  ;;  %v6898_v13 = vld [vmem:[%s10784_s3 + $0x68] sm:$0xff]  ;;  %v6899_v16 = vld [vmem:[%s10784_s3 + $0x70] sm:$0xff] }
 0x598   : > { %1707 = vadd.xlane.f32.xlu1 %v1706_v25  ;;  %v1703_v23 = vsel %vm558_vm0, %v1701_v14, 0.0  ;;  %v8421_v14 = vpack.c.bf16 %v1875_v18, %v1874_v17  ;;  %v1858_v25 = vld [vmem:[%s10792_s11 + $0x40] sm:$0xff]  ;;  %v8456_v15 = vpack.c.bf16 %v6898_v13, %v6897_v12  ;;  %v6900_v17 = vld [vmem:[%s10784_s3 + $0x78] sm:$0xff] }
 0x599   : > { %1704 = vadd.xlane.f32.xlu0 %v1703_v23  ;;  %v1859_v23 = vld [vmem:[%s10792_s11 + $0x48] sm:$0xff]  ;;  %8420 = vmatpush3.bf16.msra.mxu0 %v8419_v22  ;;  %v8459_v18 = vpack.c.bf16 %v6900_v17, %v6899_v16  ;;  %v1862_v22 = vld [vmem:[%s10792_s11 + $0x60] sm:$0xff] }
 0x59a   : > { %v8423_v33 = vpack.c.bf16 %v1859_v23, %v1858_v25  ;;  %8422 = vmatprep.subr.bf16.mxu0 %v8421_v14  ;;  %v1863_v14 = vld [vmem:[%s10792_s11 + $0x68] sm:$0xff]  ;;  %v1880_v23 = vld [vmem:[%s10792_s11 + $0xf0] sm:$0xff] }
 0x59b   : > { %v8431_v25 = vpack.c.bf16 %v1863_v14, %v1862_v22  ;;  %v8433_v27 = vpack.c.bf16 %v1881_v24, %v1880_v23 }
 0x59d   : > { %8424 = vmatpush3.bf16.msra.mxu0 %v8423_v33  ;;  %v1864_v33 = vld [vmem:[%s10792_s11 + $0x70] sm:$0xff] }
 0x59e   : > { %8426 = vmatprep.subr.bf16.mxu0 %v8425_v34  ;;  %v1865_v34 = vld [vmem:[%s10792_s11 + $0x78] sm:$0xff] }
 0x59f   : > { %v8435_v35 = vpack.c.bf16 %v1865_v34, %v1864_v33 }
 0x5a1   : > { %8428 = vmatpush3.bf16.msra.mxu0 %v8427_v39  ;;  %v9650_v39 = vsub.s32 1, %v1754_v36 }
 0x5a2   : > { %8430 = vmatprep.subr.bf16.mxu0 %v8429_v40  ;;  %v1756_v40 = vrot.slane %v1751_v38, %v9645_v37 }
 0x5a5   : > { %8432 = vmatpush3.bf16.msra.mxu0 %v8431_v25 }
 0x5a6   : > { %8434 = vmatprep.subr.bf16.mxu0 %v8433_v27 }
 0x5a9   : > { %8436 = vmatpush3.bf16.msra.mxu0 %v8435_v35 }
 0x5aa   : > { %8461 = vmatprep.subr.bf16.mxu0 %v9033_v56 }
 0x625   : > { %v1708_v41 = vpop.xlane.xlu1 %1707 }
 0x626   : > { %v1710_v42 = vmul.f32 0.015625, %v1708_v41  ;;  %v1705_v43 = vpop.xlane.xlu0 %1704  ;;  %v1760_v41 = vrot.slane %v1751_v38, %v9650_v39 }
 0x627   : > { %v1709_v45 = vmul.f32 0.015625, %v1705_v43 }
 0x628   : > { %v1712_v46 = vadd.f32 1e-05, %v1710_v42 }
 0x629   : > { %v1711_v47 = vadd.f32 1e-05, %v1709_v45 }
 0x62a   : > { %8904 = vrsqrt.f32 %v1712_v46  ;;  %v6902_v46 = vld [vmem:[%s10785_s4 + $0x40] sm:$0xff] }
 0x62b   : > { %8906 = vrsqrt.f32 %v1711_v47 }
 0x634   : > { %v8905_v48 = vpop.eup %8904 }
 0x635   : > { %v8907_v49 = vpop.eup %8906  ;;  %v1716_v54 = vmul.f32 %v8905_v48, %v9397_v19 }
 0x636   : > { %v1715_v51 = vmul.f32 %v8907_v49, %v9399_v21  ;;  %v6886_v21 = vld [vmem:[%s10783_s2 + $0x50] sm:$0xff] }
 0x637   : > { %v1725_v60 = vmul.f32 %v6875_v50, %v1716_v54  ;;  %v8441_v19 = vpack.c.bf16 %v6887_v61, %v6886_v21  ;;  %v6904_v54 = vld [vmem:[%s10785_s4 + $0x50] sm:$0xff]  ;;  %v6906_v61 = vld [vmem:[%s10785_s4 + $0x60] sm:$0xff] }
 0x638   : > { %v1724_v57 = vmul.f32 %v6875_v50, %v1715_v51  ;;  %v8462_v50 = vpack.c.bf16 %v6903_v26, %v6902_v46 }
 0x639   : > { %v9560_v62 = vadd.f32 %v6876_v55, %v1725_v60 }
 0x63a   : > { %v9548_v59 = vadd.f32 %v6876_v55, %v1724_v57  ;;  %v6905_v55 = vld [vmem:[%s10785_s4 + $0x58] sm:$0xff] }
 0x63b   : > { %v8465_v60 = vpack.c.bf16 %v6905_v55, %v6904_v54 }
 0x63c   : > { %6877 = vmatmul.mubr.msk.f32.vlgmr.msra.gmra.mrb[10].mxu1 %vm558_vm0, %v9548_v59 }
 0x63d   : > { %8439 = vmatpush3.bf16.msra.mxu1 %v8438_v58  ;;  %1839 = vmatprep.mubr.f32.mxu1 %v9031_v28 }
 0x63e   : > { %8440 = vmatprep.subr.bf16.mxu1 %v9033_v56 }
 0x640   : > { %6878 = vmatmul.mubr.msk.f32.gmra.mrb[12].mxu1 %vm558_vm0, %v9560_v62 }
 0x641   : > { %8442 = vmatpush3.bf16.msra.mxu1 %v8441_v19  ;;  %7778 = vmatprep.mubr.msk.f32.mxu1 %vm9034_vm3, %v9031_v28  ;;  %v6907_v19 = vld [vmem:[%s10785_s4 + $0x68] sm:$0xff] }
 0x642   : > { %8443 = vmatprep.subr.bf16.mxu1 %v9033_v56  ;;  %v8468_v63 = vpack.c.bf16 %v6907_v19, %v6906_v61  ;;  %v6879_v19 = vld [vmem:[%s10793_s12] ss:$0 sm:$0xff] }
 0x645   : > { %8445 = vmatpush3.bf16.msra.mxu1 %v8444_v1  ;;  %v6909_v1 = vld [vmem:[%s10785_s4 + $0x78] sm:$0xff] }
 0x646   : > { %8446 = vmatprep.subr.bf16.mxu1 %v9033_v56  ;;  %v8471_v4 = vpack.c.bf16 %v6909_v1, %v6908_v0 }
 0x649   : > { %8448 = vmatpush3.bf16.msra.mxu1 %v8447_v5 }
 0x64a   : > { %8449 = vmatprep.subr.bf16.mxu1 %v9033_v56 }
 0x64c   : > { %7779 = vmatmul.mubr.msk.f32.vlgmr.msra.gmra.mrb[14].mxu1 %vm558_vm0, %v9592_v7 }
 0x64d   : > { %8451 = vmatpush3.bf16.msra.mxu1 %v8450_v8  ;;  %7797 = vmatprep.mubr.msk.f32.mxu1 %vm9034_vm3, %v9031_v28 }
 0x64e   : > { %8452 = vmatprep.subr.bf16.mxu1 %v9033_v56 }
 0x651   : > { %8454 = vmatpush3.bf16.msra.mxu1 %v8453_v11 }
 0x652   : > { %8455 = vmatprep.subr.bf16.mxu1 %v9033_v56 }
 0x655   : > { %8457 = vmatpush3.bf16.msra.mxu1 %v8456_v15 }
 0x656   : > { %8458 = vmatprep.subr.bf16.mxu1 %v9033_v56 }
 0x659   : > { %8460 = vmatpush3.bf16.msra.mxu1 %v8459_v18 }
 0x65a   : > { %7819 = vmatprep.subr.mxu1 %v9031_v28 }
 0x65c   : > { %7798 = vmatmul.mubr.msk.f32.vlgmr.msra.gmra.mrb[16].mxu1 %vm558_vm0, %v9592_v7 }
 0x65d   : > { %7821 = vmatprep.mubr.msk.f32.mxu1 %vm9034_vm3, %v9031_v28 }
 0x70f   : > { %v1835_v42 = vpop.f32.mrb[10].mxu1 }
 0x710   : > { %v1836_v43 = vadd.f32 %v1835_v42, %v1756_v40  ;;  %v1837_v45 = vpop.f32.mrb[11].mxu1 }
 0x711   : > { %v1838_v47 = vadd.f32 %v1837_v45, %v1760_v41 }
 0x712   : > { %v1846_v51 = vmax.f32 %v1836_v43, 0.0 }
 0x713   : > { %v1847_v48 = vmax.f32 %v1838_v47, 0.0  ;;  %v1841_v49 = vpop.f32.mrb[12].mxu1 }
 0x714   : > { %v1842_v52 = vadd.f32 %v1841_v49, %v1756_v40  ;;  %v1843_v53 = vpop.f32.mrb[13].mxu1 }
 0x715   : > { %v1844_v57 = vadd.f32 %v1843_v53, %v1760_v41  ;;  %1953 = vmatprep.mubr.f32.mxu0 %v1847_v48 }
 0x716   : > { %1954 = vmatmul.mubr.f32.vlgmr.msra.gmra.mrb[8].mxu0 %v1846_v51  ;;  %v1848_v21 = vmax.f32 %v1842_v52, 0.0 }
 0x717   : > { %v1849_v58 = vmax.f32 %v1844_v57, 0.0  ;;  %8463 = vmatpush3.bf16.msra.mxu0 %v8462_v50 }
 0x718   : > { %8464 = vmatprep.subr.bf16.mxu0 %v9033_v56 }
 0x719   : > { %1958 = vmatprep.mubr.f32.mxu0 %v1849_v58 }
 0x71a   : > { %1959 = vmatmul.mubr.f32.gmra.mrb[10].mxu0 %v1848_v21 }
 0x71b   : > { %8466 = vmatpush3.bf16.msra.mxu0 %v8465_v60  ;;  %7816 = vmatprep.mubr.msk.f32.mxu0 %vm9034_vm3, %v9031_v28 }
 0x71c   : > { %8467 = vmatprep.subr.bf16.mxu0 %v9033_v56 }
 0x71f   : > { %v2090_v2 = vpop.f32.mrb[14].mxu1  ;;  %8469 = vmatpush3.bf16.msra.mxu0 %v8468_v63 }
 0x720   : > { %v7780_v5 = vpop.f32.mrb[15].mxu1  ;;  %8470 = vmatprep.subr.bf16.mxu0 %v9033_v56 }
 0x723   : > { %8472 = vmatpush3.bf16.msra.mxu0 %v8471_v4 }
 0x724   : > { %7839 = vmatprep.subr.mxu0 %v9031_v28 }
 0x726   : > { %7817 = vmatmul.mubr.msk.f32.vlgmr.msra.gmra.mrb[12].mxu0 %vm558_vm0, %v9592_v7 }
 0x727   : > { %7841 = vmatprep.mubr.msk.f32.mxu0 %vm9034_vm3, %v9031_v28 }
 0x72f   : > { %v2169_v3 = vpop.f32.mrb[16].mxu1 }
 0x730   : > { %v2252_v6 = vmul.f32 %v9236_v29, %v2169_v3  ;;  %v2584_v8 = vmul.f32 %v9242_v31, %v2169_v3  ;;  %v7799_v9 = vpop.f32.mrb[17].mxu1  ;;  %v2343_v10 = vmul.f32 %v9239_v30, %v2169_v3  ;;  %v2748_v11 = vmul.f32 %v9245_v32, %v2169_v3 }
 0x732   : > { %7820 = vmatpush3.xpose.msk.msra.mxu1 %vm558_vm0, %v2252_v6  ;;  %7840 = vmatpush3.xpose.msk.msra.mxu0 %vm558_vm0, %v2584_v8 }
 0x733   : > { %7824 = vmatprep.subr.mxu1 %v9031_v28  ;;  %7849 = vmatprep.subr.mxu0 %v9031_v28 }
 0x735   : > { %7822 = vmatmul.mubr.msk.f32.vlgmr.msra.gmra.mrb[18].mxu1 %vm558_vm0, %v2090_v2  ;;  %7842 = vmatmul.mubr.msk.f32.vlgmr.msra.gmra.mrb[14].mxu0 %vm558_vm0, %v2090_v2 }
 0x736   : > { %7825 = vmatpush3.xpose.msk.msra.mxu1 %vm558_vm0, %v2343_v10  ;;  %7850 = vmatpush3.xpose.msk.msra.mxu0 %vm558_vm0, %v2748_v11 }
 0x737   : > { %7826 = vmatprep.mubr.msk.f32.mxu1 %vm9034_vm3, %v9031_v28  ;;  %7851 = vmatprep.mubr.msk.f32.mxu0 %vm9034_vm3, %v9031_v28 }
 0x738   : > { %7829 = vmatprep.subr.mxu1 %v9031_v28  ;;  %8473 = vmatprep.subr.bf16.mxu0 %v9033_v56 }
 0x739   : > { %7827 = vmatmul.mubr.msk.f32.vlgmr.msra.gmra.mrb[20].mxu1 %vm558_vm0, %v2090_v2  ;;  %7852 = vmatmul.mubr.msk.f32.vlgmr.msra.gmra.mrb[16].mxu0 %vm558_vm0, %v2090_v2 }
 0x73a   : > { %7831 = vmatprep.mubr.msk.f32.mxu1 %vm9034_vm3, %v9031_v28  ;;  %7875 = vmatprep.mubr.msk.f32.mxu0 %vm9034_vm3, %v9031_v28 }
 0x7e9   : > { %v7317_v12 = vpop.f32.mrb[8].mxu0 }
 0x7ea   : > { %v7318_v13 = vpop.f32.mrb[9].mxu0 }
 0x7eb   : > { %v7319_v15 = vadd.f32 %v7318_v13, %v7317_v12 }
 0x7ed   : > { %v7320_v16 = vpop.f32.mrb[10].mxu0  ;;  %v1956_v4 = vadd.f32 %v7319_v15, %v6879_v19 }
 0x7ee   : > { %v7321_v17 = vpop.f32.mrb[11].mxu0 }
 0x7ef   : > { %v7322_v18 = vadd.f32 %v7321_v17, %v7320_v16  ;;  %v1964_v10 = vadd.f32 %v1956_v4, %v9548_v59 }
 0x7f1   : > { %v1961_v0 = vadd.f32 %v7322_v18, %v6879_v19  ;;  %v1966_v12 = vsel %vm558_vm0, %v1964_v10, 0.0 }
 0x7f3   : > { %v9729_v6 = vadd.f32 %v1961_v0, %v9560_v62 }
 0x7f5   : > { %v1969_v11 = vsel %vm1692_vm2, %v9729_v6, 0.0 }
 0x7f9   : > { %v9712_v22 = vpop.f32.mrb[12].mxu0 }
 0x7fa   : > { %v2429_v14 = vmul.f32 %v9239_v30, %v9712_v22  ;;  %v7818_v25 = vpop.f32.mrb[13].mxu0  ;;  %v2342_v59 = vmul.f32 %v9236_v29, %v9712_v22 }
 0x7fc   : > { %7830 = vmatpush3.msk.msra.mxu1 %vm2434_vm4, %v2429_v14 }
 0x7fd   : > { %7834 = vmatprep.subr.mxu1 %v9031_v28 }
 0x808   : > { %v2325_v23 = vpop.f32.mrb[18].mxu1  ;;  %v2654_v24 = vpop.f32.mrb[14].mxu0 }
 0x809   : > { %v2329_v27 = vmul.f32 0.125, %v2325_v23  ;;  %v7823_v33 = vpop.f32.mrb[19].mxu1  ;;  %v7843_v34 = vpop.f32.mrb[15].mxu0  ;;  %v2658_v45 = vmul.f32 0.125, %v2654_v24 }
 0x80b   : > { %v2331_v35 = vsel %vm2330_vm5, %v2329_v27, -inf  ;;  %v2659_v47 = vsel %vm2330_vm5, %v2658_v45, -inf }
 0x80c   : > { %2332 = vmax.xlane.f32.xlu1 %v2331_v35  ;;  %v2413_v36 = vpop.f32.mrb[20].mxu1  ;;  %v2818_v38 = vpop.f32.mrb[16].mxu0  ;;  %v2670_v35 = vmul.f32 %v9242_v31, %v9712_v22 }
 0x80d   : > { %v2417_v40 = vmul.f32 0.125, %v2413_v36  ;;  %v2822_v41 = vmul.f32 0.125, %v2818_v38  ;;  %v7828_v42 = vpop.f32.mrb[21].mxu1  ;;  %v7853_v43 = vpop.f32.mrb[17].mxu0 }
 0x80e   : > { %v2913_v42 = vld [vmem:[#allocation2 + $0x40] sm:$0xff]  ;;  %v2914_v43 = vld [vmem:[#allocation2 + $0x48] sm:$0xff] }
 0x80f   : > { %v2418_v46 = vsel %vm2330_vm5, %v2417_v40, -inf  ;;  %v2823_v26 = vsel %vm2330_vm5, %v2822_v41, -inf }
 0x810   : > { %2419 = vmax.xlane.f32.xlu0 %v2418_v46  ;;  %2824 = vmax.xlane.f32.xlu1 %v2823_v26  ;;  %v8474_v46 = vpack.c.bf16 %v2914_v43, %v2913_v42  ;;  %v2916_v26 = vld [vmem:[#allocation2 + $0x58] sm:$0xff] }
 0x812   : > { %8475 = vmatpush3.bf16.msra.mxu0 %v8474_v46 }
 0x813   : > { %8476 = vmatprep.subr.bf16.mxu0 %v9033_v56 }
 0x814   : > { %2660 = vmax.xlane.f32.xlu0 %v2659_v47 }
 0x899   : > { %v2333_v48 = vpop.xlane.xlu1 %2332 }
 0x89a   : > { %v2334_v49 = vsub.f32 %v2329_v27, %v2333_v48 }
 0x89c   : > { %v2335_v50 = vmul.f32 1.442695, %v2334_v49  ;;  %v2918_v49 = vld [vmem:[#allocation2 + $0x68] sm:$0xff] }
 0x89d   : > { %v2420_v51 = vpop.xlane.xlu0 %2419  ;;  %v2825_v52 = vpop.xlane.xlu1 %2824 }
 0x89e   : > { %8908 = vpow2.f32 %v2335_v50  ;;  %v2421_v53 = vsub.f32 %v2417_v40, %v2420_v51  ;;  %v2826_v54 = vsub.f32 %v2822_v41, %v2825_v52  ;;  %v2834_v40 = vmul.f32 %v9245_v32, %v9712_v22  ;;  %v2917_v22 = vld [vmem:[#allocation2 + $0x60] sm:$0xff]  ;;  %v2919_v51 = vld [vmem:[#allocation2 + $0x70] sm:$0xff]  ;;  %v2920_v52 = vld [vmem:[#allocation2 + $0x78] sm:$0xff] }
 0x89f   : > { %v8480_v50 = vpack.c.bf16 %v2918_v49, %v2917_v22  ;;  %v6936_v49 = vld [vmem:[%s10783_s2 + $0x90] sm:$0xff] }
 0x8a0   : > { %v2422_v55 = vmul.f32 1.442695, %v2421_v53  ;;  %v2827_v57 = vmul.f32 1.442695, %v2826_v54  ;;  %v8483_v53 = vpack.c.bf16 %v2920_v52, %v2919_v51  ;;  %v6938_v52 = vld [vmem:[%s10783_s2 + $0xa0] sm:$0xff] }
 0x8a1   : > { %v2661_v58 = vpop.xlane.xlu0 %2660 }
 0x8a2   : > { %8910 = vpow2.f32 %v2422_v55  ;;  %v2662_v60 = vsub.f32 %v2658_v45, %v2661_v58  ;;  %v2915_v45 = vld [vmem:[#allocation2 + $0x50] sm:$0xff] }
 0x8a3   : > { %8912 = vpow2.f32 %v2827_v57  ;;  %v8477_v48 = vpack.c.bf16 %v2916_v26, %v2915_v45 }
 0x8a4   : > { %v2663_v21 = vmul.f32 1.442695, %v2662_v60 }
 0x8a5   : > { %8478 = vmatpush3.bf16.msra.mxu0 %v8477_v48  ;;  %v6935_v48 = vld [vmem:[%s10783_s2 + $0x88] sm:$0xff] }
 0x8a6   : > { %8914 = vpow2.f32 %v2663_v21  ;;  %8479 = vmatprep.subr.bf16.mxu0 %v9033_v56 }
 0x8a8   : > { %v8909_v61 = vpop.eup %8908 }
 0x8a9   : > { %v2337_v63 = vsel %vm2330_vm5, %v8909_v61, 0.0  ;;  %8481 = vmatpush3.bf16.msra.mxu0 %v8480_v50  ;;  %v6937_v50 = vld [vmem:[%s10783_s2 + $0x98] sm:$0xff] }
 0x8aa   : > { %2338 = vadd.xlane.f32.xlu1 %v2337_v63  ;;  %8482 = vmatprep.subr.bf16.mxu0 %v9033_v56  ;;  %v6883_v63 = vld [vmem:[%s10789_s8 + $0x1] ss:$0 sm:$0xff]  ;;  %v8489_v51 = vpack.c.bf16 %v6937_v50, %v6936_v49 }
 0x8ac   : > { %v8911_v1 = vpop.eup %8910 }
 0x8ad   : > { %v8913_v2 = vpop.eup %8912  ;;  %v2424_v5 = vsel %vm2330_vm5, %v8911_v1, 0.0  ;;  %8484 = vmatpush3.bf16.msra.mxu0 %v8483_v53  ;;  %v6939_v53 = vld [vmem:[%s10783_s2 + $0xa8] sm:$0xff] }
 0x8ae   : > { %2425 = vadd.xlane.f32.xlu0 %v2424_v5  ;;  %v2829_v3 = vsel %vm2330_vm5, %v8913_v2, 0.0  ;;  %v6928_v5 = vld [vmem:[%s10787_s6 + $0x1] ss:$0 sm:$0xff] }
 0x8af   : > { %2830 = vadd.xlane.f32.xlu1 %v2829_v3 }
 0x8b0   : > { %v8915_v8 = vpop.eup %8914 }
 0x8b1   : > { %v2665_v9 = vsel %vm2330_vm5, %v8915_v8, 0.0 }
 0x8b2   : > { %2666 = vadd.xlane.f32.xlu0 %v2665_v9 }
 0x8b3   : > { %1970 = vadd.xlane.f32.xlu1 %v1969_v11 }
 0x8b6   : > { %1967 = vadd.xlane.f32.xlu0 %v1966_v12 }
 0x937   : > { %v2339_v15 = vpop.xlane.xlu1 %2338 }
 0x93b   : > { %v2426_v13 = vpop.xlane.xlu0 %2425 }
 0x93c   : > { %8916 = vrcp.f32 %v2426_v13  ;;  %v2831_v34 = vpop.xlane.xlu1 %2830 }
 0x93d   : > { %8918 = vrcp.f32 %v2339_v15 }
 0x93f   : > { %v2667_v16 = vpop.xlane.xlu0 %2666 }
 0x940   : > { %8920 = vrcp.f32 %v2667_v16  ;;  %v1971_v54 = vpop.xlane.xlu1 %1970  ;;  %v6943_v16 = vld [vmem:[%s10784_s3 + $0x80] sm:$0xff] }
 0x941   : > { %8922 = vrcp.f32 %v2831_v34  ;;  %v1973_v4 = vmul.f32 0.015625, %v1971_v54  ;;  %v8492_v54 = vpack.c.bf16 %v6939_v53, %v6938_v52 }
 0x943   : > { %v1968_v62 = vpop.xlane.xlu0 %1967 }
 0x944   : > { %v1972_v17 = vmul.f32 0.015625, %v1968_v62 }
 0x946   : > { %v8917_v18 = vpop.eup %8916  ;;  %v1974_v14 = vsub.f32 %v1964_v10, %v1972_v17  ;;  %v6946_v17 = vld [vmem:[%s10784_s3 + $0x98] sm:$0xff] }
 0x947   : > { %v2428_v25 = vmul.f32 %v8917_v18, %v8911_v1  ;;  %v8919_v27 = vpop.eup %8918 }
 0x948   : > { %v1976_v23 = vmul.f32 %v1974_v14, %v1974_v14  ;;  %v2341_v33 = vmul.f32 %v8919_v27, %v8909_v61  ;;  %v6881_v61 = vld [vmem:[%s10788_s7 + $0x1] ss:$0 sm:$0xff] }
 0x949   : > { %7832 = vmatmul.mubr.msk.f32.vlgmr.msra.gmra.mrb[22].mxu1 %vm2430_vm6, %v2428_v25  ;;  %v6948_v25 = vld [vmem:[%s10784_s3 + $0xa8] sm:$0xff] }
 0x94a   : > { %7835 = vmatpush3.msk.msra.mxu1 %vm2434_vm4, %v2342_v59  ;;  %v1978_v24 = vsel %vm558_vm0, %v1976_v23, 0.0  ;;  %7836 = vmatprep.mubr.msk.f32.mxu1 %vm9034_vm3, %v9031_v28  ;;  %v8921_v36 = vpop.eup %8920  ;;  %v6949_v23 = vld [vmem:[%s10784_s3 + $0xb0] sm:$0xff] }
 0x94b   : > { %1979 = vadd.xlane.f32.xlu1 %v1978_v24  ;;  %7844 = vmatprep.subr.mxu1 %v9031_v28  ;;  %v2669_v38 = vmul.f32 %v8921_v36, %v8915_v8  ;;  %v8923_v41 = vpop.eup %8922  ;;  %v1975_v8 = vsub.f32 %v9729_v6, %v1973_v4  ;;  %v6944_v6 = vld [vmem:[%s10784_s3 + $0x88] sm:$0xff]  ;;  %v6950_v24 = vld [vmem:[%s10784_s3 + $0xb8] sm:$0xff]  ;;  %v6931_v4 = vld [vmem:[%s10788_s7 + $0x2] ss:$0 sm:$0xff] }
 0x94c   : > { %v2833_v47 = vmul.f32 %v8923_v41, %v8913_v2  ;;  %v8497_v62 = vpack.c.bf16 %v6944_v6, %v6943_v16  ;;  %v8509_v27 = vpack.c.bf16 %v6950_v24, %v6949_v23  ;;  %v6959_v6 = vld [vmem:[%s10785_s4 + $0xb0] sm:$0xff] }
 0x94d   : > { %v1977_v13 = vmul.f32 %v1975_v8, %v1975_v8 }
 0x94e   : > { %8498 = vmatprep.subr.bf16.mxu0 %v8497_v62 }
 0x94f   : > { %v1981_v15 = vsel %vm1692_vm2, %v1977_v13, 0.0  ;;  %v6957_v13 = vld [vmem:[%s10785_s4 + $0xa0] sm:$0xff] }
 0x951   : > { %7837 = vmatmul.mubr.msk.f32.vlgmr.msra.gmra.mrb[22].mxu1 %vm2430_vm6, %v2341_v33 }
 0x952   : > { %7845 = vmatpush3.msk.msra.mxu1 %vm2434_vm4, %v2670_v35  ;;  %7846 = vmatprep.mubr.msk.f32.mxu1 %vm9034_vm3, %v9031_v28 }
 0x953   : > { %7854 = vmatprep.subr.mxu1 %v9031_v28 }
 0x959   : > { %7847 = vmatmul.mubr.msk.f32.vlgmr.msra.gmra.mrb[22].mxu1 %vm2430_vm6, %v2669_v38 }
 0x95a   : > { %7855 = vmatpush3.msk.msra.mxu1 %vm2434_vm4, %v2834_v40  ;;  %7856 = vmatprep.mubr.msk.f32.mxu1 %vm9034_vm3, %v9031_v28 }
 0x95b   : > { %8485 = vmatprep.subr.bf16.mxu1 %v9033_v56 }
 0x961   : > { %7857 = vmatmul.mubr.msk.f32.vlgmr.msra.gmra.mrb[22].mxu1 %vm2430_vm6, %v2833_v47  ;;  %v6934_v47 = vld [vmem:[%s10783_s2 + $0x80] sm:$0xff] }
 0x962   : > { %7894 = vmatprep.mubr.msk.f32.mxu1 %vm9034_vm3, %v9031_v28  ;;  %v8486_v22 = vpack.c.bf16 %v6935_v48, %v6934_v47 }
 0x964   : > { %8487 = vmatpush3.bf16.msra.mxu1 %v8486_v22 }
 0x965   : > { %8488 = vmatprep.subr.bf16.mxu1 %v9033_v56 }
 0x968   : > { %8490 = vmatpush3.bf16.msra.mxu1 %v8489_v51 }
 0x969   : > { %8491 = vmatprep.subr.bf16.mxu1 %v9033_v56 }
 0x96c   : > { %8493 = vmatpush3.bf16.msra.mxu1 %v8492_v54 }
 0x96d   : > { %8494 = vmatprep.subr.bf16.mxu1 %v9033_v56 }
 0x9d8   : > { %v1980_v55 = vpop.xlane.xlu1 %1979 }
 0x9d9   : > { %v1984_v57 = vmul.f32 0.015625, %v1980_v55  ;;  %v6940_v55 = vld [vmem:[%s10783_s2 + $0xb0] sm:$0xff] }
 0x9db   : > { %v1986_v58 = vadd.f32 1e-05, %v1984_v57  ;;  %v6941_v57 = vld [vmem:[%s10783_s2 + $0xb8] sm:$0xff] }
 0x9dd   : > { %8924 = vrsqrt.f32 %v1986_v58  ;;  %v6953_v58 = vld [vmem:[%s10785_s4 + $0x80] sm:$0xff] }
 0x9e7   : > { %v8925_v60 = vpop.eup %8924 }
 0x9e8   : > { %v1990_v21 = vmul.f32 %v8925_v60, %v1974_v14  ;;  %v6947_v14 = vld [vmem:[%s10784_s3 + $0xa0] sm:$0xff]  ;;  %v8495_v60 = vpack.c.bf16 %v6941_v57, %v6940_v55 }
 0x9e9   : > { %v8505_v59 = vpack.c.bf16 %v6948_v25, %v6947_v14 }
 0x9ea   : > { %v2000_v19 = vmul.f32 %v6881_v61, %v1990_v21  ;;  %v6954_v21 = vld [vmem:[%s10785_s4 + $0x88] sm:$0xff]  ;;  %8496 = vmatpush3.bf16.msra.mxu1 %v8495_v60 }
 0x9ec   : > { %v9770_v1 = vadd.f32 %v6883_v63, %v2000_v19 }
 0xa34   : > { %v2907_v0 = vpop.f32.mrb[22].mxu1 }
 0xa35   : > { %v7858_v2 = vpop.f32.mrb[23].mxu1  ;;  %7876 = vmatmul.mubr.msk.f32.vlgmr.msra.gmra.mrb[18].mxu0 %vm558_vm0, %v2907_v0 }
 0xa36   : > { %7913 = vmatprep.mubr.msk.f32.mxu0 %vm558_vm0, %v9770_v1  ;;  %8500 = vmatpush3.bf16.msra.mxu0 %v8497_v62  ;;  %v6960_v62 = vld [vmem:[%s10785_s4 + $0xb8] sm:$0xff] }
 0xb08   : > { %v2998_v3 = vpop.f32.mrb[18].mxu0 }
 0xb09   : > { %v2999_v9 = vadd.f32 %v6928_v5, %v2998_v3  ;;  %v7877_v10 = vpop.f32.mrb[19].mxu0  ;;  %v6933_v3 = vld [vmem:[%s10789_s8 + $0x2] ss:$0 sm:$0xff] }
 0xb0b   : > { %v3002_v11 = vadd.f32 %v2999_v9, %v9592_v7  ;;  %v6945_v7 = vld [vmem:[%s10784_s3 + $0x90] sm:$0xff]  ;;  %v6956_v9 = vld [vmem:[%s10785_s4 + $0x98] sm:$0xff] }
 0xb0c   : > { %v8501_v18 = vpack.c.bf16 %v6946_v17, %v6945_v7  ;;  %v8525_v7 = vpack.c.bf16 %v6960_v62, %v6959_v6 }
 0xb0d   : > { %v3004_v12 = vsel %vm3003_vm7, %v3002_v11, 0.0 }
 0xb0e   : > { %3005 = vadd.xlane.f32.xlu0 %v3004_v12  ;;  %8502 = vmatprep.subr.bf16.mxu0 %v8501_v18 }
 0xb0f   : > { %8504 = vmatpush3.bf16.msra.mxu0 %v8501_v18 }
 0xb10   : > { %8506 = vmatprep.subr.bf16.mxu0 %v8505_v59 }
 0xb12   : > { %1982 = vadd.xlane.f32.xlu0 %v1981_v15  ;;  %v6958_v15 = vld [vmem:[%s10785_s4 + $0xa8] sm:$0xff] }
 0xb13   : > { %8508 = vmatpush3.bf16.msra.mxu0 %v8505_v59  ;;  %v8521_v16 = vpack.c.bf16 %v6958_v15, %v6957_v13 }
 0xb14   : > { %8510 = vmatprep.subr.bf16.mxu0 %v8509_v27 }
 0xb17   : > { %8512 = vmatpush3.bf16.msra.mxu0 %v8509_v27 }
 0xb18   : > { %8537 = vmatprep.subr.bf16.mxu0 %v9033_v56 }
 0xb9b   : > { %v3006_v33 = vpop.xlane.xlu0 %3005 }
 0xb9c   : > { %v3007_v34 = vmul.f32 0.015625, %v3006_v33 }
 0xb9e   : > { %v3008_v35 = vsub.f32 %v3002_v11, %v3007_v34 }
 0xb9f   : > { %v1983_v36 = vpop.xlane.xlu0 %1982 }
 0xba0   : > { %v1985_v38 = vmul.f32 0.015625, %v1983_v36  ;;  %v3009_v40 = vmul.f32 %v3008_v35, %v3008_v35 }
 0xba2   : > { %v1987_v41 = vadd.f32 1e-05, %v1985_v38  ;;  %v3010_v42 = vsel %vm3003_vm7, %v3009_v40, 0.0 }
 0xba3   : > { %3011 = vadd.xlane.f32.xlu1 %v3010_v42 }
 0xba4   : > { %8926 = vrsqrt.f32 %v1987_v41 }
 0xbae   : > { %v8927_v43 = vpop.eup %8926 }
 0xbaf   : > { %v1991_v45 = vmul.f32 %v8927_v43, %v1975_v8  ;;  %v6955_v8 = vld [vmem:[%s10785_s4 + $0x90] sm:$0xff] }
 0xbb0   : > { %v8517_v12 = vpack.c.bf16 %v6956_v9, %v6955_v8 }
 0xbb1   : > { %v2001_v46 = vmul.f32 %v6881_v61, %v1991_v45  ;;  %v8513_v61 = vpack.c.bf16 %v6954_v21, %v6953_v58 }
 0xbb3   : > { %v9808_v26 = vadd.f32 %v6883_v63, %v2001_v46  ;;  %8514 = vmatprep.subr.bf16.mxu1 %v8513_v61 }
 0xbb5   : > { %7914 = vmatmul.mubr.msk.f32.vlgmr.msra.gmra.mrb[20].mxu0 %vm558_vm0, %v9808_v26 }
 0xbb6   : > { %7953 = vmatprep.mubr.msk.f32.mxu0 %vm9034_vm3, %v9031_v28 }
 0xc30   : > { %v3012_v19 = vpop.xlane.xlu1 %3011 }
 0xc31   : > { %v3013_v63 = vmul.f32 0.015625, %v3012_v19 }
 0xc33   : > { %v3014_v0 = vadd.f32 1e-05, %v3013_v63 }
 0xc35   : > { %8928 = vrsqrt.f32 %v3014_v0 }
 0xc3f   : > { %v8929_v2 = vpop.eup %8928 }
 0xc40   : > { %v3016_v5 = vmul.f32 %v8929_v2, %v3008_v35 }
 0xc42   : > { %v3025_v10 = vmul.f32 %v6931_v4, %v3016_v5 }
 0xc44   : > { %v9859_v11 = vadd.f32 %v6933_v3, %v3025_v10 }
 0xc46   : > { %7895 = vmatmul.mubr.msk.f32.vlgmr.msra.gmra.mrb[24].mxu1 %vm558_vm0, %v9859_v11 }
 0xc47   : > { %8516 = vmatpush3.bf16.msra.mxu1 %v8513_v61  ;;  %7932 = vmatprep.mubr.msk.f32.mxu1 %vm558_vm0, %v9770_v1 }
 0xc48   : > { %8518 = vmatprep.subr.bf16.mxu1 %v8517_v12 }
 0xc4b   : > { %8520 = vmatpush3.bf16.msra.mxu1 %v8517_v12 }
 0xc4c   : > { %8522 = vmatprep.subr.bf16.mxu1 %v8521_v16 }
 0xc4f   : > { %8524 = vmatpush3.bf16.msra.mxu1 %v8521_v16 }
 0xc50   : > { %8526 = vmatprep.subr.bf16.mxu1 %v8525_v7 }
 0xc53   : > { %8528 = vmatpush3.bf16.msra.mxu1 %v8525_v7 }
 0xc54   : > { %8529 = vmatprep.subr.bf16.mxu1 %v9033_v56 }
 0xc56   : > { %7933 = vmatmul.mubr.msk.f32.vlgmr.msra.gmra.mrb[26].mxu1 %vm558_vm0, %v9808_v26 }
 0xc57   : > { %7939 = vmatprep.mubr.msk.f32.mxu1 %vm9034_vm3, %v9031_v28 }
 0xc88   : > { %v7915_v17 = vpop.f32.mrb[20].mxu0 }
 0xc89   : > { %v3292_v18 = vmul.f32 %v7915_v17, %v9236_v29  ;;  %v3388_v14 = vmul.f32 %v7915_v17, %v9239_v30  ;;  %v3632_v25 = vmul.f32 %v7915_v17, %v9242_v31  ;;  %v3801_v59 = vmul.f32 %v7915_v17, %v9245_v32  ;;  %v3198_v23 = vpop.f32.mrb[21].mxu0 }
 0xc8a   : > { %v3291_v24 = vmul.f32 %v9236_v29, %v3198_v23  ;;  %v3387_v27 = vmul.f32 %v9239_v30, %v3198_v23  ;;  %v3631_v33 = vmul.f32 %v9242_v31, %v3198_v23  ;;  %v3800_v34 = vmul.f32 %v9245_v32, %v3198_v23 }
 0xc8c   : > { %v8530_v35 = vpack.c.bf16 %v3292_v18, %v3291_v24  ;;  %v8534_v36 = vpack.c.bf16 %v3388_v14, %v3387_v27  ;;  %v8546_v38 = vpack.c.bf16 %v3632_v25, %v3631_v33  ;;  %v8554_v40 = vpack.c.bf16 %v3801_v59, %v3800_v34 }
 0xc8e   : > { %8532 = vmatpush3.bf16.xpose.msk.msra.mxu1 %vm9257_vm11, %v8530_v35 }
 0xc8f   : > { %8533 = vmatprep.subr.bf16.mxu1 %v9033_v56 }
 0xd19   : > { %v3113_v41 = vpop.f32.mrb[24].mxu1 }
 0xd1a   : > { %v7896_v42 = vpop.f32.mrb[25].mxu1  ;;  %7940 = vmatmul.mubr.msk.f32.vlgmr.msra.gmra.mrb[28].mxu1 %vm558_vm0, %v3113_v41 }
 0xd1b   : > { %8536 = vmatpush3.bf16.xpose.msk.msra.mxu1 %vm9257_vm11, %v8534_v36  ;;  %7946 = vmatprep.mubr.msk.f32.mxu1 %vm9034_vm3, %v9031_v28 }
 0xd1c   : > { %8545 = vmatprep.subr.bf16.mxu1 %v9033_v56 }
 0xd22   : > { %7947 = vmatmul.mubr.msk.f32.vlgmr.msra.gmra.mrb[30].mxu1 %vm558_vm0, %v3113_v41 }
 0xd23   : > { %8548 = vmatpush3.bf16.xpose.msk.msra.mxu1 %vm9257_vm11, %v8546_v38  ;;  %7967 = vmatprep.mubr.msk.f32.mxu1 %vm9034_vm3, %v9031_v28 }
 0xd24   : > { %8553 = vmatprep.subr.bf16.mxu1 %v9033_v56 }
 0xd29   : > { %v7934_v43 = vpop.f32.mrb[26].mxu1 }
 0xd2a   : > { %v9906_v45 = vmul.f32 %v7934_v43, %v9236_v29  ;;  %v3478_v46 = vmul.f32 %v7934_v43, %v9239_v30  ;;  %v9910_v47 = vmul.f32 %v7934_v43, %v9242_v31  ;;  %v9913_v48 = vmul.f32 %v7934_v43, %v9245_v32  ;;  %v3282_v22 = vpop.f32.mrb[27].mxu1  ;;  %7968 = vmatmul.mubr.msk.f32.vlgmr.msra.gmra.mrb[32].mxu1 %vm558_vm0, %v3113_v41 }
 0xd2b   : > { %v9917_v49 = vmul.f32 %v9236_v29, %v3282_v22  ;;  %v3477_v50 = vmul.f32 %v9239_v30, %v3282_v22  ;;  %v9921_v51 = vmul.f32 %v9242_v31, %v3282_v22  ;;  %v9924_v52 = vmul.f32 %v9245_v32, %v3282_v22  ;;  %8556 = vmatpush3.bf16.xpose.msk.msra.mxu1 %vm9257_vm11, %v8554_v40 }
 0xd2c   : > { %7981 = vmatprep.mubr.msk.f32.mxu1 %vm9034_vm3, %v9031_v28 }
 0xd2d   : > { %v8538_v53 = vpack.c.bf16 %v3478_v46, %v3477_v50  ;;  %v8542_v54 = vpack.c.bf16 %v9906_v45, %v9917_v49  ;;  %v8550_v55 = vpack.c.bf16 %v9910_v47, %v9921_v51  ;;  %v8558_v57 = vpack.c.bf16 %v9913_v48, %v9924_v52  ;;  %v3970_v47 = vld [vmem:[#allocation2 + $0x80] sm:$0xff]  ;;  %v3971_v51 = vld [vmem:[#allocation2 + $0x88] sm:$0xff] }
 0xd2e   : > { %v3974_v48 = vld [vmem:[#allocation2 + $0xa0] sm:$0xff]  ;;  %v3975_v52 = vld [vmem:[#allocation2 + $0xa8] sm:$0xff] }
 0xd2f   : > { %8540 = vmatpush3.bf16.msk.msra.mxu0 %vm9354_vm1, %v8538_v53 }
 0xd30   : > { %8541 = vmatprep.subr.bf16.mxu0 %v9033_v56 }
 0xd32   : > { %7982 = vmatmul.mubr.msk.f32.vlgmr.msra.gmra.mrb[34].mxu1 %vm558_vm0, %v3113_v41 }
 0xd33   : > { %4188 = vmatprep.mubr.f32.mxu1 %v9031_v28 }
 0xded   : > { %v3368_v58 = vpop.f32.mrb[28].mxu1 }
 0xdee   : > { %v3372_v60 = vmul.f32 0.125, %v3368_v58  ;;  %v7941_v21 = vpop.f32.mrb[29].mxu1 }
 0xdf0   : > { %v3374_v61 = vsel %vm3373_vm8, %v3372_v60, -inf }
 0xdf1   : > { %3375 = vmax.xlane.f32.xlu1 %v3374_v61  ;;  %v3972_v61 = vld [vmem:[#allocation2 + $0x90] sm:$0xff] }
 0xdf5   : > { %v3461_v19 = vpop.f32.mrb[30].mxu1 }
 0xdf6   : > { %v3465_v63 = vmul.f32 0.125, %v3461_v19  ;;  %v7948_v0 = vpop.f32.mrb[31].mxu1  ;;  %v3973_v19 = vld [vmem:[#allocation2 + $0x98] sm:$0xff] }
 0xdf7   : > { %v3976_v0 = vld [vmem:[#allocation2 + $0xb0] sm:$0xff] }
 0xdf8   : > { %v3466_v2 = vsel %vm3373_vm8, %v3465_v63, -inf }
 0xdf9   : > { %3467 = vmax.xlane.f32.xlu0 %v3466_v2  ;;  %v3977_v2 = vld [vmem:[#allocation2 + $0xb8] sm:$0xff] }
 0xdfd   : > { %v3705_v4 = vpop.f32.mrb[32].mxu1 }
 0xdfe   : > { %v3709_v5 = vmul.f32 0.125, %v3705_v4  ;;  %v7969_v3 = vpop.f32.mrb[33].mxu1  ;;  %v8571_v4 = vpack.c.bf16 %v3977_v2, %v3976_v0  ;;  %v7029_v0 = vld [vmem:[%s10792_s11 + $0x1a8] sm:$0xff] }
 0xe00   : > { %v3710_v8 = vsel %vm3373_vm8, %v3709_v5, -inf }
 0xe01   : > { %3711 = vmax.xlane.f32.xlu0 %v3710_v8  ;;  %v6984_v8 = vld [vmem:[%s10787_s6 + $0x2] ss:$0 sm:$0xff] }
 0xe05   : > { %v3874_v9 = vpop.f32.mrb[34].mxu1 }
 0xe06   : > { %v3878_v10 = vmul.f32 0.125, %v3874_v9  ;;  %v7983_v12 = vpop.f32.mrb[35].mxu1 }
 0xe08   : > { %v3879_v13 = vsel %vm3373_vm8, %v3878_v10, -inf }
 0xe09   : > { %3880 = vmax.xlane.f32.xlu1 %v3879_v13 }
 0xe7e   : > { %v3376_v15 = vpop.xlane.xlu1 %3375 }
 0xe7f   : > { %v3377_v16 = vsub.f32 %v3372_v60, %v3376_v15 }
 0xe81   : > { %v3378_v6 = vmul.f32 1.442695, %v3377_v16 }
 0xe83   : > { %8930 = vpow2.f32 %v3378_v6 }
 0xe86   : > { %v3468_v62 = vpop.xlane.xlu0 %3467 }
 0xe87   : > { %v3469_v7 = vsub.f32 %v3465_v63, %v3468_v62  ;;  %v8565_v63 = vpack.c.bf16 %v3973_v19, %v3972_v61  ;;  %v7027_v61 = vld [vmem:[%s10792_s11 + $0x198] sm:$0xff] }
 0xe89   : > { %v3470_v17 = vmul.f32 1.442695, %v3469_v7 }
 0xe8b   : > { %8932 = vpow2.f32 %v3470_v17 }
 0xe8d   : > { %v8931_v18 = vpop.eup %8930 }
 0xe8e   : > { %v3712_v14 = vpop.xlane.xlu0 %3711  ;;  %v3380_v25 = vsel %vm3373_vm8, %v8931_v18, 0.0 }
 0xe8f   : > { %v3713_v59 = vsub.f32 %v3709_v5, %v3712_v14  ;;  %3381 = vadd.xlane.f32.xlu1 %v3380_v25  ;;  %v6990_v25 = vld [vmem:[%s10790_s9 + $0x80] sm:$0xff] }
 0xe91   : > { %v3714_v23 = vmul.f32 1.442695, %v3713_v59  ;;  %v6992_v59 = vld [vmem:[%s10790_s9 + $0x90] sm:$0xff] }
 0xe93   : > { %8934 = vpow2.f32 %v3714_v23  ;;  %v8575_v23 = vpack.c.bf16 %v6992_v59, %v6990_v25  ;;  %v7035_v25 = vld [vmem:[%s10792_s11 + $0x1d8] sm:$0xff] }
 0xe95   : > { %v8933_v24 = vpop.eup %8932 }
 0xe96   : > { %v3881_v27 = vpop.xlane.xlu1 %3880  ;;  %v3472_v33 = vsel %vm3373_vm8, %v8933_v24, 0.0 }
 0xe97   : > { %v3882_v34 = vsub.f32 %v3878_v10, %v3881_v27  ;;  %3473 = vadd.xlane.f32.xlu0 %v3472_v33  ;;  %v6997_v27 = vld [vmem:[%s10790_s9 + $0xb8] sm:$0xff] }
 0xe99   : > { %v3883_v35 = vmul.f32 1.442695, %v3882_v34  ;;  %v6994_v34 = vld [vmem:[%s10790_s9 + $0xa0] sm:$0xff] }
 0xe9b   : > { %8936 = vpow2.f32 %v3883_v35  ;;  %v6996_v35 = vld [vmem:[%s10790_s9 + $0xb0] sm:$0xff] }
 0xe9d   : > { %v8935_v36 = vpop.eup %8934 }
 0xe9e   : > { %v3716_v38 = vsel %vm3373_vm8, %v8935_v36, 0.0 }
 0xe9f   : > { %3717 = vadd.xlane.f32.xlu0 %v3716_v38  ;;  %v6999_v38 = vld [vmem:[%s10790_s9 + $0xc8] sm:$0xff] }
 0xea5   : > { %v8937_v40 = vpop.eup %8936 }
 0xea6   : > { %v3885_v41 = vsel %vm3373_vm8, %v8937_v40, 0.0 }
 0xea7   : > { %3886 = vadd.xlane.f32.xlu1 %v3885_v41 }
 0xf1c   : > { %v3382_v43 = vpop.xlane.xlu1 %3381 }
 0xf24   : > { %v3474_v42 = vpop.xlane.xlu0 %3473 }
 0xf25   : > { %8938 = vrcp.f32 %v3474_v42  ;;  %v6998_v42 = vld [vmem:[%s10790_s9 + $0xc0] sm:$0xff] }
 0xf26   : > { %8940 = vrcp.f32 %v3382_v43  ;;  %v7000_v43 = vld [vmem:[%s10790_s9 + $0xd0] sm:$0xff] }
 0xf2c   : > { %v3718_v50 = vpop.xlane.xlu0 %3717 }
 0xf2d   : > { %8942 = vrcp.f32 %v3718_v50  ;;  %v7005_v50 = vld [vmem:[%s10790_s9 + $0xf8] sm:$0xff] }
 0xf2f   : > { %v8939_v46 = vpop.eup %8938 }
 0xf30   : > { %v3476_v22 = vmul.f32 %v8939_v46, %v8933_v24  ;;  %v8941_v53 = vpop.eup %8940  ;;  %v6995_v24 = vld [vmem:[%s10790_s9 + $0xa8] sm:$0xff]  ;;  %v8583_v46 = vpack.c.bf16 %v7000_v43, %v6998_v42  ;;  %v6987_v43 = vld [vmem:[%s10788_s7 + $0x3] ss:$0 sm:$0xff] }
 0xf31   : > { %v3384_v58 = vmul.f32 %v8941_v53, %v8931_v18  ;;  %v6991_v18 = vld [vmem:[%s10790_s9 + $0x88] sm:$0xff]  ;;  %v8577_v33 = vpack.c.bf16 %v6997_v27, %v6995_v24  ;;  %v7002_v53 = vld [vmem:[%s10790_s9 + $0xe0] sm:$0xff]  ;;  %v7018_v24 = vld [vmem:[%s10792_s11 + $0x150] sm:$0xff] }
 0xf32   : > { %7954 = vmatmul.mubr.msk.f32.vlgmr.msra.gmra.mrb[22].mxu0 %vm897_vm12, %v3476_v22  ;;  %v7003_v22 = vld [vmem:[%s10790_s9 + $0xe8] sm:$0xff]  ;;  %v7019_v27 = vld [vmem:[%s10792_s11 + $0x158] sm:$0xff] }
 0xf33   : > { %8544 = vmatpush3.bf16.msk.msra.mxu0 %vm9354_vm1, %v8542_v54  ;;  %7960 = vmatprep.mubr.msk.f32.mxu0 %vm9034_vm3, %v9031_v28 }
 0xf34   : > { %8549 = vmatprep.subr.bf16.mxu0 %v9033_v56  ;;  %v3887_v60 = vpop.xlane.xlu1 %3886 }
 0xf35   : > { %8944 = vrcp.f32 %v3887_v60  ;;  %v7004_v60 = vld [vmem:[%s10790_s9 + $0xf0] sm:$0xff] }
 0xf37   : > { %v8943_v45 = vpop.eup %8942 }
 0xf38   : > { %v3720_v49 = vmul.f32 %v8943_v45, %v8935_v36  ;;  %v8579_v36 = vpack.c.bf16 %v6996_v35, %v6994_v34  ;;  %v8587_v45 = vpack.c.bf16 %v7004_v60, %v7002_v53  ;;  %v7037_v34 = vld [vmem:[%s10792_s11 + $0x1e8] sm:$0xff]  ;;  %v8611_v35 = vpack.c.bf16 %v7019_v27, %v7018_v24  ;;  %v7049_v24 = vld [vmem:[%s10783_s2 + $0xd8] sm:$0xff] }
 0xf39   : > { %v7021_v60 = vld [vmem:[%s10792_s11 + $0x168] sm:$0xff] }
 0xf3a   : > { %7961 = vmatmul.mubr.msk.f32.vlgmr.msra.gmra.mrb[22].mxu0 %vm897_vm12, %v3384_v58  ;;  %v8585_v58 = vpack.c.bf16 %v7005_v50, %v7003_v22  ;;  %v6989_v22 = vld [vmem:[%s10789_s8 + $0x3] ss:$0 sm:$0xff] }
 0xf3b   : > { %8552 = vmatpush3.bf16.msk.msra.mxu0 %vm9354_vm1, %v8550_v55  ;;  %7974 = vmatprep.mubr.msk.f32.mxu0 %vm9034_vm3, %v9031_v28  ;;  %v8562_v55 = vpack.c.bf16 %v3971_v51, %v3970_v47  ;;  %v7025_v47 = vld [vmem:[%s10792_s11 + $0x188] sm:$0xff]  ;;  %v7008_v51 = vld [vmem:[%s10792_s11 + $0x100] sm:$0xff] }
 0xf3c   : > { %8557 = vmatprep.subr.bf16.mxu0 %v9033_v56 }
 0xf3f   : > { %v8945_v54 = vpop.eup %8944 }
 0xf40   : > { %v3889_v21 = vmul.f32 %v8945_v54, %v8937_v40  ;;  %v7001_v40 = vld [vmem:[%s10790_s9 + $0xd8] sm:$0xff] }
 0xf41   : > { %v8581_v41 = vpack.c.bf16 %v7001_v40, %v6999_v38 }
 0xf42   : > { %7975 = vmatmul.mubr.msk.f32.vlgmr.msra.gmra.mrb[22].mxu0 %vm897_vm12, %v3720_v49  ;;  %v7024_v49 = vld [vmem:[%s10792_s11 + $0x180] sm:$0xff] }
 0xf43   : > { %8560 = vmatpush3.bf16.msk.msra.mxu0 %vm9354_vm1, %v8558_v57  ;;  %7988 = vmatprep.mubr.msk.f32.mxu0 %vm9034_vm3, %v9031_v28  ;;  %v8568_v57 = vpack.c.bf16 %v3975_v52, %v3974_v48  ;;  %v8589_v54 = vpack.c.bf16 %v7025_v47, %v7024_v49  ;;  %v7010_v48 = vld [vmem:[%s10792_s11 + $0x110] sm:$0xff]  ;;  %v7011_v52 = vld [vmem:[%s10792_s11 + $0x118] sm:$0xff] }
 0xf44   : > { %8561 = vmatprep.subr.bf16.mxu0 %v9033_v56  ;;  %v8595_v2 = vpack.c.bf16 %v7011_v52, %v7010_v48  ;;  %v7039_v49 = vld [vmem:[%s10792_s11 + $0x1f8] sm:$0xff] }
 0xf4a   : > { %7989 = vmatmul.mubr.msk.f32.vlgmr.msra.gmra.mrb[22].mxu0 %vm897_vm12, %v3889_v21  ;;  %v7026_v21 = vld [vmem:[%s10792_s11 + $0x190] sm:$0xff] }
 0xf4b   : > { %8563 = vmatpush3.bf16.msra.mxu0 %v8562_v55  ;;  %8007 = vmatprep.mubr.msk.f32.mxu0 %vm9034_vm3, %v9031_v28  ;;  %v7009_v55 = vld [vmem:[%s10792_s11 + $0x108] sm:$0xff] }
 0xf4c   : > { %8564 = vmatprep.subr.bf16.mxu0 %v9033_v56  ;;  %v8591_v19 = vpack.c.bf16 %v7009_v55, %v7008_v51  ;;  %v7022_v51 = vld [vmem:[%s10792_s11 + $0x170] sm:$0xff] }
 0xf4f   : > { %8566 = vmatpush3.bf16.msra.mxu0 %v8565_v63  ;;  %v8593_v63 = vpack.c.bf16 %v7027_v61, %v7026_v21  ;;  %v7006_v21 = vld [vmem:[%s10791_s10 + $0x2] sm:$0x3] }
 0xf50   : > { %8567 = vmatprep.subr.bf16.mxu0 %v9033_v56  ;;  %v4114_v61 = vrot.slane %v7006_v21, %v9645_v37 }
 0xf53   : > { %8569 = vmatpush3.bf16.msra.mxu0 %v8568_v57  ;;  %v7028_v57 = vld [vmem:[%s10792_s11 + $0x1a0] sm:$0xff] }
 0xf54   : > { %8570 = vmatprep.subr.bf16.mxu0 %v9033_v56 }
 0xf57   : > { %8572 = vmatpush3.bf16.msra.mxu0 %v8571_v4  ;;  %v8597_v4 = vpack.c.bf16 %v7029_v0, %v7028_v57 }
 0xf58   : > { %8590 = vmatprep.subr.bf16.mxu0 %v8589_v54  ;;  %v7023_v54 = vld [vmem:[%s10792_s11 + $0x178] sm:$0xff] }
 0xf59   : > { %v8619_v55 = vpack.c.bf16 %v7023_v54, %v7022_v51  ;;  %v7043_v51 = vld [vmem:[%s10788_s7 + $0x4] ss:$0 sm:$0xff] }
0x101d   : > { %v3964_v5 = vpop.f32.mrb[22].mxu0 }
0x101e   : > { %v7990_v3 = vpop.f32.mrb[23].mxu0  ;;  %8008 = vmatmul.mubr.msk.f32.vlgmr.msra.gmra.mrb[24].mxu0 %vm558_vm0, %v3964_v5  ;;  %v7012_v5 = vld [vmem:[%s10792_s11 + $0x120] sm:$0xff] }
0x101f   : > { %8592 = vmatpush3.bf16.msra.mxu0 %v8591_v19  ;;  %v7013_v3 = vld [vmem:[%s10792_s11 + $0x128] sm:$0xff]  ;;  %v4118_v19 = vrot.slane %v7006_v21, %v9650_v39 }
0x1020   : > { %8594 = vmatprep.subr.bf16.mxu0 %v8593_v63  ;;  %v7056_v21 = vld [vmem:[%s10784_s3 + $0xc8] sm:$0xff] }
0x1023   : > { %8596 = vmatpush3.bf16.msra.mxu0 %v8595_v2 }
0x1024   : > { %8598 = vmatprep.subr.bf16.mxu0 %v8597_v4 }
0x10f1   : > { %v4055_v9 = vpop.f32.mrb[24].mxu0 }
0x10f2   : > { %v4056_v10 = vadd.f32 %v6984_v8, %v4055_v9  ;;  %v8009_v12 = vpop.f32.mrb[25].mxu0  ;;  %v7030_v8 = vld [vmem:[%s10792_s11 + $0x1b0] sm:$0xff]  ;;  %v7031_v9 = vld [vmem:[%s10792_s11 + $0x1b8] sm:$0xff] }
0x10f3   : > { %v8601_v12 = vpack.c.bf16 %v7031_v9, %v7030_v8 }
0x10f4   : > { %v4059_v13 = vadd.f32 %v4056_v10, %v9859_v11  ;;  %v6993_v11 = vld [vmem:[%s10790_s9 + $0x98] sm:$0xff]  ;;  %v8599_v10 = vpack.c.bf16 %v7013_v3, %v7012_v5  ;;  %v7041_v5 = vld [vmem:[%s10793_s12 + $0x1] ss:$0 sm:$0xff] }
0x10f5   : > { %v8573_v14 = vpack.c.bf16 %v6993_v11, %v6991_v18  ;;  %v7016_v18 = vld [vmem:[%s10792_s11 + $0x140] sm:$0xff]  ;;  %v7017_v11 = vld [vmem:[%s10792_s11 + $0x148] sm:$0xff] }
0x10f6   : > { %v4060_v15 = vsel %vm3003_vm7, %v4059_v13, 0.0  ;;  %8600 = vmatpush3.bf16.msra.mxu0 %v8599_v10  ;;  %v8607_v59 = vpack.c.bf16 %v7017_v11, %v7016_v18  ;;  %v7047_v18 = vld [vmem:[%s10783_s2 + $0xc8] sm:$0xff] }
0x10f7   : > { %4061 = vadd.xlane.f32.xlu0 %v4060_v15  ;;  %8574 = vmatprep.subr.bf16.mxu1 %v8573_v14  ;;  %v7015_v15 = vld [vmem:[%s10792_s11 + $0x138] sm:$0xff]  ;;  %v7034_v14 = vld [vmem:[%s10792_s11 + $0x1d0] sm:$0xff] }
0x10f8   : > { %8576 = vmatpush1.bf16.msra.mxu1 %v8575_v23  ;;  %8602 = vmatprep.subr.bf16.mxu0 %v8601_v12  ;;  %v8609_v23 = vpack.c.bf16 %v7035_v25, %v7034_v14  ;;  %v7064_v14 = vld [vmem:[%s10785_s4 + $0xc0] sm:$0xff]  ;;  %v7065_v25 = vld [vmem:[%s10785_s4 + $0xc8] sm:$0xff] }
0x10f9   : > { %8578 = vmatprep.subr.bf16.mxu1 %v8577_v33  ;;  %v7036_v33 = vld [vmem:[%s10792_s11 + $0x1e0] sm:$0xff] }
0x10fc   : > { %8580 = vmatpush1.bf16.msra.mxu1 %v8579_v36  ;;  %v8613_v36 = vpack.c.bf16 %v7037_v34, %v7036_v33  ;;  %v7066_v33 = vld [vmem:[%s10785_s4 + $0xd0] sm:$0xff]  ;;  %v7067_v34 = vld [vmem:[%s10785_s4 + $0xd8] sm:$0xff] }
0x10fd   : > { %8582 = vmatprep.subr.bf16.mxu1 %v8581_v41 }
0x1100   : > { %8584 = vmatpush1.bf16.msra.mxu1 %v8583_v46 }
0x1101   : > { %8586 = vmatprep.subr.bf16.mxu1 %v8585_v58  ;;  %v7020_v58 = vld [vmem:[%s10792_s11 + $0x160] sm:$0xff] }
0x1104   : > { %8588 = vmatpush1.bf16.msra.mxu1 %v8587_v45  ;;  %v7038_v45 = vld [vmem:[%s10792_s11 + $0x1f0] sm:$0xff] }
0x1105   : > { %8621 = vmatprep.subr.bf16.mxu1 %v9033_v56  ;;  %v8617_v47 = vpack.c.bf16 %v7039_v49, %v7038_v45 }
0x1184   : > { %v4062_v16 = vpop.xlane.xlu0 %4061 }
0x1185   : > { %v4063_v6 = vmul.f32 0.015625, %v4062_v16  ;;  %v7032_v16 = vld [vmem:[%s10792_s11 + $0x1c0] sm:$0xff] }
0x1187   : > { %v9988_v62 = vsub.f32 %v4059_v13, %v4063_v6  ;;  %v7014_v13 = vld [vmem:[%s10792_s11 + $0x130] sm:$0xff]  ;;  %v7033_v6 = vld [vmem:[%s10792_s11 + $0x1c8] sm:$0xff] }
0x1189   : > { %v4065_v7 = vmul.f32 %v9988_v62, %v9988_v62 }
0x118b   : > { %v4066_v17 = vsel %vm3003_vm7, %v4065_v7, 0.0  ;;  %v8603_v7 = vpack.c.bf16 %v7015_v15, %v7014_v13 }
0x118c   : > { %4067 = vadd.xlane.f32.xlu1 %v4066_v17  ;;  %v8605_v17 = vpack.c.bf16 %v7033_v6, %v7032_v16 }
0x118d   : > { %8604 = vmatpush3.bf16.msra.mxu0 %v8603_v7 }
0x118e   : > { %8606 = vmatprep.subr.bf16.mxu0 %v8605_v17  ;;  %v7046_v17 = vld [vmem:[%s10783_s2 + $0xc0] sm:$0xff] }
0x118f   : > { %v8622_v11 = vpack.c.bf16 %v7047_v18, %v7046_v17 }
0x1191   : > { %8608 = vmatpush3.bf16.msra.mxu0 %v8607_v59  ;;  %v8646_v59 = vpack.c.bf16 %v7065_v25, %v7064_v14 }
0x1192   : > { %8610 = vmatprep.subr.bf16.mxu0 %v8609_v23  ;;  %v7048_v23 = vld [vmem:[%s10783_s2 + $0xd0] sm:$0xff] }
0x1193   : > { %v8625_v27 = vpack.c.bf16 %v7049_v24, %v7048_v23 }
0x1195   : > { %8612 = vmatpush3.bf16.msra.mxu0 %v8611_v35  ;;  %v8649_v35 = vpack.c.bf16 %v7067_v34, %v7066_v33 }
0x1196   : > { %8614 = vmatprep.subr.bf16.mxu0 %v8613_v36  ;;  %v7050_v36 = vld [vmem:[%s10783_s2 + $0xe0] sm:$0xff] }
0x1219   : > { %v4068_v38 = vpop.xlane.xlu1 %4067 }
0x121a   : > { %v4069_v40 = vmul.f32 0.015625, %v4068_v38  ;;  %v7051_v38 = vld [vmem:[%s10783_s2 + $0xe8] sm:$0xff] }
0x121c   : > { %v4070_v41 = vadd.f32 1e-05, %v4069_v40  ;;  %v8628_v40 = vpack.c.bf16 %v7051_v38, %v7050_v36 }
0x121e   : > { %8946 = vrsqrt.f32 %v4070_v41  ;;  %v7068_v41 = vld [vmem:[%s10785_s4 + $0xe0] sm:$0xff] }
0x1228   : > { %v8947_v42 = vpop.eup %8946 }
0x1229   : > { %v4072_v46 = vmul.f32 %v8947_v42, %v9988_v62  ;;  %v8615_v62 = vpack.c.bf16 %v7021_v60, %v7020_v58  ;;  %v7069_v42 = vld [vmem:[%s10785_s4 + $0xe8] sm:$0xff]  ;;  %v7071_v58 = vld [vmem:[%s10785_s4 + $0xf8] sm:$0xff] }
0x122b   : > { %v4081_v50 = vmul.f32 %v6987_v43, %v4072_v46  ;;  %8616 = vmatpush3.bf16.msra.mxu0 %v8615_v62  ;;  %v8652_v43 = vpack.c.bf16 %v7069_v42, %v7068_v41  ;;  %v7052_v46 = vld [vmem:[%s10783_s2 + $0xf0] sm:$0xff] }
0x122c   : > { %8618 = vmatprep.subr.bf16.mxu0 %v8617_v47 }
0x122d   : > { %v4090_v53 = vadd.f32 %v6989_v22, %v4081_v50  ;;  %v7053_v22 = vld [vmem:[%s10783_s2 + $0xf8] sm:$0xff]  ;;  %v7070_v50 = vld [vmem:[%s10785_s4 + $0xf0] sm:$0xff] }
0x122e   : > { %v8655_v60 = vpack.c.bf16 %v7071_v58, %v7070_v50 }
0x122f   : > { %7007 = vmatmul.mubr.msk.f32.vlgmr.msra.gmra.mrb[36].mxu1 %vm558_vm0, %v4090_v53  ;;  %8620 = vmatpush3.bf16.msra.mxu0 %v8619_v55  ;;  %v7055_v55 = vld [vmem:[%s10784_s3 + $0xc0] sm:$0xff] }
0x1230   : > { %8026 = vmatprep.mubr.msk.f32.mxu1 %vm9034_vm3, %v9031_v28  ;;  %8645 = vmatprep.subr.bf16.mxu0 %v9033_v56 }
0x1231   : > { %8623 = vmatpush3.bf16.msra.mxu1 %v8622_v11 }
0x1232   : > { %8624 = vmatprep.subr.bf16.mxu1 %v9033_v56 }
0x1235   : > { %8626 = vmatpush3.bf16.msra.mxu1 %v8625_v27 }
0x1236   : > { %8627 = vmatprep.subr.bf16.mxu1 %v9033_v56 }
0x1239   : > { %8629 = vmatpush3.bf16.msra.mxu1 %v8628_v40 }
0x123a   : > { %8630 = vmatprep.subr.bf16.mxu1 %v9033_v56 }
0x1302   : > { %v4190_v63 = vpop.f32.mrb[36].mxu1 }
0x1303   : > { %v4191_v48 = vadd.f32 %v4190_v63, %v4114_v61  ;;  %v4192_v52 = vpop.f32.mrb[37].mxu1  ;;  %v7045_v61 = vld [vmem:[%s10789_s8 + $0x4] ss:$0 sm:$0xff]  ;;  %v8634_v63 = vpack.c.bf16 %v7056_v21, %v7055_v55 }
0x1304   : > { %v4193_v57 = vadd.f32 %v4192_v52, %v4118_v19  ;;  %v7057_v52 = vld [vmem:[%s10784_s3 + $0xd0] sm:$0xff] }
0x1305   : > { %v4195_v2 = vmax.f32 %v4191_v48, 0.0 }
0x1306   : > { %v4196_v0 = vmax.f32 %v4193_v57, 0.0  ;;  %v7058_v57 = vld [vmem:[%s10784_s3 + $0xd8] sm:$0xff] }
0x1308   : > { %4302 = vmatprep.mubr.f32.mxu0 %v4196_v0  ;;  %v8637_v0 = vpack.c.bf16 %v7058_v57, %v7057_v52 }
0x1309   : > { %4303 = vmatmul.mubr.f32.vlgmr.msra.gmra.mrb[26].mxu0 %v4195_v2  ;;  %v7059_v2 = vld [vmem:[%s10784_s3 + $0xe0] sm:$0xff] }
0x130a   : > { %8064 = vmatprep.mubr.msk.f32.mxu0 %vm9034_vm3, %v9031_v28  ;;  %8647 = vmatpush3.bf16.msra.mxu0 %v8646_v59 }
0x130b   : > { %8648 = vmatprep.subr.bf16.mxu0 %v9033_v56 }
0x130e   : > { %8650 = vmatpush3.bf16.msra.mxu0 %v8649_v35 }
0x130f   : > { %8651 = vmatprep.subr.bf16.mxu0 %v9033_v56 }
0x1312   : > { %8653 = vmatpush3.bf16.msra.mxu0 %v8652_v43 }
0x1313   : > { %8654 = vmatprep.subr.bf16.mxu0 %v9033_v56 }
0x1316   : > { %8656 = vmatpush3.bf16.msra.mxu0 %v8655_v60 }
0x1317   : > { %8087 = vmatprep.subr.mxu0 %v9031_v28 }
0x13dc   : > { %v7469_v4 = vpop.f32.mrb[26].mxu0 }
0x13dd   : > { %v7470_v3 = vpop.f32.mrb[27].mxu0 }
0x13de   : > { %v7471_v8 = vadd.f32 %v7470_v3, %v7469_v4  ;;  %v7060_v4 = vld [vmem:[%s10784_s3 + $0xe8] sm:$0xff]  ;;  %v7061_v3 = vld [vmem:[%s10784_s3 + $0xf0] sm:$0xff] }
0x13e0   : > { %v4305_v9 = vadd.f32 %v7471_v8, %v7041_v5  ;;  %v8640_v5 = vpack.c.bf16 %v7060_v4, %v7059_v2  ;;  %v7062_v8 = vld [vmem:[%s10784_s3 + $0xf8] sm:$0xff] }
0x13e2   : > { %v4308_v10 = vadd.f32 %v4305_v9, %v4090_v53  ;;  %v8631_v53 = vpack.c.bf16 %v7053_v22, %v7052_v46  ;;  %v8643_v9 = vpack.c.bf16 %v7062_v8, %v7061_v3  ;;  %v5239_v3 = vld [vmem:[#allocation2 + $0xc8] sm:$0xff]  ;;  %v5240_v8 = vld [vmem:[#allocation2 + $0xd0] sm:$0xff] }
0x13e4   : > { %v4309_v12 = vsel %vm3003_vm7, %v4308_v10, 0.0  ;;  %8632 = vmatpush3.bf16.msra.mxu1 %v8631_v53 }
0x13e5   : > { %4310 = vadd.xlane.f32.xlu0 %v4309_v12  ;;  %8633 = vmatprep.subr.bf16.mxu1 %v9033_v56 }
0x1472   : > { %v4311_v13 = vpop.xlane.xlu0 %4310 }
0x1473   : > { %v4312_v15 = vmul.f32 0.015625, %v4311_v13 }
0x1475   : > { %v4313_v16 = vsub.f32 %v4308_v10, %v4312_v15 }
0x1477   : > { %v4314_v6 = vmul.f32 %v4313_v16, %v4313_v16 }
0x1479   : > { %v4315_v7 = vsel %vm3003_vm7, %v4314_v6, 0.0 }
0x147a   : > { %4316 = vadd.xlane.f32.xlu1 %v4315_v7 }
0x1507   : > { %v4317_v62 = vpop.xlane.xlu1 %4316 }
0x1508   : > { %v4318_v45 = vmul.f32 0.015625, %v4317_v62 }
0x150a   : > { %v4319_v49 = vadd.f32 1e-05, %v4318_v45 }
0x150c   : > { %8948 = vrsqrt.f32 %v4319_v49 }
0x1516   : > { %v8949_v47 = vpop.eup %8948 }
0x1517   : > { %v4321_v54 = vmul.f32 %v8949_v47, %v4313_v16 }
0x1519   : > { %v4330_v19 = vmul.f32 %v7043_v51, %v4321_v54 }
0x151b   : > { %v10229_v48 = vadd.f32 %v7045_v61, %v4330_v19 }
0x151d   : > { %8027 = vmatmul.mubr.msk.f32.vlgmr.msra.gmra.mrb[38].mxu1 %vm558_vm0, %v10229_v48  ;;  %8065 = vmatmul.mubr.msk.f32.vlgmr.msra.gmra.mrb[28].mxu0 %vm558_vm0, %v10229_v48 }
0x151e   : > { %8635 = vmatpush3.bf16.msra.mxu1 %v8634_v63  ;;  %8045 = vmatprep.mubr.msk.f32.mxu1 %vm9034_vm3, %v9031_v28 }
0x151f   : > { %8636 = vmatprep.subr.bf16.mxu1 %v9033_v56  ;;  %8089 = vmatprep.mubr.msk.f32.mxu0 %vm9034_vm3, %v9031_v28 }
0x1522   : > { %8638 = vmatpush3.bf16.msra.mxu1 %v8637_v0 }
0x1523   : > { %8639 = vmatprep.subr.bf16.mxu1 %v9033_v56 }
0x1526   : > { %8641 = vmatpush3.bf16.msra.mxu1 %v8640_v5  ;;  %v5238_v5 = vld [vmem:[#allocation2 + $0xc0] sm:$0xff] }
0x1527   : > { %8642 = vmatprep.subr.bf16.mxu1 %v9033_v56 }
0x152a   : > { %8644 = vmatpush3.bf16.msra.mxu1 %v8643_v9  ;;  %v8658_v9 = vpack.c.bf16 %v5239_v3, %v5238_v5 }
0x152b   : > { %8067 = vmatprep.subr.mxu1 %v9031_v28 }
0x152d   : > { %8046 = vmatmul.mubr.msk.f32.vlgmr.msra.gmra.mrb[40].mxu1 %vm558_vm0, %v10229_v48 }
0x152e   : > { %8069 = vmatprep.mubr.msk.f32.mxu1 %vm9034_vm3, %v9031_v28 }
0x15f0   : > { %v4418_v10 = vpop.f32.mrb[38].mxu1  ;;  %v10265_v12 = vpop.f32.mrb[28].mxu0 }
0x15f1   : > { %v8028_v13 = vpop.f32.mrb[39].mxu1  ;;  %v8066_v15 = vpop.f32.mrb[29].mxu0  ;;  %v4756_v14 = vmul.f32 %v9239_v30, %v10265_v12 }
0x15f2   : > { %v5242_v15 = vld [vmem:[#allocation2 + $0xe0] sm:$0xff] }
0x1600   : > { %v4497_v16 = vpop.f32.mrb[40].mxu1 }
0x1601   : > { %v4580_v6 = vmul.f32 %v9236_v29, %v4497_v16  ;;  %v4909_v7 = vmul.f32 %v9242_v31, %v4497_v16  ;;  %v8047_v17 = vpop.f32.mrb[41].mxu1  ;;  %v4670_v18 = vmul.f32 %v9239_v30, %v4497_v16  ;;  %v5073_v11 = vmul.f32 %v9245_v32, %v4497_v16  ;;  %v5243_v16 = vld [vmem:[#allocation2 + $0xe8] sm:$0xff] }
0x1602   : > { %v5245_v17 = vld [vmem:[#allocation2 + $0xf8] sm:$0xff] }
0x1603   : > { %8068 = vmatpush3.xpose.msk.msra.mxu1 %vm558_vm0, %v4580_v6  ;;  %8088 = vmatpush3.xpose.msk.msra.mxu0 %vm558_vm0, %v4909_v7  ;;  %v8664_v6 = vpack.c.bf16 %v5243_v16, %v5242_v15  ;;  %v5244_v7 = vld [vmem:[#allocation2 + $0xf0] sm:$0xff] }
0x1604   : > { %8072 = vmatprep.subr.mxu1 %v9031_v28  ;;  %8097 = vmatprep.subr.mxu0 %v9031_v28 }
0x1606   : > { %8070 = vmatmul.mubr.msk.f32.vlgmr.msra.gmra.mrb[42].mxu1 %vm558_vm0, %v4418_v10  ;;  %8090 = vmatmul.mubr.msk.f32.vlgmr.msra.gmra.mrb[30].mxu0 %vm558_vm0, %v4418_v10 }
0x1607   : > { %8073 = vmatpush3.xpose.msk.msra.mxu1 %vm558_vm0, %v4670_v18  ;;  %8098 = vmatpush3.xpose.msk.msra.mxu0 %vm558_vm0, %v5073_v11  ;;  %v8667_v18 = vpack.c.bf16 %v5245_v17, %v5244_v7 }
0x1608   : > { %8074 = vmatprep.mubr.msk.f32.mxu1 %vm9034_vm3, %v9031_v28  ;;  %8099 = vmatprep.mubr.msk.f32.mxu0 %vm9034_vm3, %v9031_v28 }
0x1609   : > { %8077 = vmatprep.subr.mxu1 %v9031_v28  ;;  %8657 = vmatprep.subr.bf16.mxu0 %v9033_v56 }
0x160a   : > { %8075 = vmatmul.mubr.msk.f32.vlgmr.msra.gmra.mrb[44].mxu1 %vm558_vm0, %v4418_v10  ;;  %8100 = vmatmul.mubr.msk.f32.vlgmr.msra.gmra.mrb[32].mxu0 %vm558_vm0, %v4418_v10  ;;  %v5241_v10 = vld [vmem:[#allocation2 + $0xd8] sm:$0xff] }
0x160b   : > { %8078 = vmatpush3.msk.msra.mxu1 %vm2434_vm4, %v4756_v14  ;;  %8079 = vmatprep.mubr.msk.f32.mxu1 %vm9034_vm3, %v9031_v28  ;;  %v8661_v13 = vpack.c.bf16 %v5241_v10, %v5240_v8 }
0x160c   : > { %8082 = vmatprep.subr.mxu1 %v9031_v28  ;;  %8123 = vmatprep.mubr.msk.f32.mxu0 %vm9034_vm3, %v9031_v28 }
0x160d   : > { %8659 = vmatpush3.bf16.msra.mxu0 %v8658_v9 }
0x160e   : > { %8660 = vmatprep.subr.bf16.mxu0 %v9033_v56 }
0x1611   : > { %8662 = vmatpush3.bf16.msra.mxu0 %v8661_v13 }
0x1612   : > { %8663 = vmatprep.subr.bf16.mxu0 %v9033_v56 }
0x1615   : > { %8665 = vmatpush3.bf16.msra.mxu0 %v8664_v6 }
0x1616   : > { %8666 = vmatprep.subr.bf16.mxu0 %v9033_v56 }
0x1619   : > { %8668 = vmatpush3.bf16.msra.mxu0 %v8667_v18 }
0x16d9   : > { %v4653_v25 = vpop.f32.mrb[42].mxu1  ;;  %v4979_v59 = vpop.f32.mrb[30].mxu0 }
0x16da   : > { %v4657_v23 = vmul.f32 0.125, %v4653_v25  ;;  %v8071_v24 = vpop.f32.mrb[43].mxu1  ;;  %v8091_v27 = vpop.f32.mrb[31].mxu0  ;;  %v4983_v42 = vmul.f32 0.125, %v4979_v59 }
0x16db   : > { %v4669_v24 = vmul.f32 %v9236_v29, %v10265_v12 }
0x16dc   : > { %v4658_v33 = vsel %vm2330_vm5, %v4657_v23, -inf  ;;  %v4984_v22 = vsel %vm2330_vm5, %v4983_v42, -inf }
0x16dd   : > { %v5143_v34 = vpop.f32.mrb[32].mxu0  ;;  %4659 = vmax.xlane.f32.xlu1 %v4658_v33  ;;  %v4740_v35 = vpop.f32.mrb[44].mxu1 }
0x16de   : > { %v5147_v36 = vmul.f32 0.125, %v5143_v34  ;;  %v4744_v38 = vmul.f32 0.125, %v4740_v35  ;;  %v8076_v40 = vpop.f32.mrb[45].mxu1  ;;  %v8101_v41 = vpop.f32.mrb[33].mxu0  ;;  %v4995_v35 = vmul.f32 %v9242_v31, %v10265_v12 }
0x16df   : > { %v5159_v40 = vmul.f32 %v9245_v32, %v10265_v12  ;;  %v7105_v12 = vld [vmem:[%s10784_s3 + $0x100] sm:$0xff] }
0x16e0   : > { %v5148_v43 = vsel %vm2330_vm5, %v5147_v36, -inf  ;;  %v4745_v46 = vsel %vm2330_vm5, %v4744_v38, -inf }
0x16e1   : > { %5149 = vmax.xlane.f32.xlu1 %v5148_v43  ;;  %4746 = vmax.xlane.f32.xlu0 %v4745_v46  ;;  %v7106_v43 = vld [vmem:[%s10784_s3 + $0x108] sm:$0xff] }
0x16e2   : > { %v8681_v46 = vpack.c.bf16 %v7106_v43, %v7105_v12  ;;  %v7116_v12 = vld [vmem:[%s10785_s4 + $0x108] sm:$0xff] }
0x16e4   : > { %8682 = vmatprep.subr.bf16.mxu0 %v8681_v46 }
0x16e5   : > { %4985 = vmax.xlane.f32.xlu0 %v4984_v22  ;;  %v7107_v22 = vld [vmem:[%s10784_s3 + $0x110] sm:$0xff] }
0x176a   : > { %v4660_v50 = vpop.xlane.xlu1 %4659 }
0x176b   : > { %v4661_v53 = vsub.f32 %v4657_v23, %v4660_v50  ;;  %v7108_v50 = vld [vmem:[%s10784_s3 + $0x118] sm:$0xff] }
0x176d   : > { %v4662_v58 = vmul.f32 1.442695, %v4661_v53  ;;  %v8685_v53 = vpack.c.bf16 %v7108_v50, %v7107_v22 }
0x176e   : > { %v5150_v60 = vpop.xlane.xlu1 %5149  ;;  %v4747_v62 = vpop.xlane.xlu0 %4746 }
0x176f   : > { %8950 = vpow2.f32 %v4662_v58  ;;  %v5151_v45 = vsub.f32 %v5147_v36, %v5150_v60  ;;  %v4748_v49 = vsub.f32 %v4744_v38, %v4747_v62  ;;  %v7109_v60 = vld [vmem:[%s10784_s3 + $0x120] sm:$0xff]  ;;  %v7110_v62 = vld [vmem:[%s10784_s3 + $0x128] sm:$0xff] }
0x1771   : > { %v5152_v47 = vmul.f32 1.442695, %v5151_v45  ;;  %v4749_v51 = vmul.f32 1.442695, %v4748_v49  ;;  %v8689_v49 = vpack.c.bf16 %v7110_v62, %v7109_v60  ;;  %v7095_v62 = vld [vmem:[%s10789_s8 + $0x5] ss:$0 sm:$0xff] }
0x1772   : > { %v4986_v54 = vpop.xlane.xlu0 %4985 }
0x1773   : > { %8952 = vpow2.f32 %v5152_v47  ;;  %v4987_v55 = vsub.f32 %v4983_v42, %v4986_v54  ;;  %v7111_v47 = vld [vmem:[%s10784_s3 + $0x130] sm:$0xff] }
0x1774   : > { %8954 = vpow2.f32 %v4749_v51  ;;  %v7112_v51 = vld [vmem:[%s10784_s3 + $0x138] sm:$0xff] }
0x1775   : > { %v4988_v21 = vmul.f32 1.442695, %v4987_v55  ;;  %v8693_v54 = vpack.c.bf16 %v7112_v51, %v7111_v47  ;;  %v7090_v55 = vld [vmem:[%s10787_s6 + $0x3] ss:$0 sm:$0xff] }
0x1777   : > { %8956 = vpow2.f32 %v4988_v21 }
0x1779   : > { %v8951_v61 = vpop.eup %8950 }
0x177a   : > { %v4664_v19 = vsel %vm2330_vm5, %v8951_v61, 0.0 }
0x177b   : > { %4665 = vadd.xlane.f32.xlu1 %v4664_v19 }
0x177d   : > { %v8953_v63 = vpop.eup %8952 }
0x177e   : > { %v8955_v52 = vpop.eup %8954  ;;  %v5154_v57 = vsel %vm2330_vm5, %v8953_v63, 0.0 }
0x177f   : > { %5155 = vadd.xlane.f32.xlu1 %v5154_v57  ;;  %v4751_v0 = vsel %vm2330_vm5, %v8955_v52, 0.0 }
0x1780   : > { %4752 = vadd.xlane.f32.xlu0 %v4751_v0 }
0x1781   : > { %v8957_v2 = vpop.eup %8956 }
0x1782   : > { %v4990_v4 = vsel %vm2330_vm5, %v8957_v2, 0.0 }
0x1784   : > { %4991 = vadd.xlane.f32.xlu0 %v4990_v4 }
0x1808   : > { %v4666_v14 = vpop.xlane.xlu1 %4665 }
0x180c   : > { %v5156_v34 = vpop.xlane.xlu1 %5155 }
0x180d   : > { %v4753_v11 = vpop.xlane.xlu0 %4752 }
0x180e   : > { %8958 = vrcp.f32 %v4753_v11 }
0x180f   : > { %8960 = vrcp.f32 %v4666_v14 }
0x1811   : > { %v4992_v23 = vpop.xlane.xlu0 %4991 }
0x1812   : > { %8962 = vrcp.f32 %v4992_v23 }
0x1813   : > { %8964 = vrcp.f32 %v5156_v34  ;;  %v7100_v34 = vld [vmem:[%s10783_s2 + $0x120] sm:$0xff] }
0x1818   : > { %v8959_v25 = vpop.eup %8958 }
0x1819   : > { %v4755_v59 = vmul.f32 %v8959_v25, %v8955_v52  ;;  %v8961_v27 = vpop.eup %8960  ;;  %v7096_v25 = vld [vmem:[%s10783_s2 + $0x100] sm:$0xff] }
0x181a   : > { %v4668_v33 = vmul.f32 %v8961_v27, %v8951_v61  ;;  %v7099_v27 = vld [vmem:[%s10783_s2 + $0x118] sm:$0xff] }
0x181b   : > { %8080 = vmatmul.mubr.msk.f32.vlgmr.msra.gmra.mrb[46].mxu1 %vm2430_vm6, %v4755_v59  ;;  %v7097_v59 = vld [vmem:[%s10783_s2 + $0x108] sm:$0xff] }
0x181c   : > { %8083 = vmatpush3.msk.msra.mxu1 %vm2434_vm4, %v4669_v24  ;;  %8084 = vmatprep.mubr.msk.f32.mxu1 %vm9034_vm3, %v9031_v28  ;;  %v8963_v36 = vpop.eup %8962  ;;  %v8670_v23 = vpack.c.bf16 %v7097_v59, %v7096_v25  ;;  %v7098_v24 = vld [vmem:[%s10783_s2 + $0x110] sm:$0xff] }
0x181d   : > { %8092 = vmatprep.subr.mxu1 %v9031_v28  ;;  %v4994_v38 = vmul.f32 %v8963_v36, %v8957_v2  ;;  %v8965_v41 = vpop.eup %8964 }
0x181e   : > { %v5158_v42 = vmul.f32 %v8965_v41, %v8953_v63  ;;  %v7115_v41 = vld [vmem:[%s10785_s4 + $0x100] sm:$0xff] }
0x181f   : > { %v8697_v43 = vpack.c.bf16 %v7116_v12, %v7115_v41 }
0x1823   : > { %8085 = vmatmul.mubr.msk.f32.vlgmr.msra.gmra.mrb[46].mxu1 %vm2430_vm6, %v4668_v33  ;;  %v8673_v33 = vpack.c.bf16 %v7099_v27, %v7098_v24 }
0x1824   : > { %8093 = vmatpush3.msk.msra.mxu1 %vm2434_vm4, %v4995_v35  ;;  %8094 = vmatprep.mubr.msk.f32.mxu1 %vm9034_vm3, %v9031_v28  ;;  %v7101_v35 = vld [vmem:[%s10783_s2 + $0x128] sm:$0xff] }
0x1825   : > { %8102 = vmatprep.subr.mxu1 %v9031_v28  ;;  %v8676_v36 = vpack.c.bf16 %v7101_v35, %v7100_v34 }
0x182b   : > { %8095 = vmatmul.mubr.msk.f32.vlgmr.msra.gmra.mrb[46].mxu1 %vm2430_vm6, %v4994_v38  ;;  %v7102_v38 = vld [vmem:[%s10783_s2 + $0x130] sm:$0xff] }
0x182c   : > { %8103 = vmatpush3.msk.msra.mxu1 %vm2434_vm4, %v5159_v40  ;;  %8104 = vmatprep.mubr.msk.f32.mxu1 %vm9034_vm3, %v9031_v28  ;;  %v7103_v40 = vld [vmem:[%s10783_s2 + $0x138] sm:$0xff] }
0x182d   : > { %8669 = vmatprep.subr.bf16.mxu1 %v9033_v56 }
0x1833   : > { %8105 = vmatmul.mubr.msk.f32.vlgmr.msra.gmra.mrb[46].mxu1 %vm2430_vm6, %v5158_v42  ;;  %v8679_v42 = vpack.c.bf16 %v7103_v40, %v7102_v38 }
0x1834   : > { %8142 = vmatprep.mubr.msk.f32.mxu1 %vm9034_vm3, %v9031_v28  ;;  %8671 = vmatpush3.bf16.msra.mxu1 %v8670_v23 }
0x1835   : > { %8672 = vmatprep.subr.bf16.mxu1 %v9033_v56 }
0x1838   : > { %8674 = vmatpush3.bf16.msra.mxu1 %v8673_v33 }
0x1839   : > { %8675 = vmatprep.subr.bf16.mxu1 %v9033_v56 }
0x183c   : > { %8677 = vmatpush3.bf16.msra.mxu1 %v8676_v36 }
0x183d   : > { %8678 = vmatprep.subr.bf16.mxu1 %v9033_v56 }
0x1840   : > { %8680 = vmatpush3.bf16.msra.mxu1 %v8679_v42 }
0x1841   : > { %8698 = vmatprep.subr.bf16.mxu1 %v8697_v43 }
0x1906   : > { %v5232_v58 = vpop.f32.mrb[46].mxu1 }
0x1907   : > { %v8106_v45 = vpop.f32.mrb[47].mxu1  ;;  %8124 = vmatmul.mubr.msk.f32.vlgmr.msra.gmra.mrb[34].mxu0 %vm558_vm0, %v5232_v58  ;;  %v7093_v58 = vld [vmem:[%s10788_s7 + $0x5] ss:$0 sm:$0xff] }
0x1908   : > { %8684 = vmatpush3.bf16.msra.mxu0 %v8681_v46  ;;  %8161 = vmatprep.mubr.msk.f32.mxu0 %vm558_vm0, %v9770_v1  ;;  %v7117_v45 = vld [vmem:[%s10785_s4 + $0x110] sm:$0xff] }
0x1909   : > { %8686 = vmatprep.subr.bf16.mxu0 %v8685_v53 }
0x190c   : > { %8688 = vmatpush3.bf16.msra.mxu0 %v8685_v53 }
0x190d   : > { %8690 = vmatprep.subr.bf16.mxu0 %v8689_v49 }
0x1910   : > { %8692 = vmatpush3.bf16.msra.mxu0 %v8689_v49  ;;  %v7118_v49 = vld [vmem:[%s10785_s4 + $0x118] sm:$0xff] }
0x1911   : > { %8694 = vmatprep.subr.bf16.mxu0 %v8693_v54 }
0x1914   : > { %8696 = vmatpush3.bf16.msra.mxu0 %v8693_v54  ;;  %v8701_v54 = vpack.c.bf16 %v7118_v49, %v7117_v45 }
0x1915   : > { %8713 = vmatprep.subr.bf16.mxu0 %v9033_v56 }
0x1917   : > { %8162 = vmatmul.mubr.msk.f32.vlgmr.msra.gmra.mrb[36].mxu0 %vm558_vm0, %v9808_v26 }
0x1918   : > { %8187 = vmatprep.mubr.msk.f32.mxu0 %vm9034_vm3, %v9031_v28 }
0x19da   : > { %v5323_v21 = vpop.f32.mrb[34].mxu0 }
0x19db   : > { %v5324_v61 = vadd.f32 %v7090_v55, %v5323_v21  ;;  %v8125_v19 = vpop.f32.mrb[35].mxu0  ;;  %v7119_v55 = vld [vmem:[%s10785_s4 + $0x120] sm:$0xff]  ;;  %v7120_v21 = vld [vmem:[%s10785_s4 + $0x128] sm:$0xff] }
0x19dc   : > { %v7121_v19 = vld [vmem:[%s10785_s4 + $0x130] sm:$0xff] }
0x19dd   : > { %v5327_v63 = vadd.f32 %v5324_v61, %v10229_v48  ;;  %v8705_v61 = vpack.c.bf16 %v7120_v21, %v7119_v55 }
0x19df   : > { %v5328_v52 = vsel %vm3003_vm7, %v5327_v63, 0.0 }
0x19e0   : > { %5329 = vadd.xlane.f32.xlu0 %v5328_v52 }
0x19ea   : > { %v8163_v57 = vpop.f32.mrb[36].mxu0 }
0x19eb   : > { %v5610_v0 = vmul.f32 %v8163_v57, %v9236_v29  ;;  %v10369_v2 = vmul.f32 %v8163_v57, %v9239_v30  ;;  %v10372_v4 = vmul.f32 %v8163_v57, %v9242_v31  ;;  %v10375_v5 = vmul.f32 %v8163_v57, %v9245_v32  ;;  %v5516_v3 = vpop.f32.mrb[37].mxu0 }
0x19ec   : > { %v5609_v8 = vmul.f32 %v9236_v29, %v5516_v3  ;;  %v10379_v48 = vmul.f32 %v9239_v30, %v5516_v3  ;;  %v10382_v9 = vmul.f32 %v9242_v31, %v5516_v3  ;;  %v10385_v10 = vmul.f32 %v9245_v32, %v5516_v3 }
0x19ee   : > { %v8714_v13 = vpack.c.bf16 %v5610_v0, %v5609_v8  ;;  %v8718_v15 = vpack.c.bf16 %v10369_v2, %v10379_v48  ;;  %v8730_v16 = vpack.c.bf16 %v10372_v4, %v10382_v9  ;;  %v8738_v6 = vpack.c.bf16 %v10375_v5, %v10385_v10 }
0x19f0   : > { %8716 = vmatpush3.bf16.xpose.msk.msra.mxu0 %vm9257_vm11, %v8714_v13 }
0x19f1   : > { %8721 = vmatprep.subr.bf16.mxu0 %v9033_v56 }
0x1a6d   : > { %v5330_v7 = vpop.xlane.xlu0 %5329 }
0x1a6e   : > { %v5331_v17 = vmul.f32 0.015625, %v5330_v7 }
0x1a70   : > { %v5332_v18 = vsub.f32 %v5327_v63, %v5331_v17  ;;  %v7122_v63 = vld [vmem:[%s10785_s4 + $0x138] sm:$0xff] }
0x1a71   : > { %v8709_v52 = vpack.c.bf16 %v7122_v63, %v7121_v19 }
0x1a72   : > { %v5333_v11 = vmul.f32 %v5332_v18, %v5332_v18 }
0x1a74   : > { %v5334_v14 = vsel %vm3003_vm7, %v5333_v11, 0.0 }
0x1a75   : > { %5335 = vadd.xlane.f32.xlu1 %v5334_v14 }
0x1b02   : > { %v5336_v46 = vpop.xlane.xlu1 %5335 }
0x1b03   : > { %v5337_v22 = vmul.f32 0.015625, %v5336_v46 }
0x1b05   : > { %v5338_v50 = vadd.f32 1e-05, %v5337_v22 }
0x1b07   : > { %8966 = vrsqrt.f32 %v5338_v50 }
0x1b11   : > { %v8967_v53 = vpop.eup %8966 }
0x1b12   : > { %v5340_v60 = vmul.f32 %v8967_v53, %v5332_v18 }
0x1b14   : > { %v5349_v47 = vmul.f32 %v7093_v58, %v5340_v60 }
0x1b16   : > { %v10442_v51 = vadd.f32 %v7095_v62, %v5349_v47 }
0x1b18   : > { %8143 = vmatmul.mubr.msk.f32.vlgmr.msra.gmra.mrb[48].mxu1 %vm558_vm0, %v10442_v51 }
0x1b19   : > { %8700 = vmatpush3.bf16.msra.mxu1 %v8697_v43  ;;  %8180 = vmatprep.mubr.msk.f32.mxu1 %vm558_vm0, %v9770_v1 }
0x1b1a   : > { %8702 = vmatprep.subr.bf16.mxu1 %v8701_v54 }
0x1b1d   : > { %8704 = vmatpush3.bf16.msra.mxu1 %v8701_v54 }
0x1b1e   : > { %8706 = vmatprep.subr.bf16.mxu1 %v8705_v61 }
0x1b21   : > { %8708 = vmatpush3.bf16.msra.mxu1 %v8705_v61 }
0x1b22   : > { %8710 = vmatprep.subr.bf16.mxu1 %v8709_v52 }
0x1b25   : > { %8712 = vmatpush3.bf16.msra.mxu1 %v8709_v52 }
0x1b26   : > { %8717 = vmatprep.subr.bf16.mxu1 %v9033_v56 }
0x1b28   : > { %8181 = vmatmul.mubr.msk.f32.vlgmr.msra.gmra.mrb[50].mxu1 %vm558_vm0, %v9808_v26 }
0x1b29   : > { %8194 = vmatprep.mubr.msk.f32.mxu1 %vm9034_vm3, %v9031_v28 }
0x1b2e   : > { %8720 = vmatpush3.bf16.xpose.msk.msra.mxu1 %vm9257_vm11, %v8718_v15 }
0x1b2f   : > { %8729 = vmatprep.subr.bf16.mxu1 %v9033_v56 }
0x1beb   : > { %v5437_v1 = vpop.f32.mrb[48].mxu1 }
0x1bec   : > { %v8144_v57 = vpop.f32.mrb[49].mxu1  ;;  %8188 = vmatmul.mubr.msk.f32.vlgmr.msra.gmra.mrb[38].mxu0 %vm558_vm0, %v5437_v1  ;;  %8195 = vmatmul.mubr.msk.f32.vlgmr.msra.gmra.mrb[52].mxu1 %vm558_vm0, %v5437_v1 }
0x1bed   : > { %8732 = vmatpush3.bf16.xpose.msk.msra.mxu1 %vm9257_vm11, %v8730_v16  ;;  %8215 = vmatprep.mubr.msk.f32.mxu1 %vm9034_vm3, %v9031_v28 }
0x1bee   : > { %8737 = vmatprep.subr.bf16.mxu1 %v9033_v56  ;;  %8201 = vmatprep.mubr.msk.f32.mxu0 %vm9034_vm3, %v9031_v28 }
0x1bf4   : > { %8216 = vmatmul.mubr.msk.f32.vlgmr.msra.gmra.mrb[54].mxu1 %vm558_vm0, %v5437_v1 }
0x1bf5   : > { %8740 = vmatpush3.bf16.xpose.msk.msra.mxu1 %vm9257_vm11, %v8738_v6  ;;  %8229 = vmatprep.mubr.msk.f32.mxu1 %vm9034_vm3, %v9031_v28 }
0x1bfb   : > { %v8182_v26 = vpop.f32.mrb[50].mxu1 }
0x1bfc   : > { %v10492_v0 = vmul.f32 %v8182_v26, %v9236_v29  ;;  %v5795_v2 = vmul.f32 %v8182_v26, %v9239_v30  ;;  %v10496_v4 = vmul.f32 %v8182_v26, %v9242_v31  ;;  %v10499_v3 = vmul.f32 %v8182_v26, %v9245_v32  ;;  %v5600_v8 = vpop.f32.mrb[51].mxu1  ;;  %8230 = vmatmul.mubr.msk.f32.vlgmr.msra.gmra.mrb[56].mxu1 %vm558_vm0, %v5437_v1 }
0x1bfd   : > { %v10503_v44 = vmul.f32 %v9236_v29, %v5600_v8  ;;  %v5794_v5 = vmul.f32 %v9239_v30, %v5600_v8  ;;  %v10507_v48 = vmul.f32 %v9242_v31, %v5600_v8  ;;  %v10510_v9 = vmul.f32 %v9245_v32, %v5600_v8  ;;  %6505 = vmatprep.mubr.f32.mxu1 %v9031_v28 }
0x1bff   : > { %v8722_v10 = vpack.c.bf16 %v5795_v2, %v5794_v5  ;;  %v8726_v13 = vpack.c.bf16 %v10492_v0, %v10503_v44  ;;  %v8734_v15 = vpack.c.bf16 %v10496_v4, %v10507_v48  ;;  %v8742_v29 = vpack.c.bf16 %v10499_v3, %v10510_v9  ;;  %v6287_v2 = vld [vmem:[#allocation2 + $0x100] sm:$0xff]  ;;  %v6288_v4 = vld [vmem:[#allocation2 + $0x108] sm:$0xff]  ;;  %v6289_v48 = vld [vmem:[#allocation2 + $0x110] sm:$0xff] }
0x1c00   : > { %v8746_v44 = vpack.c.bf16 %v6288_v4, %v6287_v2  ;;  %v6292_v3 = vld [vmem:[#allocation2 + $0x128] sm:$0xff]  ;;  %v7172_v2 = vld [vmem:[%s10792_s11 + $0x210] sm:$0xff]  ;;  %v7173_v4 = vld [vmem:[%s10792_s11 + $0x218] sm:$0xff] }
0x1c01   : > { %8724 = vmatpush3.bf16.msk.msra.mxu0 %vm9354_vm1, %v8722_v10  ;;  %v6290_v10 = vld [vmem:[#allocation2 + $0x118] sm:$0xff]  ;;  %v8752_v9 = vpack.c.bf16 %v6292_v3, %v6291_v20  ;;  %v7192_v20 = vld [vmem:[%s10792_s11 + $0x2b0] sm:$0xff] }
0x1c02   : > { %8725 = vmatprep.subr.bf16.mxu0 %v9033_v56  ;;  %v7193_v3 = vld [vmem:[%s10792_s11 + $0x2b8] sm:$0xff] }
0x1cbf   : > { %v5686_v30 = vpop.f32.mrb[38].mxu0  ;;  %v5778_v31 = vpop.f32.mrb[52].mxu1 }
0x1cc0   : > { %v5690_v32 = vmul.f32 0.125, %v5686_v30  ;;  %v5782_v16 = vmul.f32 0.125, %v5778_v31  ;;  %v8189_v6 = vpop.f32.mrb[39].mxu0  ;;  %v8196_v7 = vpop.f32.mrb[53].mxu1 }
0x1cc2   : > { %v5691_v17 = vsel %vm3373_vm8, %v5690_v32, -inf  ;;  %v5783_v18 = vsel %vm3373_vm8, %v5782_v16, -inf }
0x1cc3   : > { %5692 = vmax.xlane.f32.xlu1 %v5691_v17  ;;  %5784 = vmax.xlane.f32.xlu0 %v5783_v18 }
0x1cc7   : > { %v6022_v11 = vpop.f32.mrb[54].mxu1 }
0x1cc8   : > { %v6026_v14 = vmul.f32 0.125, %v6022_v11  ;;  %v8217_v25 = vpop.f32.mrb[55].mxu1 }
0x1cca   : > { %v6027_v59 = vsel %vm3373_vm8, %v6026_v14, -inf }
0x1ccb   : > { %6028 = vmax.xlane.f32.xlu0 %v6027_v59 }
0x1ccf   : > { %v6191_v23 = vpop.f32.mrb[56].mxu1 }
0x1cd0   : > { %v6195_v24 = vmul.f32 0.125, %v6191_v23  ;;  %v8231_v27 = vpop.f32.mrb[57].mxu1 }
0x1cd1   : > { %v7153_v27 = vld [vmem:[%s10790_s9 + $0x108] sm:$0xff] }
0x1cd2   : > { %v6196_v33 = vsel %vm3373_vm8, %v6195_v24, -inf }
0x1cd3   : > { %6197 = vmax.xlane.f32.xlu1 %v6196_v33 }
0x1d50   : > { %v5693_v34 = vpop.xlane.xlu1 %5692  ;;  %v5785_v35 = vpop.xlane.xlu0 %5784 }
0x1d51   : > { %v5694_v36 = vsub.f32 %v5690_v32, %v5693_v34  ;;  %v5786_v38 = vsub.f32 %v5782_v16, %v5785_v35  ;;  %v7146_v16 = vld [vmem:[%s10787_s6 + $0x4] ss:$0 sm:$0xff]  ;;  %v7154_v35 = vld [vmem:[%s10790_s9 + $0x110] sm:$0xff] }
0x1d52   : > { %v7152_v34 = vld [vmem:[%s10790_s9 + $0x100] sm:$0xff] }
0x1d53   : > { %v5695_v40 = vmul.f32 1.442695, %v5694_v36  ;;  %v5787_v41 = vmul.f32 1.442695, %v5786_v38  ;;  %v8759_v36 = vpack.c.bf16 %v7154_v35, %v7152_v34  ;;  %v7157_v38 = vld [vmem:[%s10790_s9 + $0x128] sm:$0xff] }
0x1d55   : > { %8968 = vpow2.f32 %v5695_v40  ;;  %v7159_v40 = vld [vmem:[%s10790_s9 + $0x138] sm:$0xff] }
0x1d56   : > { %8970 = vpow2.f32 %v5787_v41  ;;  %v8761_v41 = vpack.c.bf16 %v7159_v40, %v7157_v38 }
0x1d58   : > { %v6029_v42 = vpop.xlane.xlu0 %6028 }
0x1d59   : > { %v6030_v12 = vsub.f32 %v6026_v14, %v6029_v42  ;;  %v7156_v42 = vld [vmem:[%s10790_s9 + $0x120] sm:$0xff] }
0x1d5b   : > { %v6031_v43 = vmul.f32 1.442695, %v6030_v12  ;;  %v7158_v12 = vld [vmem:[%s10790_s9 + $0x130] sm:$0xff] }
0x1d5d   : > { %8972 = vpow2.f32 %v6031_v43  ;;  %v8763_v43 = vpack.c.bf16 %v7158_v12, %v7156_v42  ;;  %v7151_v12 = vld [vmem:[%s10789_s8 + $0x6] ss:$0 sm:$0xff] }
0x1d5f   : > { %v8969_v46 = vpop.eup %8968 }
0x1d60   : > { %v8971_v22 = vpop.eup %8970  ;;  %v6198_v50 = vpop.xlane.xlu1 %6197  ;;  %v5697_v53 = vsel %vm3373_vm8, %v8969_v46, 0.0 }
0x1d61   : > { %v6199_v58 = vsub.f32 %v6195_v24, %v6198_v50  ;;  %v5789_v60 = vsel %vm3373_vm8, %v8971_v22, 0.0  ;;  %5698 = vadd.xlane.f32.xlu1 %v5697_v53  ;;  %v7160_v53 = vld [vmem:[%s10790_s9 + $0x140] sm:$0xff] }
0x1d62   : > { %5790 = vadd.xlane.f32.xlu0 %v5789_v60 }
0x1d63   : > { %v6200_v62 = vmul.f32 1.442695, %v6199_v58  ;;  %v7162_v58 = vld [vmem:[%s10790_s9 + $0x150] sm:$0xff] }
0x1d64   : > { %v8767_v60 = vpack.c.bf16 %v7162_v58, %v7160_v53  ;;  %v7200_v53 = vld [vmem:[%s10792_s11 + $0x2f0] sm:$0xff]  ;;  %v7201_v58 = vld [vmem:[%s10792_s11 + $0x2f8] sm:$0xff] }
0x1d65   : > { %8974 = vpow2.f32 %v6200_v62  ;;  %v7165_v62 = vld [vmem:[%s10790_s9 + $0x168] sm:$0xff] }
0x1d67   : > { %v8973_v45 = vpop.eup %8972 }
0x1d68   : > { %v6033_v49 = vsel %vm3373_vm8, %v8973_v45, 0.0 }
0x1d69   : > { %6034 = vadd.xlane.f32.xlu0 %v6033_v49  ;;  %v7164_v49 = vld [vmem:[%s10790_s9 + $0x160] sm:$0xff] }
0x1d6f   : > { %v8975_v47 = vpop.eup %8974 }
0x1d70   : > { %v6202_v54 = vsel %vm3373_vm8, %v8975_v47, 0.0 }
0x1d71   : > { %6203 = vadd.xlane.f32.xlu1 %v6202_v54  ;;  %v7166_v54 = vld [vmem:[%s10790_s9 + $0x170] sm:$0xff] }
0x1dee   : > { %v5699_v21 = vpop.xlane.xlu1 %5698 }
0x1def   : > { %v5791_v55 = vpop.xlane.xlu0 %5790 }
0x1df0   : > { %8976 = vrcp.f32 %v5791_v55  ;;  %v8771_v55 = vpack.c.bf16 %v7166_v54, %v7164_v49  ;;  %v7168_v49 = vld [vmem:[%s10791_s10 + $0x4] sm:$0x3] }
0x1df1   : > { %8978 = vrcp.f32 %v5699_v21  ;;  %v7186_v21 = vld [vmem:[%s10792_s11 + $0x280] sm:$0xff]  ;;  %v6435_v54 = vrot.slane %v7168_v49, %v9650_v39 }
0x1df6   : > { %v6035_v63 = vpop.xlane.xlu0 %6034 }
0x1df7   : > { %8980 = vrcp.f32 %v6035_v63 }
0x1dfa   : > { %v8977_v61 = vpop.eup %8976 }
0x1dfb   : > { %v5793_v19 = vmul.f32 %v8977_v61, %v8971_v22  ;;  %v8979_v52 = vpop.eup %8978  ;;  %v7163_v22 = vld [vmem:[%s10790_s9 + $0x158] sm:$0xff]  ;;  %v7187_v61 = vld [vmem:[%s10792_s11 + $0x288] sm:$0xff] }
0x1dfc   : > { %v5701_v1 = vmul.f32 %v8979_v52, %v8969_v46  ;;  %v7161_v46 = vld [vmem:[%s10790_s9 + $0x148] sm:$0xff]  ;;  %v8773_v63 = vpack.c.bf16 %v7187_v61, %v7186_v21 }
0x1dfd   : > { %8202 = vmatmul.mubr.msk.f32.vlgmr.msra.gmra.mrb[40].mxu0 %vm897_vm12, %v5793_v19  ;;  %v8765_v50 = vpack.c.bf16 %v7163_v22, %v7161_v46  ;;  %v7170_v19 = vld [vmem:[%s10792_s11 + $0x200] sm:$0xff]  ;;  %v7171_v52 = vld [vmem:[%s10792_s11 + $0x208] sm:$0xff] }
0x1dfe   : > { %8728 = vmatpush3.bf16.msk.msra.mxu0 %vm9354_vm1, %v8726_v13  ;;  %8208 = vmatprep.mubr.msk.f32.mxu0 %vm9034_vm3, %v9031_v28  ;;  %v6204_v57 = vpop.xlane.xlu1 %6203  ;;  %v8749_v13 = vpack.c.bf16 %v6290_v10, %v6289_v48  ;;  %v7174_v10 = vld [vmem:[%s10792_s11 + $0x220] sm:$0xff] }
0x1dff   : > { %8733 = vmatprep.subr.bf16.mxu0 %v9033_v56  ;;  %8982 = vrcp.f32 %v6204_v57  ;;  %v7189_v57 = vld [vmem:[%s10792_s11 + $0x298] sm:$0xff]  ;;  %v7182_v22 = vld [vmem:[%s10792_s11 + $0x260] sm:$0xff] }
0x1e01   : > { %v8981_v26 = vpop.eup %8980 }
0x1e02   : > { %v6037_v0 = vmul.f32 %v8981_v26, %v8973_v45  ;;  %v7167_v45 = vld [vmem:[%s10790_s9 + $0x178] sm:$0xff]  ;;  %v8775_v26 = vpack.c.bf16 %v7171_v52, %v7170_v19 }
0x1e05   : > { %8209 = vmatmul.mubr.msk.f32.vlgmr.msra.gmra.mrb[40].mxu0 %vm897_vm12, %v5701_v1  ;;  %v7188_v1 = vld [vmem:[%s10792_s11 + $0x290] sm:$0xff] }
0x1e06   : > { %8736 = vmatpush3.bf16.msk.msra.mxu0 %vm9354_vm1, %v8734_v15  ;;  %8222 = vmatprep.mubr.msk.f32.mxu0 %vm9034_vm3, %v9031_v28  ;;  %v6293_v15 = vld [vmem:[#allocation2 + $0x130] sm:$0xff] }
0x1e07   : > { %8741 = vmatprep.subr.bf16.mxu0 %v9033_v56 }
0x1e09   : > { %v8983_v8 = vpop.eup %8982 }
0x1e0a   : > { %v6206_v5 = vmul.f32 %v8983_v8, %v8975_v47  ;;  %v8769_v47 = vpack.c.bf16 %v7167_v45, %v7165_v62  ;;  %v7190_v8 = vld [vmem:[%s10792_s11 + $0x2a0] sm:$0xff]  ;;  %v7185_v62 = vld [vmem:[%s10792_s11 + $0x278] sm:$0xff] }
0x1e0d   : > { %8223 = vmatmul.mubr.msk.f32.vlgmr.msra.gmra.mrb[40].mxu0 %vm897_vm12, %v6037_v0  ;;  %v8777_v0 = vpack.c.bf16 %v7189_v57, %v7188_v1  ;;  %v7203_v57 = vld [vmem:[%s10793_s12 + $0x2] ss:$0 sm:$0xff] }
0x1e0e   : > { %8744 = vmatpush3.bf16.msk.msra.mxu0 %vm9354_vm1, %v8742_v29  ;;  %8236 = vmatprep.mubr.msk.f32.mxu0 %vm9034_vm3, %v9031_v28  ;;  %v6294_v29 = vld [vmem:[#allocation2 + $0x138] sm:$0xff] }
0x1e0f   : > { %8745 = vmatprep.subr.bf16.mxu0 %v9033_v56  ;;  %v8755_v30 = vpack.c.bf16 %v6294_v29, %v6293_v15  ;;  %v8785_v15 = vpack.c.bf16 %v7193_v3, %v7192_v20  ;;  %v7176_v29 = vld [vmem:[%s10792_s11 + $0x230] sm:$0xff] }
0x1e10   : > { %v6659_v3 = vld [vmem:[%s10794_s13 + $0x10] sm:$0xff] }
0x1e15   : > { %8237 = vmatmul.mubr.msk.f32.vlgmr.msra.gmra.mrb[40].mxu0 %vm897_vm12, %v6206_v5  ;;  %v8779_v5 = vpack.c.bf16 %v7173_v4, %v7172_v2 }
0x1e16   : > { %8747 = vmatpush3.bf16.msra.mxu0 %v8746_v44  ;;  %8255 = vmatprep.mubr.msk.f32.mxu0 %vm9034_vm3, %v9031_v28  ;;  %v7191_v44 = vld [vmem:[%s10792_s11 + $0x2a8] sm:$0xff] }
0x1e17   : > { %8748 = vmatprep.subr.bf16.mxu0 %v9033_v56  ;;  %v8781_v48 = vpack.c.bf16 %v7191_v44, %v7190_v8 }
0x1e1a   : > { %8750 = vmatpush3.bf16.msra.mxu0 %v8749_v13  ;;  %v7175_v13 = vld [vmem:[%s10792_s11 + $0x228] sm:$0xff] }
0x1e1b   : > { %8751 = vmatprep.subr.bf16.mxu0 %v9033_v56 }
0x1e1e   : > { %8753 = vmatpush3.bf16.msra.mxu0 %v8752_v9  ;;  %v8783_v9 = vpack.c.bf16 %v7175_v13, %v7174_v10  ;;  %v6657_v10 = vld [vmem:[%s10794_s13] sm:$0xff]  ;;  %v6658_v13 = vld [vmem:[%s10794_s13 + $0x8] sm:$0xff] }
0x1e1f   : > { %8754 = vmatprep.subr.bf16.mxu0 %v9033_v56  ;;  %v8806_v20 = vpack.c.bf16 %v6658_v13, %v6657_v10 }
0x1e22   : > { %8756 = vmatpush3.bf16.msra.mxu0 %v8755_v30  ;;  %v7177_v30 = vld [vmem:[%s10792_s11 + $0x238] sm:$0xff] }
0x1e23   : > { %8774 = vmatprep.subr.bf16.mxu0 %v8773_v63 }
0x1ee8   : > { %v6281_v31 = vpop.f32.mrb[40].mxu0 }
0x1ee9   : > { %v8238_v32 = vpop.f32.mrb[41].mxu0  ;;  %8256 = vmatmul.mubr.msk.f32.vlgmr.msra.gmra.mrb[42].mxu0 %vm558_vm0, %v6281_v31  ;;  %v7194_v31 = vld [vmem:[%s10792_s11 + $0x2c0] sm:$0xff] }
0x1eea   : > { %8776 = vmatpush3.bf16.msra.mxu0 %v8775_v26  ;;  %v7195_v32 = vld [vmem:[%s10792_s11 + $0x2c8] sm:$0xff] }
0x1eeb   : > { %8778 = vmatprep.subr.bf16.mxu0 %v8777_v0 }
0x1eee   : > { %8780 = vmatpush3.bf16.msra.mxu0 %v8779_v5 }
0x1eef   : > { %8782 = vmatprep.subr.bf16.mxu0 %v8781_v48 }
0x1ef2   : > { %8784 = vmatpush3.bf16.msra.mxu0 %v8783_v9  ;;  %v6660_v9 = vld [vmem:[%s10794_s13 + $0x18] sm:$0xff] }
0x1ef3   : > { %8786 = vmatprep.subr.bf16.mxu0 %v8785_v15  ;;  %v8809_v15 = vpack.c.bf16 %v6660_v9, %v6659_v3 }
0x1fbc   : > { %v6372_v6 = vpop.f32.mrb[42].mxu0 }
0x1fbd   : > { %v6373_v7 = vadd.f32 %v7146_v16, %v6372_v6  ;;  %v8257_v17 = vpop.f32.mrb[43].mxu0  ;;  %v8787_v16 = vpack.c.bf16 %v7177_v30, %v7176_v29  ;;  %v8789_v6 = vpack.c.bf16 %v7195_v32, %v7194_v31  ;;  %v6661_v29 = vld [vmem:[%s10794_s13 + $0x20] sm:$0xff]  ;;  %v6662_v30 = vld [vmem:[%s10794_s13 + $0x28] sm:$0xff]  ;;  %v6663_v32 = vld [vmem:[%s10794_s13 + $0x30] sm:$0xff] }
0x1fbe   : > { %v7179_v17 = vld [vmem:[%s10792_s11 + $0x248] sm:$0xff]  ;;  %v8812_v31 = vpack.c.bf16 %v6662_v30, %v6661_v29 }
0x1fbf   : > { %v6376_v18 = vadd.f32 %v6373_v7, %v10442_v51  ;;  %v7155_v51 = vld [vmem:[%s10790_s9 + $0x118] sm:$0xff]  ;;  %v7178_v7 = vld [vmem:[%s10792_s11 + $0x240] sm:$0xff]  ;;  %8788 = vmatpush3.bf16.msra.mxu0 %v8787_v16 }
0x1fc0   : > { %v8757_v33 = vpack.c.bf16 %v7155_v51, %v7153_v27  ;;  %8790 = vmatprep.subr.bf16.mxu0 %v8789_v6  ;;  %v7198_v27 = vld [vmem:[%s10792_s11 + $0x2e0] sm:$0xff]  ;;  %v7199_v51 = vld [vmem:[%s10792_s11 + $0x2e8] sm:$0xff]  ;;  %v6664_v16 = vld [vmem:[%s10794_s13 + $0x38] sm:$0xff] }
0x1fc1   : > { %v6377_v11 = vsel %vm3003_vm7, %v6376_v18, 0.0  ;;  %v8797_v34 = vpack.c.bf16 %v7199_v51, %v7198_v27  ;;  %v8815_v6 = vpack.c.bf16 %v6664_v16, %v6663_v32  ;;  %v7208_v27 = vld [vmem:[%s10795_s14] ss:$0 sm:$0xff] }
0x1fc2   : > { %6378 = vadd.xlane.f32.xlu0 %v6377_v11  ;;  %8758 = vmatprep.subr.bf16.mxu1 %v8757_v33  ;;  %v7197_v11 = vld [vmem:[%s10792_s11 + $0x2d8] sm:$0xff] }
0x1fc3   : > { %8760 = vmatpush1.bf16.msra.mxu1 %v8759_v36 }
0x1fc4   : > { %8762 = vmatprep.subr.bf16.mxu1 %v8761_v41  ;;  %v7149_v41 = vld [vmem:[%s10788_s7 + $0x6] ss:$0 sm:$0xff] }
0x1fc7   : > { %8764 = vmatpush1.bf16.msra.mxu1 %v8763_v43 }
0x1fc8   : > { %8766 = vmatprep.subr.bf16.mxu1 %v8765_v50  ;;  %v7183_v50 = vld [vmem:[%s10792_s11 + $0x268] sm:$0xff] }
0x1fcb   : > { %8768 = vmatpush1.bf16.msra.mxu1 %v8767_v60  ;;  %v8801_v60 = vpack.c.bf16 %v7201_v58, %v7200_v53 }
0x1fcc   : > { %8770 = vmatprep.subr.bf16.mxu1 %v8769_v47  ;;  %v6431_v47 = vrot.slane %v7168_v49, %v9645_v37 }
0x1fcf   : > { %8772 = vmatpush1.bf16.msra.mxu1 %v8771_v55 }
0x1fd0   : > { %8805 = vmatprep.subr.bf16.mxu1 %v9033_v56 }
0x204f   : > { %v6379_v14 = vpop.xlane.xlu0 %6378 }
0x2050   : > { %v6380_v25 = vmul.f32 0.015625, %v6379_v14  ;;  %v8791_v14 = vpack.c.bf16 %v7179_v17, %v7178_v7 }
0x2052   : > { %v10566_v59 = vsub.f32 %v6376_v18, %v6380_v25  ;;  %v7196_v18 = vld [vmem:[%s10792_s11 + $0x2d0] sm:$0xff]  ;;  %8792 = vmatpush3.bf16.msra.mxu0 %v8791_v14 }
0x2053   : > { %v8793_v25 = vpack.c.bf16 %v7197_v11, %v7196_v18 }
0x2054   : > { %v6382_v23 = vmul.f32 %v10566_v59, %v10566_v59 }
0x2055   : > { %8794 = vmatprep.subr.bf16.mxu0 %v8793_v25  ;;  %v7207_v25 = vld [vmem:[%s10789_s8 + $0x7] ss:$0 sm:$0xff] }
0x2056   : > { %v6383_v24 = vsel %vm3003_vm7, %v6382_v23, 0.0  ;;  %v7180_v23 = vld [vmem:[%s10792_s11 + $0x250] sm:$0xff] }
0x2057   : > { %6384 = vadd.xlane.f32.xlu1 %v6383_v24  ;;  %v7181_v24 = vld [vmem:[%s10792_s11 + $0x258] sm:$0xff] }
0x2058   : > { %v8795_v33 = vpack.c.bf16 %v7181_v24, %v7180_v23 }
0x205a   : > { %8796 = vmatpush3.bf16.msra.mxu0 %v8795_v33 }
0x205b   : > { %8798 = vmatprep.subr.bf16.mxu0 %v8797_v34 }
0x20e4   : > { %v6385_v35 = vpop.xlane.xlu1 %6384 }
0x20e5   : > { %v6386_v36 = vmul.f32 0.015625, %v6385_v35 }
0x20e7   : > { %v6387_v38 = vadd.f32 1e-05, %v6386_v36 }
0x20e9   : > { %8984 = vrsqrt.f32 %v6387_v38 }
0x20f3   : > { %v8985_v40 = vpop.eup %8984 }
0x20f4   : > { %v6389_v42 = vmul.f32 %v8985_v40, %v10566_v59  ;;  %v8799_v59 = vpack.c.bf16 %v7183_v50, %v7182_v22 }
0x20f6   : > { %v6398_v43 = vmul.f32 %v7149_v41, %v6389_v42  ;;  %8800 = vmatpush3.bf16.msra.mxu0 %v8799_v59 }
0x20f7   : > { %8802 = vmatprep.subr.bf16.mxu0 %v8801_v60 }
0x20f8   : > { %v6407_v46 = vadd.f32 %v7151_v12, %v6398_v43 }
0x20fa   : > { %7169 = vmatmul.mubr.msk.f32.vlgmr.msra.gmra.mrb[58].mxu1 %vm558_vm0, %v6407_v46 }
0x20fb   : > { %8274 = vmatprep.mubr.msk.f32.mxu1 %vm9034_vm3, %v9031_v28  ;;  %v7184_v28 = vld [vmem:[%s10792_s11 + $0x270] sm:$0xff]  ;;  %8807 = vmatpush3.bf16.msra.mxu1 %v8806_v20 }
0x20fc   : > { %v8803_v45 = vpack.c.bf16 %v7185_v62, %v7184_v28  ;;  %8808 = vmatprep.subr.bf16.mxu1 %v9033_v56 }
0x20fe   : > { %8804 = vmatpush3.bf16.msra.mxu0 %v8803_v45 }
0x20ff   : > { %8810 = vmatpush3.bf16.msra.mxu1 %v8809_v15 }
0x2100   : > { %8811 = vmatprep.subr.bf16.mxu1 %v9033_v56 }
0x2103   : > { %8813 = vmatpush3.bf16.msra.mxu1 %v8812_v31 }
0x2104   : > { %8814 = vmatprep.subr.bf16.mxu1 %v9033_v56  ;;  %v7205_v56 = vld [vmem:[%s10788_s7 + $0x7] ss:$0 sm:$0xff] }
0x2107   : > { %8816 = vmatpush3.bf16.msra.mxu1 %v8815_v6 }
0x21cd   : > { %v6507_v55 = vpop.f32.mrb[58].mxu1 }
0x21ce   : > { %v6508_v21 = vadd.f32 %v6507_v55, %v6431_v47  ;;  %v6509_v61 = vpop.f32.mrb[59].mxu1 }
0x21cf   : > { %v6510_v19 = vadd.f32 %v6509_v61, %v6435_v54 }
0x21d0   : > { %v6512_v52 = vmax.f32 %v6508_v21, 0.0 }
0x21d1   : > { %v6513_v63 = vmax.f32 %v6510_v19, 0.0 }
0x21d3   : > { %6619 = vmatprep.mubr.f32.mxu0 %v6513_v63 }
0x21d4   : > { %6620 = vmatmul.mubr.f32.vlgmr.msra.gmra.mrb[44].mxu0 %v6512_v52 }
0x22a7   : > { %v7618_v1 = vpop.f32.mrb[44].mxu0 }
0x22a8   : > { %v7619_v26 = vpop.f32.mrb[45].mxu0 }
0x22a9   : > { %v7620_v0 = vadd.f32 %v7619_v26, %v7618_v1 }
0x22ab   : > { %v6622_v2 = vadd.f32 %v7620_v0, %v7203_v57 }
0x22ad   : > { %v6625_v4 = vadd.f32 %v6622_v2, %v6407_v46 }
0x22af   : > { %v6626_v37 = vsel %vm3003_vm7, %v6625_v4, 0.0 }
0x22b0   : > { %6627 = vadd.xlane.f32.xlu0 %v6626_v37 }
0x233d   : > { %v6628_v39 = vpop.xlane.xlu0 %6627 }
0x233e   : > { %v6629_v8 = vmul.f32 0.015625, %v6628_v39 }
0x2340   : > { %v6630_v44 = vsub.f32 %v6625_v4, %v6629_v8 }
0x2342   : > { %v6631_v5 = vmul.f32 %v6630_v44, %v6630_v44 }
0x2344   : > { %v6632_v48 = vsel %vm3003_vm7, %v6631_v5, 0.0 }
0x2345   : > { %6633 = vadd.xlane.f32.xlu1 %v6632_v48 }
0x23d2   : > { %v6634_v7 = vpop.xlane.xlu1 %6633 }
0x23d3   : > { %v6635_v17 = vmul.f32 0.015625, %v6634_v7 }
0x23d5   : > { %v6636_v18 = vadd.f32 1e-05, %v6635_v17 }
0x23d7   : > { %8986 = vrsqrt.f32 %v6636_v18 }
0x23e1   : > { %v8987_v11 = vpop.eup %8986 }
0x23e2   : > { %v6638_v14 = vmul.f32 %v8987_v11, %v6630_v44 }
0x23e4   : > { %v6647_v23 = vmul.f32 %v7205_v56, %v6638_v14 }
0x23e6   : > { %v6656_v24 = vadd.f32 %v7207_v25, %v6647_v23 }
0x23e8   : > { %8275 = vmatmul.mubr.msk.f32.vlgmr.msra.gmra.mrb[60].mxu1 %vm558_vm0, %v6656_v24 }
0x24bb   : > { %v6741_v51 = vpop.f32.mrb[60].mxu1 }
0x24bc   : > { %v6742_v33 = vadd.f32 %v7208_v27, %v6741_v51  ;;  %v8276_v34 = vpop.f32.mrb[61].mxu1 }
0x24be   : > { %6745 = vst [vmem:[%s524_s26] sm:$0x7f] %v6742_v33 }
0x24bf PF: > { %s26_s18 = sadd.s32 1, %s9026_s18  }
0x24c0   : > { %p23_p3 = scmp.ge.s32.totalorder %s26_s18, 4  }
0x24c2   :  { %25 = sbr.rel (!%p23_p3) target bundleno = 1 (0x1), region = 160 }
0x24c9   :  { %6765 = vsyncpa [#allocation3], 1 }
0x24ca   :  { %6767 = vsyncpa [#allocation3 + $0x1], 1 }

</bundles_post_ra>
